<compile_context>
chip_gen: v7x
topology: tpu7x:2x2x1
jax: 0.10.0
libtpu: 0.0.40
codegen_flags: <defaults>
</compile_context>

<pallas_src>
import functools

import jax
import jax.numpy as jnp
from jax.experimental import pallas as pl
from jax.experimental.pallas import tpu as pltpu


# -----------------------------------------------------------------------------
# Fused Pallas kernel: the entire GCN stack of refinement.forward
# -----------------------------------------------------------------------------
def _fused_gcn_kernel(x_ref, adj_ref, wwl_ref, b_ref, o_ref, *,
                      n_blocks, p, gconv_activation):
    """One batch element per grid step.

    x_ref   : (1, N, P)    bf16  zero-padded input features
    adj_ref : (N, N)       bf16  dense row-normalized adjacency (shared by all layers)
    wwl_ref : (L, P, 2P)   bf16  per-layer [weight | loop_weight], zero-padded
    b_ref   : (L, 1, P)    f32   per-layer bias, zero-padded
    o_ref   : (1, N, P)    f32   padded output (caller slices [:, :, :coord_dim])
    """
    adj = adj_ref[...]                          # loaded once, reused by every layer
    x = x_ref[0].astype(jnp.float32)            # (N, P) f32 working activation

    def gconv_layer(h, l, relu):
        # One dot yields both support (h @ W) and loop (h @ W_loop): the two weight
        # matrices are concatenated along the output axis -> lane width 2P.
        hw = jnp.dot(h.astype(jnp.bfloat16), wwl_ref[l],
                     preferred_element_type=jnp.float32)           # (N, 2P)
        support = hw[:, :p]                                        # lane-aligned split
        loop = hw[:, p:]
        out = jnp.dot(adj, support.astype(jnp.bfloat16),
                      preferred_element_type=jnp.float32)          # (N, P)
        out = out + (loop + b_ref[l])
        if relu:
            out = jnp.maximum(out, 0.0)
        return out

    # GBottleneck.conv1 (+ optional activation)
    x = gconv_layer(x, 0, gconv_activation)
    # 6 GResBlocks: relu after each conv (if activation), then (x + h) * 0.5
    for i in range(n_blocks):
        h = gconv_layer(x, 1 + 2 * i, gconv_activation)
        h = gconv_layer(h, 2 + 2 * i, gconv_activation)
        x = (x + h) * 0.5
    # GBottleneck.conv2 (no in-block activation) followed by refinement's
    # unconditional F.relu -> fold the relu into this layer.
    x = gconv_layer(x, 1 + 2 * n_blocks, True)
    # final self.gconv -> coord_dim (padded lanes stay exactly zero)
    x = gconv_layer(x, 2 + 2 * n_blocks, False)
    o_ref[0] = x


# -----------------------------------------------------------------------------
# Wrapper: padding, weight stacking, pallas_call
# -----------------------------------------------------------------------------
def _round_up(x, m):
    return ((x + m - 1) // m) * m


def _pad_mat(w, rows, cols):
    return jnp.zeros((rows, cols), w.dtype).at[:w.shape[0], :w.shape[1]].set(w)


def _stack_layer_params(params, p):
    layers = [params["g1"]]
    for blk in params["blocks"]:
        layers += [blk["c1"], blk["c2"]]
    layers += [params["g2"], params["gc"]]
    wwl = jnp.stack([
        jnp.concatenate([_pad_mat(l["w"], p, p), _pad_mat(l["wl"], p, p)], axis=1)
        for l in layers])                                            # (L, P, 2P)
    bias = jnp.stack([
        jnp.zeros((1, p), jnp.float32).at[0, :l["b"].shape[0]].set(l["b"])
        for l in layers])                                            # (L, 1, P)
    return wwl.astype(jnp.bfloat16), bias


def refinement_forward(params, x3, *, adj, gconv_activation=True):
    """refinement.forward: new_x3, _ = gcns(x3); new_x3 = relu(new_x3); gconv(new_x3)."""
    B, N, fin = x3.shape
    n_blocks = len(params["blocks"])
    hidden = params["g1"]["w"].shape[1]
    last_hidden = params["g2"]["w"].shape[1]
    coord_dim = params["gc"]["w"].shape[1]
    p = _round_up(max(fin, hidden, last_hidden, coord_dim, 128), 128)
    n_layers = 2 * n_blocks + 3

    wwl, bias = _stack_layer_params(params, p)
    x_pad = jnp.zeros((B, N, p), jnp.bfloat16).at[:, :, :fin].set(
        x3.astype(jnp.bfloat16))
    adj_b = adj.astype(jnp.bfloat16)

    out = pl.pallas_call(
        functools.partial(_fused_gcn_kernel, n_blocks=n_blocks, p=p,
                          gconv_activation=gconv_activation),
        out_shape=jax.ShapeDtypeStruct((B, N, p), jnp.float32),
        grid=(B,),
        in_specs=[
            pl.BlockSpec((1, N, p), lambda b: (b, 0, 0)),
            # constant block indices -> adj / weights / biases DMA'd once,
            # VMEM-resident across all grid steps and all 15 layers
            pl.BlockSpec((N, N), lambda b: (0, 0)),
            pl.BlockSpec((n_layers, p, 2 * p), lambda b: (0, 0, 0)),
            pl.BlockSpec((n_layers, 1, p), lambda b: (0, 0, 0)),
        ],
        out_specs=pl.BlockSpec((1, N, p), lambda b: (b, 0, 0)),
        compiler_params=pltpu.CompilerParams(
            dimension_semantics=("parallel",)),    # v7x: one batch per TensorCore
    )(x_pad, adj_b, wwl, bias)
    return out[:, :, :coord_dim]


# -----------------------------------------------------------------------------
# Pure-JAX reference (mirrors the kernel's bf16-operand / f32-accumulation recipe)
# -----------------------------------------------------------------------------
def reference_forward(params, x3, adj, gconv_activation=True):
    bf16 = jnp.bfloat16
    adj_b = adj.astype(bf16)

    def gconv(x, lp, relu):
        xb = x.astype(bf16)
        sup = jnp.einsum("bnf,fk->bnk", xb, lp["w"].astype(bf16),
                         preferred_element_type=jnp.float32)
        loop = jnp.einsum("bnf,fk->bnk", xb, lp["wl"].astype(bf16),
                          preferred_element_type=jnp.float32)
        out = jnp.einsum("mn,bnk->bmk", adj_b, sup.astype(bf16),
                         preferred_element_type=jnp.float32)
        out = out + loop + lp["b"]
        return jnp.maximum(out, 0.0) if relu else out

    x = gconv(x3, params["g1"], gconv_activation)
    for blk in params["blocks"]:
        h = gconv(x, blk["c1"], gconv_activation)
        h = gconv(h, blk["c2"], gconv_activation)
        x = (x + h) * 0.5
    x = gconv(x, params["g2"], True)          # GBottleneck.conv2, then F.relu
    return gconv(x, params["gc"], False)      # final GConv -> coord_dim


# -----------------------------------------------------------------------------
# Deterministic parameter / adjacency construction
# -----------------------------------------------------------------------------
def _xavier(key, fan_in, fan_out):
    scale = jnp.sqrt(2.0 / (fan_in + fan_out))
    return jax.random.normal(key, (fan_in, fan_out), jnp.float32) * scale


def init_params(key, *, in_dim, hidden_dim, last_hidden_dim, coord_dim, n_blocks=6):
    n_gconvs = 2 * n_blocks + 3
    keys = iter(jax.random.split(key, 2 * n_gconvs + 2))

    def gconv_params(fin, fout):
        return {"w": _xavier(next(keys), fin, fout),
                "wl": _xavier(next(keys), fin, fout),
                "b": jnp.zeros((fout,), jnp.float32)}

    return {
        "g1": gconv_params(in_dim, hidden_dim),                 # GBottleneck.conv1
        "blocks": [{"c1": gconv_params(hidden_dim, hidden_dim),
                    "c2": gconv_params(hidden_dim, hidden_dim)}
                   for _ in range(n_blocks)],                   # 6 GResBlocks
        "g2": gconv_params(hidden_dim, last_hidden_dim),        # GBottleneck.conv2
        "gc": gconv_params(last_hidden_dim, coord_dim),         # final self.gconv
    }


def build_adjacency(n):
    """Deterministic row-normalized neighbor matrix standing in for
    ellipsoid.adj_mat[2] (no self loops: loop_weight carries the self term)."""
    idx = jnp.arange(n)
    a = jnp.zeros((n, n), jnp.float32)
    for d in (1, 2):
        a = a.at[idx, (idx + d) % n].set(1.0)
        a = a.at[idx, (idx - d) % n].set(1.0)
    return a / jnp.sum(a, axis=1, keepdims=True)


# -----------------------------------------------------------------------------
if __name__ == "__main__":
    B = 2
    N = 64                      # vertices of mesh level 2 (ellipsoid.adj_mat[2])
    hidden_dim = 32
    features_dim = 48
    last_hidden_dim = 16
    coord_dim = 3
    n_blocks = 6
    in_dim = features_dim + hidden_dim      # GBottleneck input width

    key = jax.random.PRNGKey(0)
    k_x, k_p = jax.random.split(key)
    x3 = jax.random.normal(k_x, (B, N, in_dim), jnp.float32)
    adj = build_adjacency(N)
    params = init_params(k_p, in_dim=in_dim, hidden_dim=hidden_dim,
                         last_hidden_dim=last_hidden_dim,
                         coord_dim=coord_dim, n_blocks=n_blocks)

    fwd = jax.jit(functools.partial(refinement_forward, adj=adj,
                                    gconv_activation=True))
    out = fwd(params, x3)
    jax.block_until_ready(out)
    assert out.shape == (B, N, coord_dim), out.shape

    ref = reference_forward(params, x3, adj, gconv_activation=True)
    err = float(jnp.max(jnp.abs(out - ref)))
    assert bool(jnp.all(jnp.isfinite(out))), "non-finite kernel output"
    assert err < 5e-2, f"kernel/reference mismatch: max abs err = {err}"
    print("KERNEL_OK")
</pallas_src>

<mosaic_0001>
module attributes {stable_mosaic.version = 11 : i64} {
  func.func @_fused_gcn_kernel(%arg0: i32, %arg1: memref<1x64x128xbf16, #tpu.memory_space<vmem>>, %arg2: memref<64x64xbf16, #tpu.memory_space<vmem>>, %arg3: memref<15x128x256xbf16, #tpu.memory_space<vmem>>, %arg4: memref<15x1x128xf32, #tpu.memory_space<vmem>>, %arg5: memref<1x64x128xf32, #tpu.memory_space<vmem>>) attributes {dimension_semantics = [#tpu.dimension_semantics<parallel>], iteration_bounds = array<i64: 2>, scalar_prefetch = 0 : i64, scratch_operands = 0 : i64, tpu.core_type = #tpu.core_type<tc>, window_params = [{transform_indices = @transform_0, window_bounds = array<i64: 1, 64, 128>}, {pipeline_mode = #tpu.pipeline_mode<synchronous>, transform_indices = @transform_1, window_bounds = array<i64: 64, 64>}, {pipeline_mode = #tpu.pipeline_mode<synchronous>, transform_indices = @transform_2, window_bounds = array<i64: 15, 128, 256>}, {pipeline_mode = #tpu.pipeline_mode<synchronous>, transform_indices = @transform_3, window_bounds = array<i64: 15, 1, 128>}, {transform_indices = @transform_4, window_bounds = array<i64: 1, 64, 128>}]} {
    %c0 = arith.constant 0 : index
    %c0_0 = arith.constant 0 : index
    %0 = vector.load %arg2[%c0, %c0_0] : memref<64x64xbf16, #tpu.memory_space<vmem>>, vector<64x64xbf16>
    %c0_1 = arith.constant 0 : index
    %c0_2 = arith.constant 0 : index
    %c0_3 = arith.constant 0 : index
    %1 = vector.load %arg1[%c0_1, %c0_2, %c0_3] : memref<1x64x128xbf16, #tpu.memory_space<vmem>>, vector<1x64x128xbf16>
    %2 = vector.shape_cast %1 : vector<1x64x128xbf16> to vector<64x128xbf16>
    %3 = arith.extf %2 : vector<64x128xbf16> to vector<64x128xf32>
    %4 = arith.truncf %3 : vector<64x128xf32> to vector<64x128xbf16>
    %c0_4 = arith.constant 0 : index
    %c0_5 = arith.constant 0 : index
    %c0_6 = arith.constant 0 : index
    %5 = vector.load %arg3[%c0_4, %c0_5, %c0_6] : memref<15x128x256xbf16, #tpu.memory_space<vmem>>, vector<1x128x256xbf16>
    %6 = vector.shape_cast %5 : vector<1x128x256xbf16> to vector<128x256xbf16>
    %cst = arith.constant dense<0.000000e+00> : vector<64x256xf32>
    %7 = tpu.matmul %4, %6, %cst {dimension_numbers = #tpu.dot_dimension_numbers<[1], [0], [0], [1], [0, 0, 1, 1], [], []>} : vector<64x128xbf16>, vector<128x256xbf16>, vector<64x256xf32> -> vector<64x256xf32>
    %8 = vector.extract_strided_slice %7 {offsets = [0, 0], sizes = [64, 128], strides = [1, 1]} : vector<64x256xf32> to vector<64x128xf32>
    %9 = vector.extract_strided_slice %7 {offsets = [0, 128], sizes = [64, 128], strides = [1, 1]} : vector<64x256xf32> to vector<64x128xf32>
    %10 = arith.truncf %8 : vector<64x128xf32> to vector<64x128xbf16>
    %cst_7 = arith.constant dense<0.000000e+00> : vector<64x128xf32>
    %11 = tpu.matmul %0, %10, %cst_7 {dimension_numbers = #tpu.dot_dimension_numbers<[1], [0], [0], [1], [0, 0, 1, 1], [], []>} : vector<64x64xbf16>, vector<64x128xbf16>, vector<64x128xf32> -> vector<64x128xf32>
    %c0_8 = arith.constant 0 : index
    %c0_9 = arith.constant 0 : index
    %c0_10 = arith.constant 0 : index
    %12 = vector.load %arg4[%c0_8, %c0_9, %c0_10] : memref<15x1x128xf32, #tpu.memory_space<vmem>>, vector<1x1x128xf32>
    %13 = vector.shape_cast %12 : vector<1x1x128xf32> to vector<1x128xf32>
    %14 = vector.broadcast %13 : vector<1x128xf32> to vector<64x128xf32>
    %15 = arith.addf %9, %14 : vector<64x128xf32>
    %16 = arith.addf %11, %15 : vector<64x128xf32>
    %cst_11 = arith.constant 0.000000e+00 : f32
    %17 = vector.broadcast %cst_11 : f32 to vector<64x128xf32>
    %18 = arith.maximumf %16, %17 : vector<64x128xf32>
    %19 = arith.truncf %18 : vector<64x128xf32> to vector<64x128xbf16>
    %c1 = arith.constant 1 : index
    %c0_12 = arith.constant 0 : index
    %c0_13 = arith.constant 0 : index
    %20 = vector.load %arg3[%c1, %c0_12, %c0_13] : memref<15x128x256xbf16, #tpu.memory_space<vmem>>, vector<1x128x256xbf16>
    %21 = vector.shape_cast %20 : vector<1x128x256xbf16> to vector<128x256xbf16>
    %cst_14 = arith.constant dense<0.000000e+00> : vector<64x256xf32>
    %22 = tpu.matmul %19, %21, %cst_14 {dimension_numbers = #tpu.dot_dimension_numbers<[1], [0], [0], [1], [0, 0, 1, 1], [], []>} : vector<64x128xbf16>, vector<128x256xbf16>, vector<64x256xf32> -> vector<64x256xf32>
    %23 = vector.extract_strided_slice %22 {offsets = [0, 0], sizes = [64, 128], strides = [1, 1]} : vector<64x256xf32> to vector<64x128xf32>
    %24 = vector.extract_strided_slice %22 {offsets = [0, 128], sizes = [64, 128], strides = [1, 1]} : vector<64x256xf32> to vector<64x128xf32>
    %25 = arith.truncf %23 : vector<64x128xf32> to vector<64x128xbf16>
    %cst_15 = arith.constant dense<0.000000e+00> : vector<64x128xf32>
    %26 = tpu.matmul %0, %25, %cst_15 {dimension_numbers = #tpu.dot_dimension_numbers<[1], [0], [0], [1], [0, 0, 1, 1], [], []>} : vector<64x64xbf16>, vector<64x128xbf16>, vector<64x128xf32> -> vector<64x128xf32>
    %c1_16 = arith.constant 1 : index
    %c0_17 = arith.constant 0 : index
    %c0_18 = arith.constant 0 : index
    %27 = vector.load %arg4[%c1_16, %c0_17, %c0_18] : memref<15x1x128xf32, #tpu.memory_space<vmem>>, vector<1x1x128xf32>
    %28 = vector.shape_cast %27 : vector<1x1x128xf32> to vector<1x128xf32>
    %29 = vector.broadcast %28 : vector<1x128xf32> to vector<64x128xf32>
    %30 = arith.addf %24, %29 : vector<64x128xf32>
    %31 = arith.addf %26, %30 : vector<64x128xf32>
    %cst_19 = arith.constant 0.000000e+00 : f32
    %32 = vector.broadcast %cst_19 : f32 to vector<64x128xf32>
    %33 = arith.maximumf %31, %32 : vector<64x128xf32>
    %34 = arith.truncf %33 : vector<64x128xf32> to vector<64x128xbf16>
    %c2 = arith.constant 2 : index
    %c0_20 = arith.constant 0 : index
    %c0_21 = arith.constant 0 : index
    %35 = vector.load %arg3[%c2, %c0_20, %c0_21] : memref<15x128x256xbf16, #tpu.memory_space<vmem>>, vector<1x128x256xbf16>
    %36 = vector.shape_cast %35 : vector<1x128x256xbf16> to vector<128x256xbf16>
    %cst_22 = arith.constant dense<0.000000e+00> : vector<64x256xf32>
    %37 = tpu.matmul %34, %36, %cst_22 {dimension_numbers = #tpu.dot_dimension_numbers<[1], [0], [0], [1], [0, 0, 1, 1], [], []>} : vector<64x128xbf16>, vector<128x256xbf16>, vector<64x256xf32> -> vector<64x256xf32>
    %38 = vector.extract_strided_slice %37 {offsets = [0, 0], sizes = [64, 128], strides = [1, 1]} : vector<64x256xf32> to vector<64x128xf32>
    %39 = vector.extract_strided_slice %37 {offsets = [0, 128], sizes = [64, 128], strides = [1, 1]} : vector<64x256xf32> to vector<64x128xf32>
    %40 = arith.truncf %38 : vector<64x128xf32> to vector<64x128xbf16>
    %cst_23 = arith.constant dense<0.000000e+00> : vector<64x128xf32>
    %41 = tpu.matmul %0, %40, %cst_23 {dimension_numbers = #tpu.dot_dimension_numbers<[1], [0], [0], [1], [0, 0, 1, 1], [], []>} : vector<64x64xbf16>, vector<64x128xbf16>, vector<64x128xf32> -> vector<64x128xf32>
    %c2_24 = arith.constant 2 : index
    %c0_25 = arith.constant 0 : index
    %c0_26 = arith.constant 0 : index
    %42 = vector.load %arg4[%c2_24, %c0_25, %c0_26] : memref<15x1x128xf32, #tpu.memory_space<vmem>>, vector<1x1x128xf32>
    %43 = vector.shape_cast %42 : vector<1x1x128xf32> to vector<1x128xf32>
    %44 = vector.broadcast %43 : vector<1x128xf32> to vector<64x128xf32>
    %45 = arith.addf %39, %44 : vector<64x128xf32>
    %46 = arith.addf %41, %45 : vector<64x128xf32>
    %cst_27 = arith.constant 0.000000e+00 : f32
    %47 = vector.broadcast %cst_27 : f32 to vector<64x128xf32>
    %48 = arith.maximumf %46, %47 : vector<64x128xf32>
    %49 = arith.addf %18, %48 : vector<64x128xf32>
    %cst_28 = arith.constant 5.000000e-01 : f32
    %50 = vector.broadcast %cst_28 : f32 to vector<64x128xf32>
    %51 = arith.mulf %49, %50 : vector<64x128xf32>
    %52 = arith.truncf %51 : vector<64x128xf32> to vector<64x128xbf16>
    %c3 = arith.constant 3 : index
    %c0_29 = arith.constant 0 : index
    %c0_30 = arith.constant 0 : index
    %53 = vector.load %arg3[%c3, %c0_29, %c0_30] : memref<15x128x256xbf16, #tpu.memory_space<vmem>>, vector<1x128x256xbf16>
    %54 = vector.shape_cast %53 : vector<1x128x256xbf16> to vector<128x256xbf16>
    %cst_31 = arith.constant dense<0.000000e+00> : vector<64x256xf32>
    %55 = tpu.matmul %52, %54, %cst_31 {dimension_numbers = #tpu.dot_dimension_numbers<[1], [0], [0], [1], [0, 0, 1, 1], [], []>} : vector<64x128xbf16>, vector<128x256xbf16>, vector<64x256xf32> -> vector<64x256xf32>
    %56 = vector.extract_strided_slice %55 {offsets = [0, 0], sizes = [64, 128], strides = [1, 1]} : vector<64x256xf32> to vector<64x128xf32>
    %57 = vector.extract_strided_slice %55 {offsets = [0, 128], sizes = [64, 128], strides = [1, 1]} : vector<64x256xf32> to vector<64x128xf32>
    %58 = arith.truncf %56 : vector<64x128xf32> to vector<64x128xbf16>
    %cst_32 = arith.constant dense<0.000000e+00> : vector<64x128xf32>
    %59 = tpu.matmul %0, %58, %cst_32 {dimension_numbers = #tpu.dot_dimension_numbers<[1], [0], [0], [1], [0, 0, 1, 1], [], []>} : vector<64x64xbf16>, vector<64x128xbf16>, vector<64x128xf32> -> vector<64x128xf32>
    %c3_33 = arith.constant 3 : index
    %c0_34 = arith.constant 0 : index
    %c0_35 = arith.constant 0 : index
    %60 = vector.load %arg4[%c3_33, %c0_34, %c0_35] : memref<15x1x128xf32, #tpu.memory_space<vmem>>, vector<1x1x128xf32>
    %61 = vector.shape_cast %60 : vector<1x1x128xf32> to vector<1x128xf32>
    %62 = vector.broadcast %61 : vector<1x128xf32> to vector<64x128xf32>
    %63 = arith.addf %57, %62 : vector<64x128xf32>
    %64 = arith.addf %59, %63 : vector<64x128xf32>
    %cst_36 = arith.constant 0.000000e+00 : f32
    %65 = vector.broadcast %cst_36 : f32 to vector<64x128xf32>
    %66 = arith.maximumf %64, %65 : vector<64x128xf32>
    %67 = arith.truncf %66 : vector<64x128xf32> to vector<64x128xbf16>
    %c4 = arith.constant 4 : index
    %c0_37 = arith.constant 0 : index
    %c0_38 = arith.constant 0 : index
    %68 = vector.load %arg3[%c4, %c0_37, %c0_38] : memref<15x128x256xbf16, #tpu.memory_space<vmem>>, vector<1x128x256xbf16>
    %69 = vector.shape_cast %68 : vector<1x128x256xbf16> to vector<128x256xbf16>
    %cst_39 = arith.constant dense<0.000000e+00> : vector<64x256xf32>
    %70 = tpu.matmul %67, %69, %cst_39 {dimension_numbers = #tpu.dot_dimension_numbers<[1], [0], [0], [1], [0, 0, 1, 1], [], []>} : vector<64x128xbf16>, vector<128x256xbf16>, vector<64x256xf32> -> vector<64x256xf32>
    %71 = vector.extract_strided_slice %70 {offsets = [0, 0], sizes = [64, 128], strides = [1, 1]} : vector<64x256xf32> to vector<64x128xf32>
    %72 = vector.extract_strided_slice %70 {offsets = [0, 128], sizes = [64, 128], strides = [1, 1]} : vector<64x256xf32> to vector<64x128xf32>
    %73 = arith.truncf %71 : vector<64x128xf32> to vector<64x128xbf16>
    %cst_40 = arith.constant dense<0.000000e+00> : vector<64x128xf32>
    %74 = tpu.matmul %0, %73, %cst_40 {dimension_numbers = #tpu.dot_dimension_numbers<[1], [0], [0], [1], [0, 0, 1, 1], [], []>} : vector<64x64xbf16>, vector<64x128xbf16>, vector<64x128xf32> -> vector<64x128xf32>
    %c4_41 = arith.constant 4 : index
    %c0_42 = arith.constant 0 : index
    %c0_43 = arith.constant 0 : index
    %75 = vector.load %arg4[%c4_41, %c0_42, %c0_43] : memref<15x1x128xf32, #tpu.memory_space<vmem>>, vector<1x1x128xf32>
    %76 = vector.shape_cast %75 : vector<1x1x128xf32> to vector<1x128xf32>
    %77 = vector.broadcast %76 : vector<1x128xf32> to vector<64x128xf32>
    %78 = arith.addf %72, %77 : vector<64x128xf32>
    %79 = arith.addf %74, %78 : vector<64x128xf32>
    %cst_44 = arith.constant 0.000000e+00 : f32
    %80 = vector.broadcast %cst_44 : f32 to vector<64x128xf32>
    %81 = arith.maximumf %79, %80 : vector<64x128xf32>
    %82 = arith.addf %51, %81 : vector<64x128xf32>
    %cst_45 = arith.constant 5.000000e-01 : f32
    %83 = vector.broadcast %cst_45 : f32 to vector<64x128xf32>
    %84 = arith.mulf %82, %83 : vector<64x128xf32>
    %85 = arith.truncf %84 : vector<64x128xf32> to vector<64x128xbf16>
    %c5 = arith.constant 5 : index
    %c0_46 = arith.constant 0 : index
    %c0_47 = arith.constant 0 : index
    %86 = vector.load %arg3[%c5, %c0_46, %c0_47] : memref<15x128x256xbf16, #tpu.memory_space<vmem>>, vector<1x128x256xbf16>
    %87 = vector.shape_cast %86 : vector<1x128x256xbf16> to vector<128x256xbf16>
    %cst_48 = arith.constant dense<0.000000e+00> : vector<64x256xf32>
    %88 = tpu.matmul %85, %87, %cst_48 {dimension_numbers = #tpu.dot_dimension_numbers<[1], [0], [0], [1], [0, 0, 1, 1], [], []>} : vector<64x128xbf16>, vector<128x256xbf16>, vector<64x256xf32> -> vector<64x256xf32>
    %89 = vector.extract_strided_slice %88 {offsets = [0, 0], sizes = [64, 128], strides = [1, 1]} : vector<64x256xf32> to vector<64x128xf32>
    %90 = vector.extract_strided_slice %88 {offsets = [0, 128], sizes = [64, 128], strides = [1, 1]} : vector<64x256xf32> to vector<64x128xf32>
    %91 = arith.truncf %89 : vector<64x128xf32> to vector<64x128xbf16>
    %cst_49 = arith.constant dense<0.000000e+00> : vector<64x128xf32>
    %92 = tpu.matmul %0, %91, %cst_49 {dimension_numbers = #tpu.dot_dimension_numbers<[1], [0], [0], [1], [0, 0, 1, 1], [], []>} : vector<64x64xbf16>, vector<64x128xbf16>, vector<64x128xf32> -> vector<64x128xf32>
    %c5_50 = arith.constant 5 : index
    %c0_51 = arith.constant 0 : index
    %c0_52 = arith.constant 0 : index
    %93 = vector.load %arg4[%c5_50, %c0_51, %c0_52] : memref<15x1x128xf32, #tpu.memory_space<vmem>>, vector<1x1x128xf32>
    %94 = vector.shape_cast %93 : vector<1x1x128xf32> to vector<1x128xf32>
    %95 = vector.broadcast %94 : vector<1x128xf32> to vector<64x128xf32>
    %96 = arith.addf %90, %95 : vector<64x128xf32>
    %97 = arith.addf %92, %96 : vector<64x128xf32>
    %cst_53 = arith.constant 0.000000e+00 : f32
    %98 = vector.broadcast %cst_53 : f32 to vector<64x128xf32>
    %99 = arith.maximumf %97, %98 : vector<64x128xf32>
    %100 = arith.truncf %99 : vector<64x128xf32> to vector<64x128xbf16>
    %c6 = arith.constant 6 : index
    %c0_54 = arith.constant 0 : index
    %c0_55 = arith.constant 0 : index
    %101 = vector.load %arg3[%c6, %c0_54, %c0_55] : memref<15x128x256xbf16, #tpu.memory_space<vmem>>, vector<1x128x256xbf16>
    %102 = vector.shape_cast %101 : vector<1x128x256xbf16> to vector<128x256xbf16>
    %cst_56 = arith.constant dense<0.000000e+00> : vector<64x256xf32>
    %103 = tpu.matmul %100, %102, %cst_56 {dimension_numbers = #tpu.dot_dimension_numbers<[1], [0], [0], [1], [0, 0, 1, 1], [], []>} : vector<64x128xbf16>, vector<128x256xbf16>, vector<64x256xf32> -> vector<64x256xf32>
    %104 = vector.extract_strided_slice %103 {offsets = [0, 0], sizes = [64, 128], strides = [1, 1]} : vector<64x256xf32> to vector<64x128xf32>
    %105 = vector.extract_strided_slice %103 {offsets = [0, 128], sizes = [64, 128], strides = [1, 1]} : vector<64x256xf32> to vector<64x128xf32>
    %106 = arith.truncf %104 : vector<64x128xf32> to vector<64x128xbf16>
    %cst_57 = arith.constant dense<0.000000e+00> : vector<64x128xf32>
    %107 = tpu.matmul %0, %106, %cst_57 {dimension_numbers = #tpu.dot_dimension_numbers<[1], [0], [0], [1], [0, 0, 1, 1], [], []>} : vector<64x64xbf16>, vector<64x128xbf16>, vector<64x128xf32> -> vector<64x128xf32>
    %c6_58 = arith.constant 6 : index
    %c0_59 = arith.constant 0 : index
    %c0_60 = arith.constant 0 : index
    %108 = vector.load %arg4[%c6_58, %c0_59, %c0_60] : memref<15x1x128xf32, #tpu.memory_space<vmem>>, vector<1x1x128xf32>
    %109 = vector.shape_cast %108 : vector<1x1x128xf32> to vector<1x128xf32>
    %110 = vector.broadcast %109 : vector<1x128xf32> to vector<64x128xf32>
    %111 = arith.addf %105, %110 : vector<64x128xf32>
    %112 = arith.addf %107, %111 : vector<64x128xf32>
    %cst_61 = arith.constant 0.000000e+00 : f32
    %113 = vector.broadcast %cst_61 : f32 to vector<64x128xf32>
    %114 = arith.maximumf %112, %113 : vector<64x128xf32>
    %115 = arith.addf %84, %114 : vector<64x128xf32>
    %cst_62 = arith.constant 5.000000e-01 : f32
    %116 = vector.broadcast %cst_62 : f32 to vector<64x128xf32>
    %117 = arith.mulf %115, %116 : vector<64x128xf32>
    %118 = arith.truncf %117 : vector<64x128xf32> to vector<64x128xbf16>
    %c7 = arith.constant 7 : index
    %c0_63 = arith.constant 0 : index
    %c0_64 = arith.constant 0 : index
    %119 = vector.load %arg3[%c7, %c0_63, %c0_64] : memref<15x128x256xbf16, #tpu.memory_space<vmem>>, vector<1x128x256xbf16>
    %120 = vector.shape_cast %119 : vector<1x128x256xbf16> to vector<128x256xbf16>
    %cst_65 = arith.constant dense<0.000000e+00> : vector<64x256xf32>
    %121 = tpu.matmul %118, %120, %cst_65 {dimension_numbers = #tpu.dot_dimension_numbers<[1], [0], [0], [1], [0, 0, 1, 1], [], []>} : vector<64x128xbf16>, vector<128x256xbf16>, vector<64x256xf32> -> vector<64x256xf32>
    %122 = vector.extract_strided_slice %121 {offsets = [0, 0], sizes = [64, 128], strides = [1, 1]} : vector<64x256xf32> to vector<64x128xf32>
    %123 = vector.extract_strided_slice %121 {offsets = [0, 128], sizes = [64, 128], strides = [1, 1]} : vector<64x256xf32> to vector<64x128xf32>
    %124 = arith.truncf %122 : vector<64x128xf32> to vector<64x128xbf16>
    %cst_66 = arith.constant dense<0.000000e+00> : vector<64x128xf32>
    %125 = tpu.matmul %0, %124, %cst_66 {dimension_numbers = #tpu.dot_dimension_numbers<[1], [0], [0], [1], [0, 0, 1, 1], [], []>} : vector<64x64xbf16>, vector<64x128xbf16>, vector<64x128xf32> -> vector<64x128xf32>
    %c7_67 = arith.constant 7 : index
    %c0_68 = arith.constant 0 : index
    %c0_69 = arith.constant 0 : index
    %126 = vector.load %arg4[%c7_67, %c0_68, %c0_69] : memref<15x1x128xf32, #tpu.memory_space<vmem>>, vector<1x1x128xf32>
    %127 = vector.shape_cast %126 : vector<1x1x128xf32> to vector<1x128xf32>
    %128 = vector.broadcast %127 : vector<1x128xf32> to vector<64x128xf32>
    %129 = arith.addf %123, %128 : vector<64x128xf32>
    %130 = arith.addf %125, %129 : vector<64x128xf32>
    %cst_70 = arith.constant 0.000000e+00 : f32
    %131 = vector.broadcast %cst_70 : f32 to vector<64x128xf32>
    %132 = arith.maximumf %130, %131 : vector<64x128xf32>
    %133 = arith.truncf %132 : vector<64x128xf32> to vector<64x128xbf16>
    %c8 = arith.constant 8 : index
    %c0_71 = arith.constant 0 : index
    %c0_72 = arith.constant 0 : index
    %134 = vector.load %arg3[%c8, %c0_71, %c0_72] : memref<15x128x256xbf16, #tpu.memory_space<vmem>>, vector<1x128x256xbf16>
    %135 = vector.shape_cast %134 : vector<1x128x256xbf16> to vector<128x256xbf16>
    %cst_73 = arith.constant dense<0.000000e+00> : vector<64x256xf32>
    %136 = tpu.matmul %133, %135, %cst_73 {dimension_numbers = #tpu.dot_dimension_numbers<[1], [0], [0], [1], [0, 0, 1, 1], [], []>} : vector<64x128xbf16>, vector<128x256xbf16>, vector<64x256xf32> -> vector<64x256xf32>
    %137 = vector.extract_strided_slice %136 {offsets = [0, 0], sizes = [64, 128], strides = [1, 1]} : vector<64x256xf32> to vector<64x128xf32>
    %138 = vector.extract_strided_slice %136 {offsets = [0, 128], sizes = [64, 128], strides = [1, 1]} : vector<64x256xf32> to vector<64x128xf32>
    %139 = arith.truncf %137 : vector<64x128xf32> to vector<64x128xbf16>
    %cst_74 = arith.constant dense<0.000000e+00> : vector<64x128xf32>
    %140 = tpu.matmul %0, %139, %cst_74 {dimension_numbers = #tpu.dot_dimension_numbers<[1], [0], [0], [1], [0, 0, 1, 1], [], []>} : vector<64x64xbf16>, vector<64x128xbf16>, vector<64x128xf32> -> vector<64x128xf32>
    %c8_75 = arith.constant 8 : index
    %c0_76 = arith.constant 0 : index
    %c0_77 = arith.constant 0 : index
    %141 = vector.load %arg4[%c8_75, %c0_76, %c0_77] : memref<15x1x128xf32, #tpu.memory_space<vmem>>, vector<1x1x128xf32>
    %142 = vector.shape_cast %141 : vector<1x1x128xf32> to vector<1x128xf32>
    %143 = vector.broadcast %142 : vector<1x128xf32> to vector<64x128xf32>
    %144 = arith.addf %138, %143 : vector<64x128xf32>
    %145 = arith.addf %140, %144 : vector<64x128xf32>
    %cst_78 = arith.constant 0.000000e+00 : f32
    %146 = vector.broadcast %cst_78 : f32 to vector<64x128xf32>
    %147 = arith.maximumf %145, %146 : vector<64x128xf32>
    %148 = arith.addf %117, %147 : vector<64x128xf32>
    %cst_79 = arith.constant 5.000000e-01 : f32
    %149 = vector.broadcast %cst_79 : f32 to vector<64x128xf32>
    %150 = arith.mulf %148, %149 : vector<64x128xf32>
    %151 = arith.truncf %150 : vector<64x128xf32> to vector<64x128xbf16>
    %c9 = arith.constant 9 : index
    %c0_80 = arith.constant 0 : index
    %c0_81 = arith.constant 0 : index
    %152 = vector.load %arg3[%c9, %c0_80, %c0_81] : memref<15x128x256xbf16, #tpu.memory_space<vmem>>, vector<1x128x256xbf16>
    %153 = vector.shape_cast %152 : vector<1x128x256xbf16> to vector<128x256xbf16>
    %cst_82 = arith.constant dense<0.000000e+00> : vector<64x256xf32>
    %154 = tpu.matmul %151, %153, %cst_82 {dimension_numbers = #tpu.dot_dimension_numbers<[1], [0], [0], [1], [0, 0, 1, 1], [], []>} : vector<64x128xbf16>, vector<128x256xbf16>, vector<64x256xf32> -> vector<64x256xf32>
    %155 = vector.extract_strided_slice %154 {offsets = [0, 0], sizes = [64, 128], strides = [1, 1]} : vector<64x256xf32> to vector<64x128xf32>
    %156 = vector.extract_strided_slice %154 {offsets = [0, 128], sizes = [64, 128], strides = [1, 1]} : vector<64x256xf32> to vector<64x128xf32>
    %157 = arith.truncf %155 : vector<64x128xf32> to vector<64x128xbf16>
    %cst_83 = arith.constant dense<0.000000e+00> : vector<64x128xf32>
    %158 = tpu.matmul %0, %157, %cst_83 {dimension_numbers = #tpu.dot_dimension_numbers<[1], [0], [0], [1], [0, 0, 1, 1], [], []>} : vector<64x64xbf16>, vector<64x128xbf16>, vector<64x128xf32> -> vector<64x128xf32>
    %c9_84 = arith.constant 9 : index
    %c0_85 = arith.constant 0 : index
    %c0_86 = arith.constant 0 : index
    %159 = vector.load %arg4[%c9_84, %c0_85, %c0_86] : memref<15x1x128xf32, #tpu.memory_space<vmem>>, vector<1x1x128xf32>
    %160 = vector.shape_cast %159 : vector<1x1x128xf32> to vector<1x128xf32>
    %161 = vector.broadcast %160 : vector<1x128xf32> to vector<64x128xf32>
    %162 = arith.addf %156, %161 : vector<64x128xf32>
    %163 = arith.addf %158, %162 : vector<64x128xf32>
    %cst_87 = arith.constant 0.000000e+00 : f32
    %164 = vector.broadcast %cst_87 : f32 to vector<64x128xf32>
    %165 = arith.maximumf %163, %164 : vector<64x128xf32>
    %166 = arith.truncf %165 : vector<64x128xf32> to vector<64x128xbf16>
    %c10 = arith.constant 10 : index
    %c0_88 = arith.constant 0 : index
    %c0_89 = arith.constant 0 : index
    %167 = vector.load %arg3[%c10, %c0_88, %c0_89] : memref<15x128x256xbf16, #tpu.memory_space<vmem>>, vector<1x128x256xbf16>
    %168 = vector.shape_cast %167 : vector<1x128x256xbf16> to vector<128x256xbf16>
    %cst_90 = arith.constant dense<0.000000e+00> : vector<64x256xf32>
    %169 = tpu.matmul %166, %168, %cst_90 {dimension_numbers = #tpu.dot_dimension_numbers<[1], [0], [0], [1], [0, 0, 1, 1], [], []>} : vector<64x128xbf16>, vector<128x256xbf16>, vector<64x256xf32> -> vector<64x256xf32>
    %170 = vector.extract_strided_slice %169 {offsets = [0, 0], sizes = [64, 128], strides = [1, 1]} : vector<64x256xf32> to vector<64x128xf32>
    %171 = vector.extract_strided_slice %169 {offsets = [0, 128], sizes = [64, 128], strides = [1, 1]} : vector<64x256xf32> to vector<64x128xf32>
    %172 = arith.truncf %170 : vector<64x128xf32> to vector<64x128xbf16>
    %cst_91 = arith.constant dense<0.000000e+00> : vector<64x128xf32>
    %173 = tpu.matmul %0, %172, %cst_91 {dimension_numbers = #tpu.dot_dimension_numbers<[1], [0], [0], [1], [0, 0, 1, 1], [], []>} : vector<64x64xbf16>, vector<64x128xbf16>, vector<64x128xf32> -> vector<64x128xf32>
    %c10_92 = arith.constant 10 : index
    %c0_93 = arith.constant 0 : index
    %c0_94 = arith.constant 0 : index
    %174 = vector.load %arg4[%c10_92, %c0_93, %c0_94] : memref<15x1x128xf32, #tpu.memory_space<vmem>>, vector<1x1x128xf32>
    %175 = vector.shape_cast %174 : vector<1x1x128xf32> to vector<1x128xf32>
    %176 = vector.broadcast %175 : vector<1x128xf32> to vector<64x128xf32>
    %177 = arith.addf %171, %176 : vector<64x128xf32>
    %178 = arith.addf %173, %177 : vector<64x128xf32>
    %cst_95 = arith.constant 0.000000e+00 : f32
    %179 = vector.broadcast %cst_95 : f32 to vector<64x128xf32>
    %180 = arith.maximumf %178, %179 : vector<64x128xf32>
    %181 = arith.addf %150, %180 : vector<64x128xf32>
    %cst_96 = arith.constant 5.000000e-01 : f32
    %182 = vector.broadcast %cst_96 : f32 to vector<64x128xf32>
    %183 = arith.mulf %181, %182 : vector<64x128xf32>
    %184 = arith.truncf %183 : vector<64x128xf32> to vector<64x128xbf16>
    %c11 = arith.constant 11 : index
    %c0_97 = arith.constant 0 : index
    %c0_98 = arith.constant 0 : index
    %185 = vector.load %arg3[%c11, %c0_97, %c0_98] : memref<15x128x256xbf16, #tpu.memory_space<vmem>>, vector<1x128x256xbf16>
    %186 = vector.shape_cast %185 : vector<1x128x256xbf16> to vector<128x256xbf16>
    %cst_99 = arith.constant dense<0.000000e+00> : vector<64x256xf32>
    %187 = tpu.matmul %184, %186, %cst_99 {dimension_numbers = #tpu.dot_dimension_numbers<[1], [0], [0], [1], [0, 0, 1, 1], [], []>} : vector<64x128xbf16>, vector<128x256xbf16>, vector<64x256xf32> -> vector<64x256xf32>
    %188 = vector.extract_strided_slice %187 {offsets = [0, 0], sizes = [64, 128], strides = [1, 1]} : vector<64x256xf32> to vector<64x128xf32>
    %189 = vector.extract_strided_slice %187 {offsets = [0, 128], sizes = [64, 128], strides = [1, 1]} : vector<64x256xf32> to vector<64x128xf32>
    %190 = arith.truncf %188 : vector<64x128xf32> to vector<64x128xbf16>
    %cst_100 = arith.constant dense<0.000000e+00> : vector<64x128xf32>
    %191 = tpu.matmul %0, %190, %cst_100 {dimension_numbers = #tpu.dot_dimension_numbers<[1], [0], [0], [1], [0, 0, 1, 1], [], []>} : vector<64x64xbf16>, vector<64x128xbf16>, vector<64x128xf32> -> vector<64x128xf32>
    %c11_101 = arith.constant 11 : index
    %c0_102 = arith.constant 0 : index
    %c0_103 = arith.constant 0 : index
    %192 = vector.load %arg4[%c11_101, %c0_102, %c0_103] : memref<15x1x128xf32, #tpu.memory_space<vmem>>, vector<1x1x128xf32>
    %193 = vector.shape_cast %192 : vector<1x1x128xf32> to vector<1x128xf32>
    %194 = vector.broadcast %193 : vector<1x128xf32> to vector<64x128xf32>
    %195 = arith.addf %189, %194 : vector<64x128xf32>
    %196 = arith.addf %191, %195 : vector<64x128xf32>
    %cst_104 = arith.constant 0.000000e+00 : f32
    %197 = vector.broadcast %cst_104 : f32 to vector<64x128xf32>
    %198 = arith.maximumf %196, %197 : vector<64x128xf32>
    %199 = arith.truncf %198 : vector<64x128xf32> to vector<64x128xbf16>
    %c12 = arith.constant 12 : index
    %c0_105 = arith.constant 0 : index
    %c0_106 = arith.constant 0 : index
    %200 = vector.load %arg3[%c12, %c0_105, %c0_106] : memref<15x128x256xbf16, #tpu.memory_space<vmem>>, vector<1x128x256xbf16>
    %201 = vector.shape_cast %200 : vector<1x128x256xbf16> to vector<128x256xbf16>
    %cst_107 = arith.constant dense<0.000000e+00> : vector<64x256xf32>
    %202 = tpu.matmul %199, %201, %cst_107 {dimension_numbers = #tpu.dot_dimension_numbers<[1], [0], [0], [1], [0, 0, 1, 1], [], []>} : vector<64x128xbf16>, vector<128x256xbf16>, vector<64x256xf32> -> vector<64x256xf32>
    %203 = vector.extract_strided_slice %202 {offsets = [0, 0], sizes = [64, 128], strides = [1, 1]} : vector<64x256xf32> to vector<64x128xf32>
    %204 = vector.extract_strided_slice %202 {offsets = [0, 128], sizes = [64, 128], strides = [1, 1]} : vector<64x256xf32> to vector<64x128xf32>
    %205 = arith.truncf %203 : vector<64x128xf32> to vector<64x128xbf16>
    %cst_108 = arith.constant dense<0.000000e+00> : vector<64x128xf32>
    %206 = tpu.matmul %0, %205, %cst_108 {dimension_numbers = #tpu.dot_dimension_numbers<[1], [0], [0], [1], [0, 0, 1, 1], [], []>} : vector<64x64xbf16>, vector<64x128xbf16>, vector<64x128xf32> -> vector<64x128xf32>
    %c12_109 = arith.constant 12 : index
    %c0_110 = arith.constant 0 : index
    %c0_111 = arith.constant 0 : index
    %207 = vector.load %arg4[%c12_109, %c0_110, %c0_111] : memref<15x1x128xf32, #tpu.memory_space<vmem>>, vector<1x1x128xf32>
    %208 = vector.shape_cast %207 : vector<1x1x128xf32> to vector<1x128xf32>
    %209 = vector.broadcast %208 : vector<1x128xf32> to vector<64x128xf32>
    %210 = arith.addf %204, %209 : vector<64x128xf32>
    %211 = arith.addf %206, %210 : vector<64x128xf32>
    %cst_112 = arith.constant 0.000000e+00 : f32
    %212 = vector.broadcast %cst_112 : f32 to vector<64x128xf32>
    %213 = arith.maximumf %211, %212 : vector<64x128xf32>
    %214 = arith.addf %183, %213 : vector<64x128xf32>
    %cst_113 = arith.constant 5.000000e-01 : f32
    %215 = vector.broadcast %cst_113 : f32 to vector<64x128xf32>
    %216 = arith.mulf %214, %215 : vector<64x128xf32>
    %217 = arith.truncf %216 : vector<64x128xf32> to vector<64x128xbf16>
    %c13 = arith.constant 13 : index
    %c0_114 = arith.constant 0 : index
    %c0_115 = arith.constant 0 : index
    %218 = vector.load %arg3[%c13, %c0_114, %c0_115] : memref<15x128x256xbf16, #tpu.memory_space<vmem>>, vector<1x128x256xbf16>
    %219 = vector.shape_cast %218 : vector<1x128x256xbf16> to vector<128x256xbf16>
    %cst_116 = arith.constant dense<0.000000e+00> : vector<64x256xf32>
    %220 = tpu.matmul %217, %219, %cst_116 {dimension_numbers = #tpu.dot_dimension_numbers<[1], [0], [0], [1], [0, 0, 1, 1], [], []>} : vector<64x128xbf16>, vector<128x256xbf16>, vector<64x256xf32> -> vector<64x256xf32>
    %221 = vector.extract_strided_slice %220 {offsets = [0, 0], sizes = [64, 128], strides = [1, 1]} : vector<64x256xf32> to vector<64x128xf32>
    %222 = vector.extract_strided_slice %220 {offsets = [0, 128], sizes = [64, 128], strides = [1, 1]} : vector<64x256xf32> to vector<64x128xf32>
    %223 = arith.truncf %221 : vector<64x128xf32> to vector<64x128xbf16>
    %cst_117 = arith.constant dense<0.000000e+00> : vector<64x128xf32>
    %224 = tpu.matmul %0, %223, %cst_117 {dimension_numbers = #tpu.dot_dimension_numbers<[1], [0], [0], [1], [0, 0, 1, 1], [], []>} : vector<64x64xbf16>, vector<64x128xbf16>, vector<64x128xf32> -> vector<64x128xf32>
    %c13_118 = arith.constant 13 : index
    %c0_119 = arith.constant 0 : index
    %c0_120 = arith.constant 0 : index
    %225 = vector.load %arg4[%c13_118, %c0_119, %c0_120] : memref<15x1x128xf32, #tpu.memory_space<vmem>>, vector<1x1x128xf32>
    %226 = vector.shape_cast %225 : vector<1x1x128xf32> to vector<1x128xf32>
    %227 = vector.broadcast %226 : vector<1x128xf32> to vector<64x128xf32>
    %228 = arith.addf %222, %227 : vector<64x128xf32>
    %229 = arith.addf %224, %228 : vector<64x128xf32>
    %cst_121 = arith.constant 0.000000e+00 : f32
    %230 = vector.broadcast %cst_121 : f32 to vector<64x128xf32>
    %231 = arith.maximumf %229, %230 : vector<64x128xf32>
    %232 = arith.truncf %231 : vector<64x128xf32> to vector<64x128xbf16>
    %c14 = arith.constant 14 : index
    %c0_122 = arith.constant 0 : index
    %c0_123 = arith.constant 0 : index
    %233 = vector.load %arg3[%c14, %c0_122, %c0_123] : memref<15x128x256xbf16, #tpu.memory_space<vmem>>, vector<1x128x256xbf16>
    %234 = vector.shape_cast %233 : vector<1x128x256xbf16> to vector<128x256xbf16>
    %cst_124 = arith.constant dense<0.000000e+00> : vector<64x256xf32>
    %235 = tpu.matmul %232, %234, %cst_124 {dimension_numbers = #tpu.dot_dimension_numbers<[1], [0], [0], [1], [0, 0, 1, 1], [], []>} : vector<64x128xbf16>, vector<128x256xbf16>, vector<64x256xf32> -> vector<64x256xf32>
    %236 = vector.extract_strided_slice %235 {offsets = [0, 0], sizes = [64, 128], strides = [1, 1]} : vector<64x256xf32> to vector<64x128xf32>
    %237 = vector.extract_strided_slice %235 {offsets = [0, 128], sizes = [64, 128], strides = [1, 1]} : vector<64x256xf32> to vector<64x128xf32>
    %238 = arith.truncf %236 : vector<64x128xf32> to vector<64x128xbf16>
    %cst_125 = arith.constant dense<0.000000e+00> : vector<64x128xf32>
    %239 = tpu.matmul %0, %238, %cst_125 {dimension_numbers = #tpu.dot_dimension_numbers<[1], [0], [0], [1], [0, 0, 1, 1], [], []>} : vector<64x64xbf16>, vector<64x128xbf16>, vector<64x128xf32> -> vector<64x128xf32>
    %c14_126 = arith.constant 14 : index
    %c0_127 = arith.constant 0 : index
    %c0_128 = arith.constant 0 : index
    %240 = vector.load %arg4[%c14_126, %c0_127, %c0_128] : memref<15x1x128xf32, #tpu.memory_space<vmem>>, vector<1x1x128xf32>
    %241 = vector.shape_cast %240 : vector<1x1x128xf32> to vector<1x128xf32>
    %242 = vector.broadcast %241 : vector<1x128xf32> to vector<64x128xf32>
    %243 = arith.addf %237, %242 : vector<64x128xf32>
    %244 = arith.addf %239, %243 : vector<64x128xf32>
    %c0_129 = arith.constant 0 : index
    %c0_130 = arith.constant 0 : index
    %c0_131 = arith.constant 0 : index
    %245 = vector.load %arg5[%c0_129, %c0_130, %c0_131] : memref<1x64x128xf32, #tpu.memory_space<vmem>>, vector<1x64x128xf32>
    %246 = vector.shape_cast %245 : vector<1x64x128xf32> to vector<64x128xf32>
    %247 = vector.shape_cast %244 : vector<64x128xf32> to vector<1x64x128xf32>
    tpu.vector_store %arg5[%c0_129, %c0_130, %c0_131], %247 {strides = array<i32>} : memref<1x64x128xf32, #tpu.memory_space<vmem>>, vector<1x64x128xf32>,
    return
  }
  func.func @transform_0(%arg0: i32) -> (i32, i32, i32) {
    %c0_i32 = arith.constant 0 : i32
    %c0_i32_0 = arith.constant 0 : i32
    %c0_i32_1 = arith.constant 0 : i32
    return %arg0, %c0_i32, %c0_i32_0 : i32, i32, i32
  }
  func.func @transform_1(%arg0: i32) -> (i32, i32) {
    %c0_i32 = arith.constant 0 : i32
    %c0_i32_0 = arith.constant 0 : i32
    %c0_i32_1 = arith.constant 0 : i32
    return %c0_i32, %c0_i32_0 : i32, i32
  }
  func.func @transform_2(%arg0: i32) -> (i32, i32, i32) {
    %c0_i32 = arith.constant 0 : i32
    %c0_i32_0 = arith.constant 0 : i32
    %c0_i32_1 = arith.constant 0 : i32
    %c0_i32_2 = arith.constant 0 : i32
    return %c0_i32, %c0_i32_0, %c0_i32_1 : i32, i32, i32
  }
  func.func @transform_3(%arg0: i32) -> (i32, i32, i32) {
    %c0_i32 = arith.constant 0 : i32
    %c0_i32_0 = arith.constant 0 : i32
    %c0_i32_1 = arith.constant 0 : i32
    %c0_i32_2 = arith.constant 0 : i32
    return %c0_i32, %c0_i32_0, %c0_i32_1 : i32, i32, i32
  }
  func.func @transform_4(%arg0: i32) -> (i32, i32, i32) {
    %c0_i32 = arith.constant 0 : i32
    %c0_i32_0 = arith.constant 0 : i32
    %c0_i32_1 = arith.constant 0 : i32
    return %arg0, %c0_i32, %c0_i32_0 : i32, i32, i32
  }
}

</mosaic_0001>

<bundles_post_ra>
// kernel: refinement_forward.1
= control target key start
LH: loop header
LB: loop body
LE: loop exit
PB: predicated region body
PF: predicated region fallthrough
CT: control target
= control target key end

     0   :  { %s5775_s15 = smov 0   ;;  %s7107_s0 = inlined_call_operand.vmem [shape: bf16[2,64,128], index: 0, kind: input, shape index: {}]   ;;  %s7108_s1 = inlined_call_operand.vmem [shape: bf16[64,64], index: 1, kind: input, shape index: {}]   ;;  %s7109_s2 = inlined_call_operand.vmem [shape: bf16[15,128,256], index: 2, kind: input, shape index: {}]   ;;  %s7110_s3 = inlined_call_operand.vmem [shape: f32[15,1,128], index: 3, kind: input, shape index: {}]   ;;  %s7111_s4 = inlined_call_operand.vmem [shape: f32[2,64,128], index: 4, kind: output, shape index: {}]  }
   0x1 LB: > { %s4422_s16 = sadd.s32 4294967295, %s5747_s15   ;;  %p4426_p0 = scmp.ge.s32.totalorder %s5747_s15, 1  ;;  %s5747_s15 = sphi %s5775_s15, %s14_s15  }
   0x2   : > { %p162_p1 = scmp.lt.s32.totalorder %s5747_s15, 3 }
   0x4   : > { %p163_p2 = pnand %p4426_p0, %p162_p1 }
   0x5   : > { %v5365_v0 = vld [vmem:[%s7109_s2 + $0x4] ss:$8 sps:$4 sm:$0xff] (!%p163_p2)   ;;  %p188_p3 = scmp.lt.s32.totalorder (!%p163_p2), %s4422_s16, 1  ;;  %v5367_v1 = vld [vmem:[%s7109_s2] ss:$8 sps:$4 sm:$0xff] (!%p163_p2)   ;;  %v5749_v2 = vmov (!%p163_p2), 0  }
   0x6   : > { %166 = sbr.rel (%p163_p2) target bundleno = 7042 (0x1b82), region = 36  ;;  %367 = vmatprep.mubr.bf16.mxu0 (!%p163_p2), %v5749_v2  ;;  %335 = vmatprep.subr.bf16.mxu0 (!%p163_p2), %v5365_v0  ;;  %v5368_v3 = vld [vmem:[%s7109_s2 + $0x14] ss:$8 sps:$4 sm:$0xff] (!%p163_p2)   ;;  %v5370_v4 = vld [vmem:[%s7109_s2 + $0x10] ss:$8 sps:$4 sm:$0xff] (!%p163_p2)   ;;  %v5844_v21 = vld [vmem:[%s7108_s1] sm:$0xff] (!%p163_p2)  }
   0x7   : > { %336 = vmatpush1.bf16.msra.mxu0 (!%p163_p2), %v5367_v1  ;;  %v5371_v5 = vld [vmem:[%s7109_s2 + $0x24] ss:$8 sps:$4 sm:$0xff] (!%p163_p2)   ;;  %v5373_v6 = vld [vmem:[%s7109_s2 + $0x20] ss:$8 sps:$4 sm:$0xff] (!%p163_p2)   ;;  %v5374_v7 = vld [vmem:[%s7109_s2 + $0x34] ss:$8 sps:$4 sm:$0xff] (!%p163_p2)  }
   0x8   : > { %337 = vmatprep.subr.bf16.mxu0 (!%p163_p2), %v5368_v3  ;;  %v5376_v8 = vld [vmem:[%s7109_s2 + $0x30] ss:$8 sps:$4 sm:$0xff] (!%p163_p2)   ;;  %v5377_v9 = vld [vmem:[%s7109_s2 + $0x44] ss:$8 sps:$4 sm:$0xff] (!%p163_p2)   ;;  %v5379_v10 = vld [vmem:[%s7109_s2 + $0x40] ss:$8 sps:$4 sm:$0xff] (!%p163_p2)  }
   0x9   : > { %v5380_v11 = vld [vmem:[%s7109_s2 + $0x54] ss:$8 sps:$4 sm:$0xff] (!%p163_p2)   ;;  %v5382_v12 = vld [vmem:[%s7109_s2 + $0x50] ss:$8 sps:$4 sm:$0xff] (!%p163_p2)   ;;  %v5383_v13 = vld [vmem:[%s7109_s2 + $0x64] ss:$8 sps:$4 sm:$0xff] (!%p163_p2)  }
   0xa   : > { %v5385_v14 = vld [vmem:[%s7109_s2 + $0x60] ss:$8 sps:$4 sm:$0xff] (!%p163_p2)   ;;  %v5386_v15 = vld [vmem:[%s7109_s2 + $0x74] ss:$8 sps:$4 sm:$0xff] (!%p163_p2)   ;;  %v5388_v16 = vld [vmem:[%s7109_s2 + $0x70] ss:$8 sps:$4 sm:$0xff] (!%p163_p2)  }
   0xb   : > { %338 = vmatpush1.bf16.msra.mxu0 (!%p163_p2), %v5370_v4  ;;  %vm447_vm0 = vcmask (!%p163_p2), 523264   ;;  %v5399_v42 = vld [vmem:[%s7109_s2 + $0x84] ss:$8 sps:$4 sm:$0xff] (!%p163_p2)   ;;  %v5869_v44 = vld [vmem:[%s7108_s1 + $0x10] sm:$0xff] (!%p163_p2)   ;;  %v5397_v45 = vld [vmem:[%s7109_s2 + $0x80] ss:$8 sps:$4 sm:$0xff] (!%p163_p2)  }
   0xc   : > { %339 = vmatprep.subr.bf16.mxu0 (!%p163_p2), %v5371_v5  ;;  %5124 = vmatprep.mubr.msk.bf16.mxu1 (!%p163_p2), %vm447_vm0, %v5844_v21  ;;  %v5864_v43 = vld [vmem:[%s7108_s1 + $0x8] sm:$0xff] (!%p163_p2)   ;;  %v5402_v46 = vld [vmem:[%s7109_s2 + $0x94] ss:$8 sps:$4 sm:$0xff] (!%p163_p2)   ;;  %v5400_v47 = vld [vmem:[%s7109_s2 + $0x90] ss:$8 sps:$4 sm:$0xff] (!%p163_p2)  }
   0xd   : > { %s7113_s16 = smov (!%p188_p3, %s4422_s16), 1  ;;  %v5405_v48 = vld [vmem:[%s7109_s2 + $0xa4] ss:$8 sps:$4 sm:$0xff]   ;;  %v5890_v49 = vld [vmem:[%s7108_s1 + $0x18] sm:$0xff]   ;;  %v5403_v50 = vld [vmem:[%s7109_s2 + $0xa0] ss:$8 sps:$4 sm:$0xff]  }
   0xe   : > { %s4994_s27 = sshll.u32 %s7113_s16, 5  ;;  %v5408_v51 = vld [vmem:[%s7109_s2 + $0xb4] ss:$8 sps:$4 sm:$0xff]   ;;  %v5406_v52 = vld [vmem:[%s7109_s2 + $0xb0] ss:$8 sps:$4 sm:$0xff]  }
   0xf   : > { %s192_s8 = scalar_lea.vmem %s7107_s0, %s4994_s27  ;;  %340 = vmatpush1.bf16.msra.mxu0 %v5373_v6  ;;  %v5411_v53 = vld [vmem:[%s7109_s2 + $0xc4] ss:$8 sps:$4 sm:$0xff]   ;;  %v5409_v54 = vld [vmem:[%s7109_s2 + $0xc0] ss:$8 sps:$4 sm:$0xff]   ;;  %v5414_v55 = vld [vmem:[%s7109_s2 + $0xd4] ss:$8 sps:$4 sm:$0xff]  }
  0x10   : > { %341 = vmatprep.subr.bf16.mxu0 %v5374_v7  ;;  %v5389_v17 = vld [vmem:[%s192_s8] sm:$0xff]   ;;  %v5390_v18 = vld [vmem:[%s192_s8 + $0x8] sm:$0xff]   ;;  %v5391_v19 = vld [vmem:[%s192_s8 + $0x10] sm:$0xff]   ;;  %s4995_s27 = sshll.u32 %s7113_s16, 6 }
  0x11   : > { %v5392_v20 = vld [vmem:[%s192_s8 + $0x18] sm:$0xff]   ;;  %v5417_v57 = vld [vmem:[%s7109_s2 + $0xe4] ss:$8 sps:$4 sm:$0xff]   ;;  %v5415_v58 = vld [vmem:[%s7109_s2 + $0xe0] ss:$8 sps:$4 sm:$0xff]   ;;  %s197_s30 = scalar_lea.vmem %s7111_s4, %s4995_s27 }
  0x12   : > { %v5412_v56 = vld [vmem:[%s7109_s2 + $0xd0] ss:$8 sps:$4 sm:$0xff]   ;;  %v5420_v59 = vld [vmem:[%s7109_s2 + $0xf4] ss:$8 sps:$4 sm:$0xff]   ;;  %v4451_v61 = vld [vmem:[%s7110_s3] ss:$0 sm:$0xff] }
  0x13   : > { %342 = vmatpush1.bf16.msra.mxu0 %v5376_v8  ;;  %v5418_v60 = vld [vmem:[%s7109_s2 + $0xf0] ss:$8 sps:$4 sm:$0xff]  }
  0x14   : > { %343 = vmatprep.subr.bf16.mxu0 %v5377_v9 }
  0x17   : > { %344 = vmatpush1.bf16.msra.mxu0 %v5379_v10 }
  0x18   : > { %345 = vmatprep.subr.bf16.mxu0 %v5380_v11 }
  0x1b   : > { %346 = vmatpush1.bf16.msra.mxu0 %v5382_v12 }
  0x1c   : > { %347 = vmatprep.subr.bf16.mxu0 %v5383_v13 }
  0x1f   : > { %348 = vmatpush1.bf16.msra.mxu0 %v5385_v14 }
  0x20   : > { %349 = vmatprep.subr.bf16.mxu0 %v5386_v15 }
  0x23   : > { %350 = vmatpush1.bf16.msra.mxu0 %v5388_v16 }
  0x26   : > { %368 = vmatmul.mubr.bf16.vlgmr.msra.gmra.mrb[0].mxu0 %v5389_v17 }
  0x27   : > { %377 = vmatprep.mubr.bf16.mxu0 %v5749_v2 }
  0x2e   : > { %378 = vmatmul.mubr.bf16.gmra.mrb[4].mxu0 %v5390_v18 }
  0x2f   : > { %387 = vmatprep.mubr.bf16.mxu0 %v5749_v2 }
  0x36   : > { %388 = vmatmul.mubr.bf16.gmra.mrb[8].mxu0 %v5391_v19 }
  0x37   : > { %397 = vmatprep.mubr.bf16.mxu0 %v5749_v2 }
  0x3e   : > { %398 = vmatmul.mubr.bf16.gmra.mrb[12].mxu0 %v5392_v20 }
  0x3f   : > { %5140 = vmatprep.mubr.msk.bf16.mxu0 %vm447_vm0, %v5844_v21 }
  0xf9   : > { %v369_v22 = vpop.f32.mrb[0].mxu0 }
  0xfa   : > { %v5850_v23 = vpop.f32.mrb[1].mxu0 }
  0xfb   : > { %v373_v24 = vpop.f32.mrb[2].mxu0  ;;  %v419_v63 = vadd.f32 %v4451_v61, %v5850_v23 }
  0xfc   : > { %v408_v25 = vpack.c.bf16 %v373_v24, %v369_v22  ;;  %v5852_v26 = vpop.f32.mrb[3].mxu0 }
  0xfd   : > { %v420_v5 = vadd.f32 %v4451_v61, %v5852_v26 }
  0xfe   : > { %5116 = vmatprep.subr.bf16.mxu1 %v408_v25 }
  0xff   : > { %5117 = vmatpush3.bf16.msra.mxu1 %v408_v25 }
 0x101   : > { %v379_v27 = vpop.f32.mrb[4].mxu0 }
 0x102   : > { %v381_v28 = vpop.f32.mrb[5].mxu0 }
 0x103   : > { %v383_v29 = vpop.f32.mrb[6].mxu0  ;;  %v421_v62 = vadd.f32 %v4451_v61, %v381_v28 }
 0x104   : > { %v409_v30 = vpack.c.bf16 %v383_v29, %v379_v27  ;;  %v385_v31 = vpop.f32.mrb[7].mxu0 }
 0x105   : > { %v422_v1 = vadd.f32 %v4451_v61, %v385_v31 }
 0x106   : > { %5118 = vmatprep.subr.bf16.mxu1 %v409_v30 }
 0x107   : > { %5119 = vmatpush3.bf16.msra.mxu1 %v409_v30 }
 0x109   : > { %v389_v32 = vpop.f32.mrb[8].mxu0 }
 0x10a   : > { %v5854_v33 = vpop.f32.mrb[9].mxu0 }
 0x10b   : > { %v393_v34 = vpop.f32.mrb[10].mxu0  ;;  %v423_v14 = vadd.f32 %v4451_v61, %v5854_v33 }
 0x10c   : > { %v410_v35 = vpack.c.bf16 %v393_v34, %v389_v32  ;;  %v5856_v36 = vpop.f32.mrb[11].mxu0 }
 0x10d   : > { %v424_v20 = vadd.f32 %v4451_v61, %v5856_v36  ;;  %v5421_v36 = vld [vmem:[%s7109_s2 + $0x100] ss:$8 sps:$4 sm:$0xff]  }
 0x10e   : > { %5120 = vmatprep.subr.bf16.mxu1 %v410_v35 }
 0x10f   : > { %5121 = vmatpush3.bf16.msra.mxu1 %v410_v35 }
 0x111   : > { %v399_v37 = vpop.f32.mrb[12].mxu0 }
 0x112   : > { %v401_v38 = vpop.f32.mrb[13].mxu0 }
 0x113   : > { %v403_v39 = vpop.f32.mrb[14].mxu0  ;;  %v425_v13 = vadd.f32 %v4451_v61, %v401_v38  ;;  %v5426_v38 = vld [vmem:[%s7109_s2 + $0x114] ss:$8 sps:$4 sm:$0xff]  }
 0x114   : > { %v411_v40 = vpack.c.bf16 %v403_v39, %v399_v37  ;;  %v405_v41 = vpop.f32.mrb[15].mxu0  ;;  %v5423_v37 = vld [vmem:[%s7109_s2 + $0x104] ss:$8 sps:$4 sm:$0xff]   ;;  %v5424_v39 = vld [vmem:[%s7109_s2 + $0x110] ss:$8 sps:$4 sm:$0xff]  }
 0x115   : > { %v426_v17 = vadd.f32 %v4451_v61, %v405_v41  ;;  %v5427_v41 = vld [vmem:[%s7109_s2 + $0x120] ss:$8 sps:$4 sm:$0xff]  }
 0x116   : > { %5122 = vmatprep.subr.bf16.mxu1 %v411_v40 }
 0x117   : > { %5123 = vmatpush3.bf16.msra.mxu1 %v411_v40  ;;  %v5429_v40 = vld [vmem:[%s7109_s2 + $0x124] ss:$8 sps:$4 sm:$0xff]  }
 0x118   : > { %634 = vmatprep.subr.bf16.mxu1 %v5399_v42  ;;  %v5432_v42 = vld [vmem:[%s7109_s2 + $0x134] ss:$8 sps:$4 sm:$0xff]  }
 0x11a   : > { %5125 = vmatmul.mubr.msk.bf16.vlgmr.msra.gmra.mrb[0].mxu1 %vm447_vm0, %v5864_v43 }
 0x11b   : > { %5128 = vmatprep.mubr.msk.bf16.mxu1 %vm447_vm0, %v5869_v44  ;;  %635 = vmatpush1.bf16.msra.mxu1 %v5397_v45  ;;  %v5430_v45 = vld [vmem:[%s7109_s2 + $0x130] ss:$8 sps:$4 sm:$0xff]  }
 0x11c   : > { %636 = vmatprep.subr.bf16.mxu1 %v5402_v46  ;;  %v5435_v46 = vld [vmem:[%s7109_s2 + $0x144] ss:$8 sps:$4 sm:$0xff]  }
 0x11f   : > { %637 = vmatpush1.bf16.msra.mxu1 %v5400_v47  ;;  %v5433_v47 = vld [vmem:[%s7109_s2 + $0x140] ss:$8 sps:$4 sm:$0xff]  }
 0x120   : > { %638 = vmatprep.subr.bf16.mxu1 %v5405_v48  ;;  %v5438_v48 = vld [vmem:[%s7109_s2 + $0x154] ss:$8 sps:$4 sm:$0xff]  }
 0x122   : > { %5129 = vmatmul.mubr.msk.bf16.gmra.mrb[4].mxu1 %vm447_vm0, %v5890_v49 }
 0x123   : > { %639 = vmatpush1.bf16.msra.mxu1 %v5403_v50  ;;  %666 = vmatprep.mubr.bf16.mxu1 %v5749_v2  ;;  %v5436_v50 = vld [vmem:[%s7109_s2 + $0x150] ss:$8 sps:$4 sm:$0xff]  }
 0x124   : > { %640 = vmatprep.subr.bf16.mxu1 %v5408_v51 }
 0x127   : > { %641 = vmatpush1.bf16.msra.mxu1 %v5406_v52 }
 0x128   : > { %642 = vmatprep.subr.bf16.mxu1 %v5411_v53 }
 0x12b   : > { %643 = vmatpush1.bf16.msra.mxu1 %v5409_v54 }
 0x12c   : > { %644 = vmatprep.subr.bf16.mxu1 %v5414_v55 }
 0x12f   : > { %645 = vmatpush1.bf16.msra.mxu1 %v5412_v56 }
 0x130   : > { %646 = vmatprep.subr.bf16.mxu1 %v5417_v57 }
 0x133   : > { %647 = vmatpush1.bf16.msra.mxu1 %v5415_v58 }
 0x134   : > { %648 = vmatprep.subr.bf16.mxu1 %v5420_v59 }
 0x137   : > { %649 = vmatpush1.bf16.msra.mxu1 %v5418_v60 }
 0x138   : > { %901 = vmatprep.subr.bf16.mxu1 %v5423_v37 }
 0x1ed   : > { %v5126_v0 = vpop.f32.mrb[0].mxu1 }
 0x1ee   : > { %v5932_v3 = vadd.f32 %v5126_v0, %v421_v62  ;;  %v494_v4 = vpop.f32.mrb[1].mxu1 }
 0x1ef   : > { %v5935_v6 = vadd.f32 %v494_v4, %v419_v63  ;;  %v5127_v7 = vpop.f32.mrb[2].mxu1 }
 0x1f0   : > { %v5937_v8 = vadd.f32 %v5127_v7, %v422_v1  ;;  %v497_v9 = vpop.f32.mrb[3].mxu1  ;;  %v527_v28 = vmax.f32 %v5932_v3, 0.0 }
 0x1f1   : > { %v5939_v10 = vadd.f32 %v497_v9, %v420_v5  ;;  %v525_v11 = vmax.f32 %v5935_v6, 0.0 }
 0x1f2   : > { %v528_v26 = vmax.f32 %v5937_v8, 0.0 }
 0x1f3   : > { %v526_v12 = vmax.f32 %v5939_v10, 0.0 }
 0x1f4   : > { %v534_v29 = vpack.c.bf16 %v528_v26, %v527_v28 }
 0x1f5   : > { %v533_v15 = vpack.c.bf16 %v526_v12, %v525_v11  ;;  %v5130_v16 = vpop.f32.mrb[4].mxu1 }
 0x1f6   : > { %v5948_v18 = vadd.f32 %v5130_v16, %v425_v13  ;;  %v510_v19 = vpop.f32.mrb[5].mxu1  ;;  %v5444_v16 = vld [vmem:[%s7109_s2 + $0x174] ss:$8 sps:$4 sm:$0xff]  }
 0x1f7   : > { %v5951_v22 = vadd.f32 %v510_v19, %v423_v14  ;;  %v5131_v23 = vpop.f32.mrb[6].mxu1  ;;  %667 = vmatmul.mubr.bf16.vlgmr.msra.gmra.mrb[8].mxu1 %v533_v15  ;;  %v5441_v14 = vld [vmem:[%s7109_s2 + $0x164] ss:$8 sps:$4 sm:$0xff]   ;;  %v5439_v15 = vld [vmem:[%s7109_s2 + $0x160] ss:$8 sps:$4 sm:$0xff]  }
 0x1f8   : > { %v5953_v24 = vadd.f32 %v5131_v23, %v426_v17  ;;  %v513_v25 = vpop.f32.mrb[7].mxu1  ;;  %676 = vmatprep.mubr.bf16.mxu1 %v5749_v2  ;;  %v531_v34 = vmax.f32 %v5948_v18, 0.0  ;;  %902 = vmatpush1.bf16.msra.mxu1 %v5421_v36  ;;  %v5442_v17 = vld [vmem:[%s7109_s2 + $0x170] ss:$8 sps:$4 sm:$0xff]   ;;  %v4493_v19 = vld [vmem:[%s7110_s3 + $0x1] ss:$0 sm:$0xff] }
 0x1f9   : > { %v5957_v27 = vadd.f32 %v513_v25, %v424_v20  ;;  %v529_v31 = vmax.f32 %v5951_v22, 0.0  ;;  %903 = vmatprep.subr.bf16.mxu1 %v5426_v38  ;;  %v5471_v18 = vld [vmem:[%s7109_s2 + $0x204] ss:$8 sps:$4 sm:$0xff]  }
 0x1fa   : > { %v532_v33 = vmax.f32 %v5953_v24, 0.0  ;;  %v5469_v24 = vld [vmem:[%s7109_s2 + $0x200] ss:$8 sps:$4 sm:$0xff]  }
 0x1fb   : > { %v530_v30 = vmax.f32 %v5957_v27, 0.0 }
 0x1fc   : > { %v536_v35 = vpack.c.bf16 %v532_v33, %v531_v34  ;;  %904 = vmatpush1.bf16.msra.mxu1 %v5424_v39 }
 0x1fd   : > { %v535_v32 = vpack.c.bf16 %v530_v30, %v529_v31  ;;  %905 = vmatprep.subr.bf16.mxu1 %v5429_v40 }
 0x1ff   : > { %677 = vmatmul.mubr.bf16.gmra.mrb[12].mxu1 %v534_v29 }
 0x200   : > { %686 = vmatprep.mubr.bf16.mxu1 %v5749_v2  ;;  %906 = vmatpush1.bf16.msra.mxu1 %v5427_v41 }
 0x201   : > { %907 = vmatprep.subr.bf16.mxu1 %v5432_v42 }
 0x204   : > { %908 = vmatpush1.bf16.msra.mxu1 %v5430_v45 }
 0x205   : > { %909 = vmatprep.subr.bf16.mxu1 %v5435_v46 }
 0x207   : > { %687 = vmatmul.mubr.bf16.gmra.mrb[16].mxu1 %v535_v32 }
 0x208   : > { %696 = vmatprep.mubr.bf16.mxu1 %v5749_v2  ;;  %910 = vmatpush1.bf16.msra.mxu1 %v5433_v47 }
 0x209   : > { %911 = vmatprep.subr.bf16.mxu1 %v5438_v48 }
 0x20c   : > { %912 = vmatpush1.bf16.msra.mxu1 %v5436_v50 }
 0x20d   : > { %913 = vmatprep.subr.bf16.mxu1 %v5441_v14 }
 0x20f   : > { %697 = vmatmul.mubr.bf16.gmra.mrb[20].mxu1 %v536_v35 }
 0x210   : > { %933 = vmatprep.mubr.bf16.mxu1 %v5749_v2  ;;  %914 = vmatpush1.bf16.msra.mxu1 %v5439_v15 }
 0x211   : > { %915 = vmatprep.subr.bf16.mxu1 %v5444_v16 }
 0x214   : > { %916 = vmatpush1.bf16.msra.mxu1 %v5442_v17 }
 0x2ca   : > { %v668_v51 = vpop.f32.mrb[8].mxu1 }
 0x2cb   : > { %v670_v52 = vpop.f32.mrb[9].mxu1 }
 0x2cc   : > { %v672_v53 = vpop.f32.mrb[10].mxu1  ;;  %v719_v23 = vadd.f32 %v4493_v19, %v670_v52 }
 0x2cd   : > { %v707_v54 = vpack.c.bf16 %v672_v53, %v668_v51  ;;  %v674_v55 = vpop.f32.mrb[11].mxu1 }
 0x2ce   : > { %v720_v36 = vadd.f32 %v4493_v19, %v674_v55 }
 0x2cf   : > { %5132 = vmatprep.subr.bf16.mxu0 %v707_v54 }
 0x2d0   : > { %5133 = vmatpush3.bf16.msra.mxu0 %v707_v54 }
 0x2d2   : > { %v678_v56 = vpop.f32.mrb[12].mxu1 }
 0x2d3   : > { %v680_v57 = vpop.f32.mrb[13].mxu1 }
 0x2d4   : > { %v682_v58 = vpop.f32.mrb[14].mxu1  ;;  %v721_v20 = vadd.f32 %v4493_v19, %v680_v57 }
 0x2d5   : > { %v708_v59 = vpack.c.bf16 %v682_v58, %v678_v56  ;;  %v684_v60 = vpop.f32.mrb[15].mxu1 }
 0x2d6   : > { %v722_v29 = vadd.f32 %v4493_v19, %v684_v60 }
 0x2d7   : > { %5134 = vmatprep.subr.bf16.mxu0 %v708_v59 }
 0x2d8   : > { %5135 = vmatpush3.bf16.msra.mxu0 %v708_v59 }
 0x2da   : > { %v688_v61 = vpop.f32.mrb[16].mxu1 }
 0x2db   : > { %v690_v62 = vpop.f32.mrb[17].mxu1 }
 0x2dc   : > { %v692_v63 = vpop.f32.mrb[18].mxu1  ;;  %v723_v51 = vadd.f32 %v4493_v19, %v690_v62 }
 0x2dd   : > { %v709_v0 = vpack.c.bf16 %v692_v63, %v688_v61  ;;  %v694_v1 = vpop.f32.mrb[19].mxu1 }
 0x2de   : > { %v724_v58 = vadd.f32 %v4493_v19, %v694_v1 }
 0x2df   : > { %5136 = vmatprep.subr.bf16.mxu0 %v709_v0 }
 0x2e0   : > { %5137 = vmatpush3.bf16.msra.mxu0 %v709_v0 }
 0x2e2   : > { %v698_v4 = vpop.f32.mrb[20].mxu1 }
 0x2e3   : > { %v700_v5 = vpop.f32.mrb[21].mxu1 }
 0x2e4   : > { %v702_v7 = vpop.f32.mrb[22].mxu1  ;;  %v725_v48 = vadd.f32 %v4493_v19, %v700_v5 }
 0x2e5   : > { %v710_v9 = vpack.c.bf16 %v702_v7, %v698_v4  ;;  %v704_v13 = vpop.f32.mrb[23].mxu1 }
 0x2e6   : > { %v726_v52 = vadd.f32 %v4493_v19, %v704_v13 }
 0x2e7   : > { %5138 = vmatprep.subr.bf16.mxu0 %v710_v9 }
 0x2e8   : > { %5139 = vmatpush3.bf16.msra.mxu0 %v710_v9 }
 0x2eb   : > { %5141 = vmatmul.mubr.msk.bf16.vlgmr.msra.gmra.mrb[16].mxu0 %vm447_vm0, %v5864_v43 }
 0x2ec   : > { %5144 = vmatprep.mubr.msk.bf16.mxu0 %vm447_vm0, %v5869_v44 }
 0x2f3   : > { %5145 = vmatmul.mubr.msk.bf16.gmra.mrb[20].mxu0 %vm447_vm0, %v5890_v49 }
 0x2f4   : > { %5156 = vmatprep.mubr.msk.bf16.mxu0 %vm447_vm0, %v5844_v21 }
 0x3be   : > { %v5142_v25 = vpop.f32.mrb[16].mxu0 }
 0x3bf   : > { %v770_v32 = vadd.f32 %v5142_v25, %v721_v20  ;;  %v761_v35 = vpop.f32.mrb[17].mxu0 }
 0x3c0   : > { %v762_v37 = vadd.f32 %v761_v35, %v719_v23  ;;  %v5143_v38 = vpop.f32.mrb[18].mxu0 }
 0x3c1   : > { %v773_v39 = vadd.f32 %v5143_v38, %v722_v29  ;;  %v764_v40 = vpop.f32.mrb[19].mxu0  ;;  %v794_v42 = vmax.f32 %v770_v32, 0.0 }
 0x3c2   : > { %v765_v41 = vadd.f32 %v764_v40, %v720_v36  ;;  %v792_v46 = vmax.f32 %v762_v37, 0.0 }
 0x3c3   : > { %v795_v45 = vmax.f32 %v773_v39, 0.0 }
 0x3c4   : > { %v793_v47 = vmax.f32 %v765_v41, 0.0 }
 0x3c5   : > { %v801_v50 = vpack.c.bf16 %v795_v45, %v794_v42  ;;  %v5447_v45 = vld [vmem:[%s7109_s2 + $0x184] ss:$8 sps:$4 sm:$0xff]  }
 0x3c6   : > { %v800_v53 = vpack.c.bf16 %v793_v47, %v792_v46  ;;  %v5146_v54 = vpop.f32.mrb[20].mxu0  ;;  %v5445_v46 = vld [vmem:[%s7109_s2 + $0x180] ss:$8 sps:$4 sm:$0xff]   ;;  %v5450_v47 = vld [vmem:[%s7109_s2 + $0x194] ss:$8 sps:$4 sm:$0xff]  }
 0x3c7   : > { %v786_v56 = vadd.f32 %v5146_v54, %v725_v48  ;;  %v777_v57 = vpop.f32.mrb[21].mxu0  ;;  %v5448_v48 = vld [vmem:[%s7109_s2 + $0x190] ss:$8 sps:$4 sm:$0xff]  }
 0x3c8   : > { %v778_v59 = vadd.f32 %v777_v57, %v723_v51  ;;  %v5147_v55 = vpop.f32.mrb[22].mxu0  ;;  %934 = vmatmul.mubr.bf16.vlgmr.msra.gmra.mrb[24].mxu1 %v800_v53  ;;  %v5451_v51 = vld [vmem:[%s7109_s2 + $0x1a0] ss:$8 sps:$4 sm:$0xff]   ;;  %v5456_v53 = vld [vmem:[%s7109_s2 + $0x1b4] ss:$8 sps:$4 sm:$0xff]  }
 0x3c9   : > { %v789_v60 = vadd.f32 %v5147_v55, %v726_v52  ;;  %v780_v61 = vpop.f32.mrb[23].mxu0  ;;  %943 = vmatprep.mubr.bf16.mxu1 %v5749_v2  ;;  %v798_v0 = vmax.f32 %v786_v56, 0.0  ;;  %v5454_v54 = vld [vmem:[%s7109_s2 + $0x1b0] ss:$8 sps:$4 sm:$0xff]   ;;  %v5459_v52 = vld [vmem:[%s7109_s2 + $0x1c4] ss:$8 sps:$4 sm:$0xff]  }
 0x3ca   : > { %v781_v63 = vadd.f32 %v780_v61, %v724_v58  ;;  %v796_v7 = vmax.f32 %v778_v59, 0.0  ;;  %v5457_v56 = vld [vmem:[%s7109_s2 + $0x1c0] ss:$8 sps:$4 sm:$0xff]   ;;  %v5462_v57 = vld [vmem:[%s7109_s2 + $0x1d4] ss:$8 sps:$4 sm:$0xff]  }
 0x3cb   : > { %v799_v4 = vmax.f32 %v789_v60, 0.0  ;;  %v5460_v58 = vld [vmem:[%s7109_s2 + $0x1d0] ss:$8 sps:$4 sm:$0xff]   ;;  %v5465_v59 = vld [vmem:[%s7109_s2 + $0x1e4] ss:$8 sps:$4 sm:$0xff]  }
 0x3cc   : > { %v797_v5 = vmax.f32 %v781_v63, 0.0  ;;  %v5463_v55 = vld [vmem:[%s7109_s2 + $0x1e0] ss:$8 sps:$4 sm:$0xff]   ;;  %v5468_v60 = vld [vmem:[%s7109_s2 + $0x1f4] ss:$8 sps:$4 sm:$0xff]  }
 0x3cd   : > { %v803_v9 = vpack.c.bf16 %v799_v4, %v798_v0  ;;  %v5466_v61 = vld [vmem:[%s7109_s2 + $0x1f0] ss:$8 sps:$4 sm:$0xff]   ;;  %v4531_v63 = vld [vmem:[%s7110_s3 + $0x2] ss:$0 sm:$0xff] }
 0x3ce   : > { %v802_v62 = vpack.c.bf16 %v797_v5, %v796_v7 }
 0x3d0   : > { %944 = vmatmul.mubr.bf16.gmra.mrb[28].mxu1 %v801_v50  ;;  %v5453_v50 = vld [vmem:[%s7109_s2 + $0x1a4] ss:$8 sps:$4 sm:$0xff]  }
 0x3d1   : > { %953 = vmatprep.mubr.bf16.mxu1 %v5749_v2 }
 0x3d8   : > { %954 = vmatmul.mubr.bf16.gmra.mrb[32].mxu1 %v802_v62 }
 0x3d9   : > { %963 = vmatprep.mubr.bf16.mxu1 %v5749_v2 }
 0x3e0   : > { %964 = vmatmul.mubr.bf16.gmra.mrb[36].mxu1 %v803_v9 }
 0x3e1   : > { %5172 = vmatprep.mubr.msk.bf16.mxu1 %vm447_vm0, %v5844_v21 }
 0x49b   : > { %v935_v1 = vpop.f32.mrb[24].mxu1 }
 0x49c   : > { %v6043_v13 = vpop.f32.mrb[25].mxu1 }
 0x49d   : > { %v939_v14 = vpop.f32.mrb[26].mxu1  ;;  %v986_v4 = vadd.f32 %v4531_v63, %v6043_v13 }
 0x49e   : > { %v974_v15 = vpack.c.bf16 %v939_v14, %v935_v1  ;;  %v6045_v16 = vpop.f32.mrb[27].mxu1 }
 0x49f   : > { %v987_v1 = vadd.f32 %v4531_v63, %v6045_v16 }
 0x4a0   : > { %5148 = vmatprep.subr.bf16.mxu0 %v974_v15 }
 0x4a1   : > { %5149 = vmatpush3.bf16.msra.mxu0 %v974_v15 }
 0x4a3   : > { %v945_v17 = vpop.f32.mrb[28].mxu1 }
 0x4a4   : > { %v947_v19 = vpop.f32.mrb[29].mxu1 }
 0x4a5   : > { %v949_v20 = vpop.f32.mrb[30].mxu1  ;;  %v988_v0 = vadd.f32 %v4531_v63, %v947_v19 }
 0x4a6   : > { %v975_v23 = vpack.c.bf16 %v949_v20, %v945_v17  ;;  %v951_v25 = vpop.f32.mrb[31].mxu1 }
 0x4a7   : > { %v989_v5 = vadd.f32 %v4531_v63, %v951_v25 }
 0x4a8   : > { %5150 = vmatprep.subr.bf16.mxu0 %v975_v23 }
 0x4a9   : > { %5151 = vmatpush3.bf16.msra.mxu0 %v975_v23 }
 0x4ab   : > { %v955_v29 = vpop.f32.mrb[32].mxu1 }
 0x4ac   : > { %v6047_v32 = vpop.f32.mrb[33].mxu1 }
 0x4ad   : > { %v959_v35 = vpop.f32.mrb[34].mxu1  ;;  %v990_v19 = vadd.f32 %v4531_v63, %v6047_v32 }
 0x4ae   : > { %v976_v36 = vpack.c.bf16 %v959_v35, %v955_v29  ;;  %v6049_v37 = vpop.f32.mrb[35].mxu1 }
 0x4af   : > { %v991_v16 = vadd.f32 %v4531_v63, %v6049_v37 }
 0x4b0   : > { %5152 = vmatprep.subr.bf16.mxu0 %v976_v36 }
 0x4b1   : > { %5153 = vmatpush3.bf16.msra.mxu0 %v976_v36 }
 0x4b3   : > { %v965_v38 = vpop.f32.mrb[36].mxu1 }
 0x4b4   : > { %v967_v39 = vpop.f32.mrb[37].mxu1 }
 0x4b5   : > { %v969_v40 = vpop.f32.mrb[38].mxu1 }
 0x4b6   : > { %v977_v41 = vpack.c.bf16 %v969_v40, %v965_v38  ;;  %v971_v42 = vpop.f32.mrb[39].mxu1  ;;  %v992_v38 = vadd.f32 %v4531_v63, %v967_v39 }
 0x4b8   : > { %5154 = vmatprep.subr.bf16.mxu0 %v977_v41 }
 0x4b9   : > { %5155 = vmatpush3.bf16.msra.mxu0 %v977_v41  ;;  %v993_v41 = vadd.f32 %v4531_v63, %v971_v42  ;;  %v5480_v63 = vld [vmem:[%s7109_s2 + $0x234] ss:$8 sps:$4 sm:$0xff]  }
 0x4ba   : > { %1184 = vmatprep.subr.bf16.mxu0 %v5447_v45 }
 0x4bc   : > { %5157 = vmatmul.mubr.msk.bf16.vlgmr.msra.gmra.mrb[24].mxu0 %vm447_vm0, %v5864_v43 }
 0x4bd   : > { %5160 = vmatprep.mubr.msk.bf16.mxu0 %vm447_vm0, %v5869_v44  ;;  %1185 = vmatpush1.bf16.msra.mxu0 %v5445_v46 }
 0x4be   : > { %1186 = vmatprep.subr.bf16.mxu0 %v5450_v47 }
 0x4c1   : > { %1187 = vmatpush1.bf16.msra.mxu0 %v5448_v48 }
 0x4c2   : > { %1188 = vmatprep.subr.bf16.mxu0 %v5453_v50 }
 0x4c4   : > { %5161 = vmatmul.mubr.msk.bf16.gmra.mrb[28].mxu0 %vm447_vm0, %v5890_v49 }
 0x4c5   : > { %1189 = vmatpush1.bf16.msra.mxu0 %v5451_v51  ;;  %1216 = vmatprep.mubr.bf16.mxu0 %v5749_v2 }
 0x4c6   : > { %1190 = vmatprep.subr.bf16.mxu0 %v5456_v53 }
 0x4c9   : > { %1191 = vmatpush1.bf16.msra.mxu0 %v5454_v54 }
 0x4ca   : > { %1192 = vmatprep.subr.bf16.mxu0 %v5459_v52 }
 0x4cd   : > { %1193 = vmatpush1.bf16.msra.mxu0 %v5457_v56 }
 0x4ce   : > { %1194 = vmatprep.subr.bf16.mxu0 %v5462_v57 }
 0x4d1   : > { %1195 = vmatpush1.bf16.msra.mxu0 %v5460_v58 }
 0x4d2   : > { %1196 = vmatprep.subr.bf16.mxu0 %v5465_v59 }
 0x4d5   : > { %1197 = vmatpush1.bf16.msra.mxu0 %v5463_v55 }
 0x4d6   : > { %1198 = vmatprep.subr.bf16.mxu0 %v5468_v60  ;;  %v5477_v60 = vld [vmem:[%s7109_s2 + $0x224] ss:$8 sps:$4 sm:$0xff]  }
 0x4d9   : > { %1199 = vmatpush1.bf16.msra.mxu0 %v5466_v61  ;;  %v5475_v61 = vld [vmem:[%s7109_s2 + $0x220] ss:$8 sps:$4 sm:$0xff]  }
 0x4da   : > { %1451 = vmatprep.subr.bf16.mxu0 %v5471_v18 }
 0x58f   : > { %v5158_v7 = vpop.f32.mrb[24].mxu0 }
 0x590   : > { %v1037_v9 = vadd.f32 %v5158_v7, %v988_v0  ;;  %v1028_v62 = vpop.f32.mrb[25].mxu0  ;;  %v5478_v0 = vld [vmem:[%s7109_s2 + $0x230] ss:$8 sps:$4 sm:$0xff]   ;;  %v5481_v7 = vld [vmem:[%s7109_s2 + $0x240] ss:$8 sps:$4 sm:$0xff]  }
 0x591   : > { %v1029_v14 = vadd.f32 %v1028_v62, %v986_v4  ;;  %v5159_v15 = vpop.f32.mrb[26].mxu0  ;;  %v5483_v4 = vld [vmem:[%s7109_s2 + $0x244] ss:$8 sps:$4 sm:$0xff]  }
 0x592   : > { %v1040_v17 = vadd.f32 %v5159_v15, %v989_v5  ;;  %v1031_v20 = vpop.f32.mrb[27].mxu0  ;;  %v1061_v47 = vmax.f32 %v1037_v9, 0.0  ;;  %v5486_v5 = vld [vmem:[%s7109_s2 + $0x254] ss:$8 sps:$4 sm:$0xff]   ;;  %v5484_v9 = vld [vmem:[%s7109_s2 + $0x250] ss:$8 sps:$4 sm:$0xff]  }
 0x593   : > { %v1059_v23 = vmax.f32 %v1029_v14, 0.0  ;;  %v1032_v29 = vadd.f32 %v1031_v20, %v987_v1 }
 0x594   : > { %v1062_v13 = vmax.f32 %v1040_v17, 0.0  ;;  %v1069_v37 = vadd.f32 %v1061_v47, %v527_v28 }
 0x595   : > { %v1067_v35 = vadd.f32 %v1059_v23, %v525_v11  ;;  %v1060_v36 = vmax.f32 %v1032_v29, 0.0 }
 0x596   : > { %v1070_v32 = vadd.f32 %v1062_v13, %v528_v26  ;;  %v6130_v54 = vmul.f32 0.5, %v1069_v37 }
 0x597   : > { %v1068_v25 = vadd.f32 %v1060_v36, %v526_v12  ;;  %v5162_v40 = vpop.f32.mrb[28].mxu0  ;;  %v6117_v48 = vmul.f32 0.5, %v1067_v35 }
 0x598   : > { %v1053_v45 = vadd.f32 %v5162_v40, %v992_v38  ;;  %v1044_v46 = vpop.f32.mrb[29].mxu0  ;;  %v6128_v42 = vmul.f32 0.5, %v1070_v32  ;;  %v4569_v32 = vld [vmem:[%s7110_s3 + $0x3] ss:$0 sm:$0xff] }
 0x599   : > { %v6119_v50 = vmul.f32 0.5, %v1068_v25  ;;  %v1045_v6 = vadd.f32 %v1044_v46, %v990_v19  ;;  %v5163_v11 = vpop.f32.mrb[30].mxu0 }
 0x59a   : > { %v1056_v39 = vadd.f32 %v5163_v11, %v993_v41  ;;  %v1047_v51 = vpop.f32.mrb[31].mxu0  ;;  %v1084_v26 = vpack.c.bf16 %v6128_v42, %v6130_v54  ;;  %v1065_v57 = vmax.f32 %v1053_v45, 0.0  ;;  %v5487_v11 = vld [vmem:[%s7109_s2 + $0x260] ss:$8 sps:$4 sm:$0xff]  }
 0x59b   : > { %v1083_v10 = vpack.c.bf16 %v6119_v50, %v6117_v48  ;;  %v1048_v12 = vadd.f32 %v1047_v51, %v991_v16  ;;  %v1063_v52 = vmax.f32 %v1045_v6, 0.0  ;;  %v5489_v6 = vld [vmem:[%s7109_s2 + $0x264] ss:$8 sps:$4 sm:$0xff]   ;;  %v5490_v51 = vld [vmem:[%s7109_s2 + $0x270] ss:$8 sps:$4 sm:$0xff]  }
 0x59c   : > { %v1066_v3 = vmax.f32 %v1056_v39, 0.0  ;;  %v5492_v39 = vld [vmem:[%s7109_s2 + $0x274] ss:$8 sps:$4 sm:$0xff]  }
 0x59d   : > { %1217 = vmatmul.mubr.bf16.vlgmr.msra.gmra.mrb[32].mxu0 %v1083_v10  ;;  %v1064_v53 = vmax.f32 %v1048_v12, 0.0  ;;  %v1071_v56 = vadd.f32 %v1063_v52, %v529_v31 }
 0x59e   : > { %1226 = vmatprep.mubr.bf16.mxu0 %v5749_v2  ;;  %v1074_v59 = vadd.f32 %v1066_v3, %v532_v33  ;;  %v5474_v33 = vld [vmem:[%s7109_s2 + $0x214] ss:$8 sps:$4 sm:$0xff]   ;;  %1452 = vmatpush1.bf16.msra.mxu0 %v5469_v24 }
 0x59f   : > { %v1072_v8 = vadd.f32 %v1064_v53, %v530_v30  ;;  %v6141_v58 = vmul.f32 0.5, %v1071_v56  ;;  %v1073_v30 = vadd.f32 %v1065_v57, %v531_v34  ;;  %v5472_v34 = vld [vmem:[%s7109_s2 + $0x210] ss:$8 sps:$4 sm:$0xff]   ;;  %1453 = vmatprep.subr.bf16.mxu0 %v5474_v33 }
 0x5a0   : > { %v6150_v22 = vmul.f32 0.5, %v1074_v59 }
 0x5a1   : > { %v6139_v28 = vmul.f32 0.5, %v1072_v8  ;;  %v6152_v31 = vmul.f32 0.5, %v1073_v30 }
 0x5a2   : > { %1454 = vmatpush1.bf16.msra.mxu0 %v5472_v34 }
 0x5a3   : > { %v1085_v27 = vpack.c.bf16 %v6139_v28, %v6141_v58  ;;  %v1086_v55 = vpack.c.bf16 %v6150_v22, %v6152_v31  ;;  %1455 = vmatprep.subr.bf16.mxu0 %v5477_v60 }
 0x5a5   : > { %1227 = vmatmul.mubr.bf16.gmra.mrb[36].mxu0 %v1084_v26 }
 0x5a6   : > { %1236 = vmatprep.mubr.bf16.mxu0 %v5749_v2  ;;  %1456 = vmatpush1.bf16.msra.mxu0 %v5475_v61 }
 0x5a7   : > { %1457 = vmatprep.subr.bf16.mxu0 %v5480_v63 }
 0x5aa   : > { %1458 = vmatpush1.bf16.msra.mxu0 %v5478_v0 }
 0x5ab   : > { %1459 = vmatprep.subr.bf16.mxu0 %v5483_v4 }
 0x5ad   : > { %1237 = vmatmul.mubr.bf16.gmra.mrb[40].mxu0 %v1085_v27 }
 0x5ae   : > { %1246 = vmatprep.mubr.bf16.mxu0 %v5749_v2  ;;  %1460 = vmatpush1.bf16.msra.mxu0 %v5481_v7 }
 0x5af   : > { %1461 = vmatprep.subr.bf16.mxu0 %v5486_v5 }
 0x5b2   : > { %1462 = vmatpush1.bf16.msra.mxu0 %v5484_v9 }
 0x5b3   : > { %1463 = vmatprep.subr.bf16.mxu0 %v5489_v6 }
 0x5b5   : > { %1247 = vmatmul.mubr.bf16.gmra.mrb[44].mxu0 %v1086_v55 }
 0x5b6   : > { %1483 = vmatprep.mubr.bf16.mxu0 %v5749_v2  ;;  %1464 = vmatpush1.bf16.msra.mxu0 %v5487_v11 }
 0x5b7   : > { %1465 = vmatprep.subr.bf16.mxu0 %v5492_v39 }
 0x5ba   : > { %1466 = vmatpush1.bf16.msra.mxu0 %v5490_v51 }
 0x670   : > { %v1218_v62 = vpop.f32.mrb[32].mxu0 }
 0x671   : > { %v1220_v1 = vpop.f32.mrb[33].mxu0 }
 0x672   : > { %v1222_v14 = vpop.f32.mrb[34].mxu0  ;;  %v1269_v12 = vadd.f32 %v4569_v32, %v1220_v1 }
 0x673   : > { %v1257_v15 = vpack.c.bf16 %v1222_v14, %v1218_v62  ;;  %v1224_v17 = vpop.f32.mrb[35].mxu0 }
 0x674   : > { %v1270_v26 = vadd.f32 %v4569_v32, %v1224_v17 }
 0x675   : > { %5164 = vmatprep.subr.bf16.mxu1 %v1257_v15 }
 0x676   : > { %5165 = vmatpush3.bf16.msra.mxu1 %v1257_v15 }
 0x678   : > { %v1228_v20 = vpop.f32.mrb[36].mxu0 }
 0x679   : > { %v1230_v23 = vpop.f32.mrb[37].mxu0 }
 0x67a   : > { %v1232_v29 = vpop.f32.mrb[38].mxu0  ;;  %v1271_v10 = vadd.f32 %v4569_v32, %v1230_v23 }
 0x67b   : > { %v1258_v35 = vpack.c.bf16 %v1232_v29, %v1228_v20  ;;  %v1234_v36 = vpop.f32.mrb[39].mxu0 }
 0x67c   : > { %v1272_v53 = vadd.f32 %v4569_v32, %v1234_v36 }
 0x67d   : > { %5166 = vmatprep.subr.bf16.mxu1 %v1258_v35 }
 0x67e   : > { %5167 = vmatpush3.bf16.msra.mxu1 %v1258_v35 }
 0x680   : > { %v1238_v38 = vpop.f32.mrb[40].mxu0 }
 0x681   : > { %v1240_v19 = vpop.f32.mrb[41].mxu0 }
 0x682   : > { %v1242_v13 = vpop.f32.mrb[42].mxu0  ;;  %v1273_v60 = vadd.f32 %v4569_v32, %v1240_v19 }
 0x683   : > { %v1259_v25 = vpack.c.bf16 %v1242_v13, %v1238_v38  ;;  %v1244_v40 = vpop.f32.mrb[43].mxu0 }
 0x684   : > { %v1274_v5 = vadd.f32 %v4569_v32, %v1244_v40 }
 0x685   : > { %5168 = vmatprep.subr.bf16.mxu1 %v1259_v25 }
 0x686   : > { %5169 = vmatpush3.bf16.msra.mxu1 %v1259_v25 }
 0x688   : > { %v1248_v16 = vpop.f32.mrb[44].mxu0 }
 0x689   : > { %v1250_v41 = vpop.f32.mrb[45].mxu0 }
 0x68a   : > { %v1252_v45 = vpop.f32.mrb[46].mxu0  ;;  %v1275_v33 = vadd.f32 %v4569_v32, %v1250_v41 }
 0x68b   : > { %v1260_v46 = vpack.c.bf16 %v1252_v45, %v1248_v16  ;;  %v1254_v47 = vpop.f32.mrb[47].mxu0 }
 0x68c   : > { %v1276_v0 = vadd.f32 %v4569_v32, %v1254_v47 }
 0x68d   : > { %5170 = vmatprep.subr.bf16.mxu1 %v1260_v46 }
 0x68e   : > { %5171 = vmatpush3.bf16.msra.mxu1 %v1260_v46 }
 0x691   : > { %5173 = vmatmul.mubr.msk.bf16.vlgmr.msra.gmra.mrb[40].mxu1 %vm447_vm0, %v5864_v43 }
 0x692   : > { %5176 = vmatprep.mubr.msk.bf16.mxu1 %vm447_vm0, %v5869_v44 }
 0x699   : > { %5177 = vmatmul.mubr.msk.bf16.gmra.mrb[44].mxu1 %vm447_vm0, %v5890_v49 }
 0x69a   : > { %5188 = vmatprep.mubr.msk.bf16.mxu1 %vm447_vm0, %v5844_v21 }
 0x764   : > { %v5174_v37 = vpop.f32.mrb[40].mxu1 }
 0x765   : > { %v1320_v52 = vadd.f32 %v5174_v37, %v1271_v10  ;;  %v1311_v8 = vpop.f32.mrb[41].mxu1 }
 0x766   : > { %v1312_v56 = vadd.f32 %v1311_v8, %v1269_v12  ;;  %v5175_v3 = vpop.f32.mrb[42].mxu1  ;;  %v5493_v8 = vld [vmem:[%s7109_s2 + $0x280] ss:$8 sps:$4 sm:$0xff]  }
 0x767   : > { %v1323_v57 = vadd.f32 %v5175_v3, %v1272_v53  ;;  %v1314_v59 = vpop.f32.mrb[43].mxu1  ;;  %v1344_v30 = vmax.f32 %v1320_v52, 0.0  ;;  %v5495_v52 = vld [vmem:[%s7109_s2 + $0x284] ss:$8 sps:$4 sm:$0xff]  }
 0x768   : > { %v1315_v27 = vadd.f32 %v1314_v59, %v1270_v26  ;;  %v1342_v24 = vmax.f32 %v1312_v56, 0.0  ;;  %v5498_v26 = vld [vmem:[%s7109_s2 + $0x294] ss:$8 sps:$4 sm:$0xff]   ;;  %v5496_v56 = vld [vmem:[%s7109_s2 + $0x290] ss:$8 sps:$4 sm:$0xff]  }
 0x769   : > { %v1345_v55 = vmax.f32 %v1323_v57, 0.0  ;;  %v5501_v3 = vld [vmem:[%s7109_s2 + $0x2a4] ss:$8 sps:$4 sm:$0xff]   ;;  %v5499_v57 = vld [vmem:[%s7109_s2 + $0x2a0] ss:$8 sps:$4 sm:$0xff]  }
 0x76a   : > { %v1343_v18 = vmax.f32 %v1315_v27, 0.0  ;;  %v5507_v59 = vld [vmem:[%s7109_s2 + $0x2c4] ss:$8 sps:$4 sm:$0xff]   ;;  %v5505_v27 = vld [vmem:[%s7109_s2 + $0x2c0] ss:$8 sps:$4 sm:$0xff]  }
 0x76b   : > { %v1351_v34 = vpack.c.bf16 %v1345_v55, %v1344_v30  ;;  %v5508_v30 = vld [vmem:[%s7109_s2 + $0x2d0] ss:$8 sps:$4 sm:$0xff]   ;;  %v5513_v55 = vld [vmem:[%s7109_s2 + $0x2e4] ss:$8 sps:$4 sm:$0xff]  }
 0x76c   : > { %v1350_v61 = vpack.c.bf16 %v1343_v18, %v1342_v24  ;;  %v5178_v63 = vpop.f32.mrb[44].mxu1  ;;  %v5511_v24 = vld [vmem:[%s7109_s2 + $0x2e0] ss:$8 sps:$4 sm:$0xff]   ;;  %v5516_v18 = vld [vmem:[%s7109_s2 + $0x2f4] ss:$8 sps:$4 sm:$0xff]  }
 0x76d   : > { %v1336_v4 = vadd.f32 %v5178_v63, %v1275_v33  ;;  %v1327_v7 = vpop.f32.mrb[45].mxu1  ;;  %v5514_v33 = vld [vmem:[%s7109_s2 + $0x2f0] ss:$8 sps:$4 sm:$0xff]  }
 0x76e   : > { %v1328_v9 = vadd.f32 %v1327_v7, %v1273_v60  ;;  %v5179_v62 = vpop.f32.mrb[46].mxu1  ;;  %1484 = vmatmul.mubr.bf16.vlgmr.msra.gmra.mrb[48].mxu0 %v1350_v61 }
 0x76f   : > { %v1339_v1 = vadd.f32 %v5179_v62, %v1276_v0  ;;  %v1330_v14 = vpop.f32.mrb[47].mxu1  ;;  %1493 = vmatprep.mubr.bf16.mxu0 %v5749_v2  ;;  %v1348_v17 = vmax.f32 %v1336_v4, 0.0 }
 0x770   : > { %v1331_v15 = vadd.f32 %v1330_v14, %v1274_v5  ;;  %v1346_v23 = vmax.f32 %v1328_v9, 0.0 }
 0x771   : > { %v1349_v20 = vmax.f32 %v1339_v1, 0.0 }
 0x772   : > { %v1347_v29 = vmax.f32 %v1331_v15, 0.0 }
 0x773   : > { %v1353_v35 = vpack.c.bf16 %v1349_v20, %v1348_v17 }
 0x774   : > { %v1352_v36 = vpack.c.bf16 %v1347_v29, %v1346_v23 }
 0x776   : > { %1494 = vmatmul.mubr.bf16.gmra.mrb[52].mxu0 %v1351_v34  ;;  %v4607_v34 = vld [vmem:[%s7110_s3 + $0x4] ss:$0 sm:$0xff] }
 0x777   : > { %1503 = vmatprep.mubr.bf16.mxu0 %v5749_v2 }
 0x77e   : > { %1504 = vmatmul.mubr.bf16.gmra.mrb[56].mxu0 %v1352_v36 }
 0x77f   : > { %1513 = vmatprep.mubr.bf16.mxu0 %v5749_v2 }
 0x786   : > { %1514 = vmatmul.mubr.bf16.gmra.mrb[60].mxu0 %v1353_v35 }
 0x787   : > { %5204 = vmatprep.mubr.msk.bf16.mxu0 %vm447_vm0, %v5844_v21 }
 0x841   : > { %v1485_v38 = vpop.f32.mrb[48].mxu0 }
 0x842   : > { %v6221_v19 = vpop.f32.mrb[49].mxu0 }
 0x843   : > { %v1489_v13 = vpop.f32.mrb[50].mxu0  ;;  %v1536_v61 = vadd.f32 %v4607_v34, %v6221_v19 }
 0x844   : > { %v1524_v25 = vpack.c.bf16 %v1489_v13, %v1485_v38  ;;  %v6223_v40 = vpop.f32.mrb[51].mxu0 }
 0x845   : > { %v1537_v5 = vadd.f32 %v4607_v34, %v6223_v40 }
 0x846   : > { %5180 = vmatprep.subr.bf16.mxu1 %v1524_v25 }
 0x847   : > { %5181 = vmatpush3.bf16.msra.mxu1 %v1524_v25 }
 0x849   : > { %v1495_v16 = vpop.f32.mrb[52].mxu0 }
 0x84a   : > { %v1497_v41 = vpop.f32.mrb[53].mxu0 }
 0x84b   : > { %v1499_v45 = vpop.f32.mrb[54].mxu0  ;;  %v1538_v60 = vadd.f32 %v4607_v34, %v1497_v41 }
 0x84c   : > { %v1525_v46 = vpack.c.bf16 %v1499_v45, %v1495_v16  ;;  %v1501_v47 = vpop.f32.mrb[55].mxu0 }
 0x84d   : > { %v1539_v0 = vadd.f32 %v4607_v34, %v1501_v47 }
 0x84e   : > { %5182 = vmatprep.subr.bf16.mxu1 %v1525_v46 }
 0x84f   : > { %5183 = vmatpush3.bf16.msra.mxu1 %v1525_v46 }
 0x851   : > { %v1505_v6 = vpop.f32.mrb[56].mxu0 }
 0x852   : > { %v6225_v11 = vpop.f32.mrb[57].mxu0 }
 0x853   : > { %v1509_v21 = vpop.f32.mrb[58].mxu0  ;;  %v1540_v35 = vadd.f32 %v4607_v34, %v6225_v11 }
 0x854   : > { %v1526_v39 = vpack.c.bf16 %v1509_v21, %v1505_v6  ;;  %v6227_v51 = vpop.f32.mrb[59].mxu0 }
 0x855   : > { %v1541_v13 = vadd.f32 %v4607_v34, %v6227_v51 }
 0x856   : > { %5184 = vmatprep.subr.bf16.mxu1 %v1526_v39 }
 0x857   : > { %5185 = vmatpush3.bf16.msra.mxu1 %v1526_v39 }
 0x859   : > { %v1515_v32 = vpop.f32.mrb[60].mxu0 }
 0x85a   : > { %v1517_v10 = vpop.f32.mrb[61].mxu0 }
 0x85b   : > { %v1519_v12 = vpop.f32.mrb[62].mxu0  ;;  %v1542_v29 = vadd.f32 %v4607_v34, %v1517_v10 }
 0x85c   : > { %v1527_v37 = vpack.c.bf16 %v1519_v12, %v1515_v32  ;;  %v1521_v53 = vpop.f32.mrb[63].mxu0 }
 0x85d   : > { %v1543_v25 = vadd.f32 %v4607_v34, %v1521_v53  ;;  %v5534_v34 = vld [vmem:[%s7109_s2 + $0x354] ss:$8 sps:$4 sm:$0xff]  }
 0x85e   : > { %5186 = vmatprep.subr.bf16.mxu1 %v1527_v37 }
 0x85f   : > { %5187 = vmatpush3.bf16.msra.mxu1 %v1527_v37 }
 0x860   : > { %1734 = vmatprep.subr.bf16.mxu1 %v5495_v52 }
 0x862   : > { %5189 = vmatmul.mubr.msk.bf16.vlgmr.msra.gmra.mrb[48].mxu1 %vm447_vm0, %v5864_v43  ;;  %v5504_v43 = vld [vmem:[%s7109_s2 + $0x2b4] ss:$8 sps:$4 sm:$0xff]  }
 0x863   : > { %5192 = vmatprep.mubr.msk.bf16.mxu1 %vm447_vm0, %v5869_v44  ;;  %1735 = vmatpush1.bf16.msra.mxu1 %v5493_v8  ;;  %v5502_v44 = vld [vmem:[%s7109_s2 + $0x2b0] ss:$8 sps:$4 sm:$0xff]  }
 0x864   : > { %1736 = vmatprep.subr.bf16.mxu1 %v5498_v26 }
 0x867   : > { %1737 = vmatpush1.bf16.msra.mxu1 %v5496_v56 }
 0x868   : > { %1738 = vmatprep.subr.bf16.mxu1 %v5501_v3 }
 0x86a   : > { %5193 = vmatmul.mubr.msk.bf16.gmra.mrb[52].mxu1 %vm447_vm0, %v5890_v49  ;;  %v5510_v49 = vld [vmem:[%s7109_s2 + $0x2d4] ss:$8 sps:$4 sm:$0xff]  }
 0x86b   : > { %1739 = vmatpush1.bf16.msra.mxu1 %v5499_v57  ;;  %1766 = vmatprep.mubr.bf16.mxu1 %v5749_v2 }
 0x86c   : > { %1740 = vmatprep.subr.bf16.mxu1 %v5504_v43 }
 0x86f   : > { %1741 = vmatpush1.bf16.msra.mxu1 %v5502_v44 }
 0x870   : > { %1742 = vmatprep.subr.bf16.mxu1 %v5507_v59  ;;  %v5522_v59 = vld [vmem:[%s7109_s2 + $0x314] ss:$8 sps:$4 sm:$0xff]  }
 0x873   : > { %1743 = vmatpush1.bf16.msra.mxu1 %v5505_v27  ;;  %v5520_v27 = vld [vmem:[%s7109_s2 + $0x310] ss:$8 sps:$4 sm:$0xff]  }
 0x874   : > { %1744 = vmatprep.subr.bf16.mxu1 %v5510_v49  ;;  %v5525_v49 = vld [vmem:[%s7109_s2 + $0x324] ss:$8 sps:$4 sm:$0xff]  }
 0x877   : > { %1745 = vmatpush1.bf16.msra.mxu1 %v5508_v30  ;;  %v5523_v30 = vld [vmem:[%s7109_s2 + $0x320] ss:$8 sps:$4 sm:$0xff]  }
 0x878   : > { %1746 = vmatprep.subr.bf16.mxu1 %v5513_v55  ;;  %v5528_v55 = vld [vmem:[%s7109_s2 + $0x334] ss:$8 sps:$4 sm:$0xff]  }
 0x87b   : > { %1747 = vmatpush1.bf16.msra.mxu1 %v5511_v24  ;;  %v5526_v24 = vld [vmem:[%s7109_s2 + $0x330] ss:$8 sps:$4 sm:$0xff]  }
 0x87c   : > { %1748 = vmatprep.subr.bf16.mxu1 %v5516_v18  ;;  %v5531_v18 = vld [vmem:[%s7109_s2 + $0x344] ss:$8 sps:$4 sm:$0xff]  }
 0x87f   : > { %1749 = vmatpush1.bf16.msra.mxu1 %v5514_v33  ;;  %v5529_v33 = vld [vmem:[%s7109_s2 + $0x340] ss:$8 sps:$4 sm:$0xff]  }
 0x935   : > { %v5190_v63 = vpop.f32.mrb[48].mxu1 }
 0x936   : > { %v1587_v4 = vadd.f32 %v5190_v63, %v1538_v60  ;;  %v1578_v7 = vpop.f32.mrb[49].mxu1  ;;  %v5532_v60 = vld [vmem:[%s7109_s2 + $0x350] ss:$8 sps:$4 sm:$0xff]  }
 0x937   : > { %v1579_v9 = vadd.f32 %v1578_v7, %v1536_v61  ;;  %v5191_v62 = vpop.f32.mrb[50].mxu1 }
 0x938   : > { %v1590_v1 = vadd.f32 %v5191_v62, %v1539_v0  ;;  %v1581_v14 = vpop.f32.mrb[51].mxu1  ;;  %v1611_v41 = vmax.f32 %v1587_v4, 0.0 }
 0x939   : > { %v1609_v15 = vmax.f32 %v1579_v9, 0.0  ;;  %v1582_v17 = vadd.f32 %v1581_v14, %v1537_v5 }
 0x93a   : > { %v1612_v36 = vmax.f32 %v1590_v1, 0.0  ;;  %v1619_v51 = vadd.f32 %v1611_v41, %v6130_v54  ;;  %v6387_v41 = vld [vmem:[%s7108_s1] sm:$0xff]  }
 0x93b   : > { %v1617_v20 = vadd.f32 %v1609_v15, %v6117_v48  ;;  %v1610_v23 = vmax.f32 %v1582_v17, 0.0 }
 0x93c   : > { %v1620_v11 = vadd.f32 %v1612_v36, %v6128_v42  ;;  %v6304_v12 = vmul.f32 0.5, %v1619_v51 }
 0x93d   : > { %v1618_v38 = vadd.f32 %v1610_v23, %v6119_v50  ;;  %v5194_v19 = vpop.f32.mrb[52].mxu1  ;;  %v6293_v45 = vmul.f32 0.5, %v1617_v20 }
 0x93e   : > { %v1603_v40 = vadd.f32 %v5194_v19, %v1542_v29  ;;  %v1594_v16 = vpop.f32.mrb[53].mxu1  ;;  %v6302_v32 = vmul.f32 0.5, %v1620_v11  ;;  %v4645_v11 = vld [vmem:[%s7110_s3 + $0x5] ss:$0 sm:$0xff] }
 0x93f   : > { %v6295_v46 = vmul.f32 0.5, %v1618_v38  ;;  %v1595_v47 = vadd.f32 %v1594_v16, %v1540_v35  ;;  %v5195_v48 = vpop.f32.mrb[54].mxu1  ;;  %v6380_v16 = vld [vmem:[%s7108_s1 + $0x18] sm:$0xff]  }
 0x940   : > { %v1606_v6 = vadd.f32 %v5195_v48, %v1543_v25  ;;  %v1597_v21 = vpop.f32.mrb[55].mxu1  ;;  %v1634_v42 = vpack.c.bf16 %v6302_v32, %v6304_v12  ;;  %v1615_v26 = vmax.f32 %v1603_v40, 0.0  ;;  %v6366_v25 = vld [vmem:[%s7108_s1 + $0x8] sm:$0xff]   ;;  %v6373_v40 = vld [vmem:[%s7108_s1 + $0x10] sm:$0xff]  }
 0x941   : > { %v1633_v50 = vpack.c.bf16 %v6295_v46, %v6293_v45  ;;  %v1598_v39 = vadd.f32 %v1597_v21, %v1541_v13  ;;  %v1613_v37 = vmax.f32 %v1595_v47, 0.0  ;;  %v5537_v47 = vld [vmem:[%s7109_s2 + $0x364] ss:$8 sps:$4 sm:$0xff]   ;;  %v5535_v48 = vld [vmem:[%s7109_s2 + $0x360] ss:$8 sps:$4 sm:$0xff]  }
 0x942   : > { %v1616_v54 = vmax.f32 %v1606_v6, 0.0  ;;  %v5540_v6 = vld [vmem:[%s7109_s2 + $0x374] ss:$8 sps:$4 sm:$0xff]   ;;  %v5538_v21 = vld [vmem:[%s7109_s2 + $0x370] ss:$8 sps:$4 sm:$0xff]  }
 0x943   : > { %1767 = vmatmul.mubr.bf16.vlgmr.msra.gmra.mrb[56].mxu1 %v1633_v50  ;;  %v1614_v10 = vmax.f32 %v1598_v39, 0.0  ;;  %v1621_v52 = vadd.f32 %v1613_v37, %v6141_v58 }
 0x944   : > { %1776 = vmatprep.mubr.bf16.mxu1 %v5749_v2  ;;  %v1624_v3 = vadd.f32 %v1616_v54, %v6150_v22  ;;  %v5517_v22 = vld [vmem:[%s7109_s2 + $0x300] ss:$8 sps:$4 sm:$0xff]  }
 0x945   : > { %v1622_v53 = vadd.f32 %v1614_v10, %v6139_v28  ;;  %v6313_v56 = vmul.f32 0.5, %v1621_v52  ;;  %v1623_v28 = vadd.f32 %v1615_v26, %v6152_v31  ;;  %v5519_v31 = vld [vmem:[%s7109_s2 + $0x304] ss:$8 sps:$4 sm:$0xff]  }
 0x946   : > { %v6320_v58 = vmul.f32 0.5, %v1624_v3  ;;  %2001 = vmatprep.subr.bf16.mxu1 %v5519_v31 }
 0x947   : > { %v6311_v8 = vmul.f32 0.5, %v1622_v53  ;;  %v6322_v43 = vmul.f32 0.5, %v1623_v28  ;;  %2002 = vmatpush1.bf16.msra.mxu1 %v5517_v22 }
 0x948   : > { %2003 = vmatprep.subr.bf16.mxu1 %v5522_v59 }
 0x949   : > { %v1635_v57 = vpack.c.bf16 %v6311_v8, %v6313_v56  ;;  %v1636_v44 = vpack.c.bf16 %v6320_v58, %v6322_v43 }
 0x94b   : > { %1777 = vmatmul.mubr.bf16.gmra.mrb[60].mxu1 %v1634_v42 }
 0x94c   : > { %1786 = vmatprep.mubr.bf16.mxu1 %v5749_v2  ;;  %2004 = vmatpush1.bf16.msra.mxu1 %v5520_v27 }
 0x94d   : > { %2005 = vmatprep.subr.bf16.mxu1 %v5525_v49 }
 0x950   : > { %2006 = vmatpush1.bf16.msra.mxu1 %v5523_v30 }
 0x951   : > { %2007 = vmatprep.subr.bf16.mxu1 %v5528_v55 }
 0x953   : > { %1787 = vmatmul.mubr.bf16.gmra.mrb[64].mxu1 %v1635_v57 }
 0x954   : > { %1796 = vmatprep.mubr.bf16.mxu1 %v5749_v2  ;;  %2008 = vmatpush1.bf16.msra.mxu1 %v5526_v24 }
 0x955   : > { %2009 = vmatprep.subr.bf16.mxu1 %v5531_v18 }
 0x958   : > { %2010 = vmatpush1.bf16.msra.mxu1 %v5529_v33 }
 0x959   : > { %2011 = vmatprep.subr.bf16.mxu1 %v5534_v34 }
 0x95b   : > { %1797 = vmatmul.mubr.bf16.gmra.mrb[68].mxu1 %v1636_v44 }
 0x95c   : > { %2033 = vmatprep.mubr.bf16.mxu1 %v5749_v2  ;;  %2012 = vmatpush1.bf16.msra.mxu1 %v5532_v60 }
 0x95d   : > { %2013 = vmatprep.subr.bf16.mxu1 %v5537_v47 }
 0x960   : > { %2014 = vmatpush1.bf16.msra.mxu1 %v5535_v48 }
 0x961   : > { %2015 = vmatprep.subr.bf16.mxu1 %v5540_v6 }
 0x964   : > { %2016 = vmatpush1.bf16.msra.mxu1 %v5538_v21 }
 0xa16   : > { %v1768_v61 = vpop.f32.mrb[56].mxu1 }
 0xa17   : > { %v1770_v63 = vpop.f32.mrb[57].mxu1 }
 0xa18   : > { %v1772_v0 = vpop.f32.mrb[58].mxu1  ;;  %v1819_v39 = vadd.f32 %v4645_v11, %v1770_v63 }
 0xa19   : > { %v1807_v4 = vpack.c.bf16 %v1772_v0, %v1768_v61  ;;  %v1774_v7 = vpop.f32.mrb[59].mxu1 }
 0xa1a   : > { %v1820_v42 = vadd.f32 %v4645_v11, %v1774_v7 }
 0xa1b   : > { %5196 = vmatprep.subr.bf16.mxu0 %v1807_v4 }
 0xa1c   : > { %5197 = vmatpush3.bf16.msra.mxu0 %v1807_v4 }
 0xa1e   : > { %v1778_v5 = vpop.f32.mrb[60].mxu1 }
 0xa1f   : > { %v1780_v9 = vpop.f32.mrb[61].mxu1 }
 0xa20   : > { %v1782_v62 = vpop.f32.mrb[62].mxu1  ;;  %v1821_v50 = vadd.f32 %v4645_v11, %v1780_v9 }
 0xa21   : > { %v1808_v1 = vpack.c.bf16 %v1782_v62, %v1778_v5  ;;  %v1784_v14 = vpop.f32.mrb[63].mxu1 }
 0xa22   : > { %v1822_v10 = vadd.f32 %v4645_v11, %v1784_v14 }
 0xa23   : > { %5198 = vmatprep.subr.bf16.mxu0 %v1808_v1 }
 0xa24   : > { %5199 = vmatpush3.bf16.msra.mxu0 %v1808_v1 }
 0xa26   : > { %v1788_v15 = vpop.f32.mrb[64].mxu1 }
 0xa27   : > { %v1790_v17 = vpop.f32.mrb[65].mxu1 }
 0xa28   : > { %v1792_v20 = vpop.f32.mrb[66].mxu1  ;;  %v1823_v49 = vadd.f32 %v4645_v11, %v1790_v17 }
 0xa29   : > { %v1809_v23 = vpack.c.bf16 %v1792_v20, %v1788_v15  ;;  %v1794_v29 = vpop.f32.mrb[67].mxu1 }
 0xa2a   : > { %v1824_v34 = vadd.f32 %v4645_v11, %v1794_v29 }
 0xa2b   : > { %5200 = vmatprep.subr.bf16.mxu0 %v1809_v23 }
 0xa2c   : > { %5201 = vmatpush3.bf16.msra.mxu0 %v1809_v23 }
 0xa2e   : > { %v1798_v35 = vpop.f32.mrb[68].mxu1 }
 0xa2f   : > { %v1800_v36 = vpop.f32.mrb[69].mxu1 }
 0xa30   : > { %v1802_v38 = vpop.f32.mrb[70].mxu1  ;;  %v1825_v59 = vadd.f32 %v4645_v11, %v1800_v36 }
 0xa31   : > { %v1810_v19 = vpack.c.bf16 %v1802_v38, %v1798_v35  ;;  %v1804_v13 = vpop.f32.mrb[71].mxu1 }
 0xa32   : > { %v1826_v24 = vadd.f32 %v4645_v11, %v1804_v13 }
 0xa33   : > { %5202 = vmatprep.subr.bf16.mxu0 %v1810_v19 }
 0xa34   : > { %5203 = vmatpush3.bf16.msra.mxu0 %v1810_v19 }
 0xa37   : > { %5205 = vmatmul.mubr.msk.bf16.vlgmr.msra.gmra.mrb[64].mxu0 %vm447_vm0, %v6366_v25 }
 0xa38   : > { %5208 = vmatprep.mubr.msk.bf16.mxu0 %vm447_vm0, %v6373_v40 }
 0xa3f   : > { %5209 = vmatmul.mubr.msk.bf16.gmra.mrb[68].mxu0 %vm447_vm0, %v6380_v16 }
 0xa40   : > { %5220 = vmatprep.mubr.msk.bf16.mxu0 %vm447_vm0, %v6387_v41 }
 0xb0a   : > { %v5206_v51 = vpop.f32.mrb[64].mxu0 }
 0xb0b   : > { %v1870_v37 = vadd.f32 %v5206_v51, %v1821_v50  ;;  %v1861_v53 = vpop.f32.mrb[65].mxu0 }
 0xb0c   : > { %v1862_v52 = vadd.f32 %v1861_v53, %v1819_v39  ;;  %v5207_v54 = vpop.f32.mrb[66].mxu0  ;;  %v5543_v53 = vld [vmem:[%s7109_s2 + $0x384] ss:$8 sps:$4 sm:$0xff]  }
 0xb0d   : > { %v1873_v26 = vadd.f32 %v5207_v54, %v1822_v10  ;;  %v1864_v3 = vpop.f32.mrb[67].mxu0  ;;  %v1894_v28 = vmax.f32 %v1870_v37, 0.0  ;;  %v5544_v54 = vld [vmem:[%s7109_s2 + $0x390] ss:$8 sps:$4 sm:$0xff]  }
 0xb0e   : > { %v1865_v57 = vadd.f32 %v1864_v3, %v1820_v42  ;;  %v1892_v22 = vmax.f32 %v1862_v52, 0.0  ;;  %v5541_v42 = vld [vmem:[%s7109_s2 + $0x380] ss:$8 sps:$4 sm:$0xff]   ;;  %v5546_v52 = vld [vmem:[%s7109_s2 + $0x394] ss:$8 sps:$4 sm:$0xff]  }
 0xb0f   : > { %v1895_v44 = vmax.f32 %v1873_v26, 0.0  ;;  %v5549_v26 = vld [vmem:[%s7109_s2 + $0x3a4] ss:$8 sps:$4 sm:$0xff]   ;;  %v5547_v3 = vld [vmem:[%s7109_s2 + $0x3a0] ss:$8 sps:$4 sm:$0xff]  }
 0xb10   : > { %v1893_v31 = vmax.f32 %v1865_v57, 0.0  ;;  %v5552_v57 = vld [vmem:[%s7109_s2 + $0x3b4] ss:$8 sps:$4 sm:$0xff]  }
 0xb11   : > { %v1901_v27 = vpack.c.bf16 %v1895_v44, %v1894_v28  ;;  %v5550_v28 = vld [vmem:[%s7109_s2 + $0x3b0] ss:$8 sps:$4 sm:$0xff]   ;;  %v5555_v44 = vld [vmem:[%s7109_s2 + $0x3c4] ss:$8 sps:$4 sm:$0xff]  }
 0xb12   : > { %v1900_v30 = vpack.c.bf16 %v1893_v31, %v1892_v22  ;;  %v5210_v55 = vpop.f32.mrb[68].mxu0  ;;  %v5553_v22 = vld [vmem:[%s7109_s2 + $0x3c0] ss:$8 sps:$4 sm:$0xff]   ;;  %v5558_v31 = vld [vmem:[%s7109_s2 + $0x3d4] ss:$8 sps:$4 sm:$0xff]  }
 0xb13   : > { %v1886_v18 = vadd.f32 %v5210_v55, %v1825_v59  ;;  %v1877_v33 = vpop.f32.mrb[69].mxu0  ;;  %v5556_v59 = vld [vmem:[%s7109_s2 + $0x3d0] ss:$8 sps:$4 sm:$0xff]  }
 0xb14   : > { %v1878_v60 = vadd.f32 %v1877_v33, %v1823_v49  ;;  %v5211_v61 = vpop.f32.mrb[70].mxu0  ;;  %2034 = vmatmul.mubr.bf16.vlgmr.msra.gmra.mrb[72].mxu1 %v1900_v30  ;;  %v5559_v49 = vld [vmem:[%s7109_s2 + $0x3e0] ss:$8 sps:$4 sm:$0xff]   ;;  %v5564_v30 = vld [vmem:[%s7109_s2 + $0x3f4] ss:$8 sps:$4 sm:$0xff]  }
 0xb15   : > { %v1889_v63 = vadd.f32 %v5211_v61, %v1826_v24  ;;  %v1880_v0 = vpop.f32.mrb[71].mxu0  ;;  %2043 = vmatprep.mubr.bf16.mxu1 %v5749_v2  ;;  %v1898_v7 = vmax.f32 %v1886_v18, 0.0  ;;  %v5562_v55 = vld [vmem:[%s7109_s2 + $0x3f0] ss:$8 sps:$4 sm:$0xff]   ;;  %v4683_v24 = vld [vmem:[%s7110_s3 + $0x6] ss:$0 sm:$0xff] }
 0xb16   : > { %v1881_v4 = vadd.f32 %v1880_v0, %v1824_v34  ;;  %v1896_v9 = vmax.f32 %v1878_v60, 0.0 }
 0xb17   : > { %v1899_v5 = vmax.f32 %v1889_v63, 0.0 }
 0xb18   : > { %v1897_v62 = vmax.f32 %v1881_v4, 0.0 }
 0xb19   : > { %v1903_v1 = vpack.c.bf16 %v1899_v5, %v1898_v7 }
 0xb1a   : > { %v1902_v14 = vpack.c.bf16 %v1897_v62, %v1896_v9 }
 0xb1c   : > { %2044 = vmatmul.mubr.bf16.gmra.mrb[76].mxu1 %v1901_v27  ;;  %v5561_v27 = vld [vmem:[%s7109_s2 + $0x3e4] ss:$8 sps:$4 sm:$0xff]  }
 0xb1d   : > { %2053 = vmatprep.mubr.bf16.mxu1 %v5749_v2 }
 0xb24   : > { %2054 = vmatmul.mubr.bf16.gmra.mrb[80].mxu1 %v1902_v14 }
 0xb25   : > { %2063 = vmatprep.mubr.bf16.mxu1 %v5749_v2 }
 0xb2c   : > { %2064 = vmatmul.mubr.bf16.gmra.mrb[84].mxu1 %v1903_v1 }
 0xb2d   : > { %5236 = vmatprep.mubr.msk.bf16.mxu1 %vm447_vm0, %v6387_v41 }
 0xbe7   : > { %v2035_v15 = vpop.f32.mrb[72].mxu1 }
 0xbe8   : > { %v6411_v17 = vpop.f32.mrb[73].mxu1 }
 0xbe9   : > { %v2039_v20 = vpop.f32.mrb[74].mxu1  ;;  %v2086_v33 = vadd.f32 %v4683_v24, %v6411_v17 }
 0xbea   : > { %v2074_v23 = vpack.c.bf16 %v2039_v20, %v2035_v15  ;;  %v6413_v29 = vpop.f32.mrb[75].mxu1 }
 0xbeb   : > { %v2087_v0 = vadd.f32 %v4683_v24, %v6413_v29 }
 0xbec   : > { %5212 = vmatprep.subr.bf16.mxu0 %v2074_v23 }
 0xbed   : > { %5213 = vmatpush3.bf16.msra.mxu0 %v2074_v23 }
 0xbef   : > { %v2045_v35 = vpop.f32.mrb[76].mxu1 }
 0xbf0   : > { %v2047_v36 = vpop.f32.mrb[77].mxu1 }
 0xbf1   : > { %v2049_v38 = vpop.f32.mrb[78].mxu1  ;;  %v2088_v18 = vadd.f32 %v4683_v24, %v2047_v36 }
 0xbf2   : > { %v2075_v19 = vpack.c.bf16 %v2049_v38, %v2045_v35  ;;  %v2051_v13 = vpop.f32.mrb[79].mxu1 }
 0xbf3   : > { %v2089_v60 = vadd.f32 %v4683_v24, %v2051_v13 }
 0xbf4   : > { %5214 = vmatprep.subr.bf16.mxu0 %v2075_v19 }
 0xbf5   : > { %5215 = vmatpush3.bf16.msra.mxu0 %v2075_v19 }
 0xbf7   : > { %v2055_v47 = vpop.f32.mrb[80].mxu1 }
 0xbf8   : > { %v6415_v48 = vpop.f32.mrb[81].mxu1 }
 0xbf9   : > { %v2059_v6 = vpop.f32.mrb[82].mxu1  ;;  %v2090_v23 = vadd.f32 %v4683_v24, %v6415_v48 }
 0xbfa   : > { %v2076_v21 = vpack.c.bf16 %v2059_v6, %v2055_v47  ;;  %v6417_v11 = vpop.f32.mrb[83].mxu1 }
 0xbfb   : > { %v2091_v38 = vadd.f32 %v4683_v24, %v6417_v11 }
 0xbfc   : > { %5216 = vmatprep.subr.bf16.mxu0 %v2076_v21 }
 0xbfd   : > { %5217 = vmatpush3.bf16.msra.mxu0 %v2076_v21 }
 0xbff   : > { %v2065_v50 = vpop.f32.mrb[84].mxu1 }
 0xc00   : > { %v2067_v39 = vpop.f32.mrb[85].mxu1 }
 0xc01   : > { %v2069_v51 = vpop.f32.mrb[86].mxu1  ;;  %v2092_v20 = vadd.f32 %v4683_v24, %v2067_v39 }
 0xc02   : > { %v2077_v10 = vpack.c.bf16 %v2069_v51, %v2065_v50  ;;  %v2071_v37 = vpop.f32.mrb[87].mxu1 }
 0xc03   : > { %v2093_v19 = vadd.f32 %v4683_v24, %v2071_v37  ;;  %v5576_v24 = vld [vmem:[%s7109_s2 + $0x434] ss:$8 sps:$4 sm:$0xff]  }
 0xc04   : > { %5218 = vmatprep.subr.bf16.mxu0 %v2077_v10 }
 0xc05   : > { %5219 = vmatpush3.bf16.msra.mxu0 %v2077_v10 }
 0xc06   : > { %2284 = vmatprep.subr.bf16.mxu0 %v5543_v53 }
 0xc08   : > { %5221 = vmatmul.mubr.msk.bf16.vlgmr.msra.gmra.mrb[72].mxu0 %vm447_vm0, %v6366_v25 }
 0xc09   : > { %5224 = vmatprep.mubr.msk.bf16.mxu0 %vm447_vm0, %v6373_v40  ;;  %2285 = vmatpush1.bf16.msra.mxu0 %v5541_v42 }
 0xc0a   : > { %2286 = vmatprep.subr.bf16.mxu0 %v5546_v52 }
 0xc0d   : > { %2287 = vmatpush1.bf16.msra.mxu0 %v5544_v54 }
 0xc0e   : > { %2288 = vmatprep.subr.bf16.mxu0 %v5549_v26 }
 0xc10   : > { %5225 = vmatmul.mubr.msk.bf16.gmra.mrb[76].mxu0 %vm447_vm0, %v6380_v16 }
 0xc11   : > { %2289 = vmatpush1.bf16.msra.mxu0 %v5547_v3  ;;  %2316 = vmatprep.mubr.bf16.mxu0 %v5749_v2 }
 0xc12   : > { %2290 = vmatprep.subr.bf16.mxu0 %v5552_v57 }
 0xc15   : > { %2291 = vmatpush1.bf16.msra.mxu0 %v5550_v28 }
 0xc16   : > { %2292 = vmatprep.subr.bf16.mxu0 %v5555_v44 }
 0xc19   : > { %2293 = vmatpush1.bf16.msra.mxu0 %v5553_v22 }
 0xc1a   : > { %2294 = vmatprep.subr.bf16.mxu0 %v5558_v31 }
 0xc1d   : > { %2295 = vmatpush1.bf16.msra.mxu0 %v5556_v59 }
 0xc1e   : > { %2296 = vmatprep.subr.bf16.mxu0 %v5561_v27  ;;  %v5570_v27 = vld [vmem:[%s7109_s2 + $0x414] ss:$8 sps:$4 sm:$0xff]  }
 0xc21   : > { %2297 = vmatpush1.bf16.msra.mxu0 %v5559_v49  ;;  %v5568_v49 = vld [vmem:[%s7109_s2 + $0x410] ss:$8 sps:$4 sm:$0xff]  }
 0xc22   : > { %2298 = vmatprep.subr.bf16.mxu0 %v5564_v30  ;;  %v5573_v30 = vld [vmem:[%s7109_s2 + $0x424] ss:$8 sps:$4 sm:$0xff]  }
 0xc25   : > { %2299 = vmatpush1.bf16.msra.mxu0 %v5562_v55  ;;  %v5571_v55 = vld [vmem:[%s7109_s2 + $0x420] ss:$8 sps:$4 sm:$0xff]  }
 0xcdb   : > { %v5222_v34 = vpop.f32.mrb[72].mxu0 }
 0xcdc   : > { %v2137_v61 = vadd.f32 %v5222_v34, %v2088_v18  ;;  %v2128_v63 = vpop.f32.mrb[73].mxu0  ;;  %v5574_v18 = vld [vmem:[%s7109_s2 + $0x430] ss:$8 sps:$4 sm:$0xff]   ;;  %v5577_v34 = vld [vmem:[%s7109_s2 + $0x440] ss:$8 sps:$4 sm:$0xff]  }
 0xcdd   : > { %v2129_v4 = vadd.f32 %v2128_v63, %v2086_v33  ;;  %v5223_v7 = vpop.f32.mrb[74].mxu0  ;;  %v5579_v33 = vld [vmem:[%s7109_s2 + $0x444] ss:$8 sps:$4 sm:$0xff]  }
 0xcde   : > { %v2140_v5 = vadd.f32 %v5223_v7, %v2089_v60  ;;  %v2131_v9 = vpop.f32.mrb[75].mxu0  ;;  %v2161_v47 = vmax.f32 %v2137_v61, 0.0  ;;  %v5582_v60 = vld [vmem:[%s7109_s2 + $0x454] ss:$8 sps:$4 sm:$0xff]   ;;  %v5580_v61 = vld [vmem:[%s7109_s2 + $0x450] ss:$8 sps:$4 sm:$0xff]  }
 0xcdf   : > { %v2159_v62 = vmax.f32 %v2129_v4, 0.0  ;;  %v2132_v1 = vadd.f32 %v2131_v9, %v2087_v0 }
 0xce0   : > { %v2162_v35 = vmax.f32 %v2140_v5, 0.0  ;;  %v2169_v11 = vadd.f32 %v2161_v47, %v6304_v12 }
 0xce1   : > { %v2167_v14 = vadd.f32 %v2159_v62, %v6293_v45  ;;  %v2160_v15 = vmax.f32 %v2132_v1, 0.0 }
 0xce2   : > { %v2170_v48 = vadd.f32 %v2162_v35, %v6302_v32  ;;  %v6494_v42 = vmul.f32 0.5, %v2169_v11 }
 0xce3   : > { %v2168_v17 = vadd.f32 %v2160_v15, %v6295_v46  ;;  %v5226_v36 = vpop.f32.mrb[76].mxu0  ;;  %v6483_v6 = vmul.f32 0.5, %v2167_v14 }
 0xce4   : > { %v2153_v29 = vadd.f32 %v5226_v36, %v2092_v20  ;;  %v2144_v13 = vpop.f32.mrb[77].mxu0  ;;  %v6492_v37 = vmul.f32 0.5, %v2170_v48  ;;  %v4721_v48 = vld [vmem:[%s7110_s3 + $0x7] ss:$0 sm:$0xff] }
 0xce5   : > { %v6485_v21 = vmul.f32 0.5, %v2168_v17  ;;  %v2145_v50 = vadd.f32 %v2144_v13, %v2090_v23  ;;  %v5227_v45 = vpop.f32.mrb[78].mxu0 }
 0xce6   : > { %v2156_v51 = vadd.f32 %v5227_v45, %v2093_v19  ;;  %v2147_v39 = vpop.f32.mrb[79].mxu0  ;;  %v2184_v32 = vpack.c.bf16 %v6492_v37, %v6494_v42  ;;  %v2165_v57 = vmax.f32 %v2153_v29, 0.0  ;;  %v5583_v45 = vld [vmem:[%s7109_s2 + $0x460] ss:$8 sps:$4 sm:$0xff]  }
 0xce7   : > { %v2183_v46 = vpack.c.bf16 %v6485_v21, %v6483_v6  ;;  %v2148_v10 = vadd.f32 %v2147_v39, %v2091_v38  ;;  %v2163_v52 = vmax.f32 %v2145_v50, 0.0  ;;  %v5585_v50 = vld [vmem:[%s7109_s2 + $0x464] ss:$8 sps:$4 sm:$0xff]   ;;  %v5586_v39 = vld [vmem:[%s7109_s2 + $0x470] ss:$8 sps:$4 sm:$0xff]  }
 0xce8   : > { %v2166_v12 = vmax.f32 %v2156_v51, 0.0  ;;  %v5588_v51 = vld [vmem:[%s7109_s2 + $0x474] ss:$8 sps:$4 sm:$0xff]  }
 0xce9   : > { %2317 = vmatmul.mubr.bf16.vlgmr.msra.gmra.mrb[80].mxu0 %v2183_v46  ;;  %v2164_v53 = vmax.f32 %v2148_v10, 0.0  ;;  %v2171_v26 = vadd.f32 %v2163_v52, %v6313_v56 }
 0xcea   : > { %2326 = vmatprep.mubr.bf16.mxu0 %v5749_v2  ;;  %v2174_v44 = vadd.f32 %v2166_v12, %v6320_v58  ;;  %v5565_v58 = vld [vmem:[%s7109_s2 + $0x400] ss:$8 sps:$4 sm:$0xff]  }
 0xceb   : > { %v2172_v54 = vadd.f32 %v2164_v53, %v6311_v8  ;;  %v6503_v28 = vmul.f32 0.5, %v2171_v26  ;;  %v2173_v8 = vadd.f32 %v2165_v57, %v6322_v43  ;;  %v5567_v43 = vld [vmem:[%s7109_s2 + $0x404] ss:$8 sps:$4 sm:$0xff]  }
 0xcec   : > { %v6510_v56 = vmul.f32 0.5, %v2174_v44  ;;  %2551 = vmatprep.subr.bf16.mxu0 %v5567_v43 }
 0xced   : > { %v6501_v3 = vmul.f32 0.5, %v2172_v54  ;;  %v6512_v31 = vmul.f32 0.5, %v2173_v8  ;;  %2552 = vmatpush1.bf16.msra.mxu0 %v5565_v58 }
 0xcee   : > { %2553 = vmatprep.subr.bf16.mxu0 %v5570_v27 }
 0xcef   : > { %v2185_v22 = vpack.c.bf16 %v6501_v3, %v6503_v28  ;;  %v2186_v59 = vpack.c.bf16 %v6510_v56, %v6512_v31 }
 0xcf1   : > { %2327 = vmatmul.mubr.bf16.gmra.mrb[84].mxu0 %v2184_v32 }
 0xcf2   : > { %2336 = vmatprep.mubr.bf16.mxu0 %v5749_v2  ;;  %2554 = vmatpush1.bf16.msra.mxu0 %v5568_v49 }
 0xcf3   : > { %2555 = vmatprep.subr.bf16.mxu0 %v5573_v30 }
 0xcf6   : > { %2556 = vmatpush1.bf16.msra.mxu0 %v5571_v55 }
 0xcf7   : > { %2557 = vmatprep.subr.bf16.mxu0 %v5576_v24 }
 0xcf9   : > { %2337 = vmatmul.mubr.bf16.gmra.mrb[88].mxu0 %v2185_v22 }
 0xcfa   : > { %2346 = vmatprep.mubr.bf16.mxu0 %v5749_v2  ;;  %2558 = vmatpush1.bf16.msra.mxu0 %v5574_v18 }
 0xcfb   : > { %2559 = vmatprep.subr.bf16.mxu0 %v5579_v33 }
 0xcfe   : > { %2560 = vmatpush1.bf16.msra.mxu0 %v5577_v34 }
 0xcff   : > { %2561 = vmatprep.subr.bf16.mxu0 %v5582_v60 }
 0xd01   : > { %2347 = vmatmul.mubr.bf16.gmra.mrb[92].mxu0 %v2186_v59 }
 0xd02   : > { %2583 = vmatprep.mubr.bf16.mxu0 %v5749_v2  ;;  %2562 = vmatpush1.bf16.msra.mxu0 %v5580_v61 }
 0xd03   : > { %2563 = vmatprep.subr.bf16.mxu0 %v5585_v50 }
 0xd06   : > { %2564 = vmatpush1.bf16.msra.mxu0 %v5583_v45 }
 0xd07   : > { %2565 = vmatprep.subr.bf16.mxu0 %v5588_v51 }
 0xd0a   : > { %2566 = vmatpush1.bf16.msra.mxu0 %v5586_v39 }
 0xdbc   : > { %v2318_v63 = vpop.f32.mrb[80].mxu0 }
 0xdbd   : > { %v2320_v0 = vpop.f32.mrb[81].mxu0 }
 0xdbe   : > { %v2322_v4 = vpop.f32.mrb[82].mxu0  ;;  %v2369_v10 = vadd.f32 %v4721_v48, %v2320_v0 }
 0xdbf   : > { %v2357_v7 = vpack.c.bf16 %v2322_v4, %v2318_v63  ;;  %v2324_v5 = vpop.f32.mrb[83].mxu0 }
 0xdc0   : > { %v2370_v32 = vadd.f32 %v4721_v48, %v2324_v5 }
 0xdc1   : > { %5228 = vmatprep.subr.bf16.mxu1 %v2357_v7 }
 0xdc2   : > { %5229 = vmatpush3.bf16.msra.mxu1 %v2357_v7 }
 0xdc4   : > { %v2328_v9 = vpop.f32.mrb[84].mxu0 }
 0xdc5   : > { %v2330_v62 = vpop.f32.mrb[85].mxu0 }
 0xdc6   : > { %v2332_v1 = vpop.f32.mrb[86].mxu0  ;;  %v2371_v46 = vadd.f32 %v4721_v48, %v2330_v62 }
 0xdc7   : > { %v2358_v14 = vpack.c.bf16 %v2332_v1, %v2328_v9  ;;  %v2334_v15 = vpop.f32.mrb[87].mxu0 }
 0xdc8   : > { %v2372_v53 = vadd.f32 %v4721_v48, %v2334_v15 }
 0xdc9   : > { %5230 = vmatprep.subr.bf16.mxu1 %v2358_v14 }
 0xdca   : > { %5231 = vmatpush3.bf16.msra.mxu1 %v2358_v14 }
 0xdcc   : > { %v2338_v20 = vpop.f32.mrb[88].mxu0 }
 0xdcd   : > { %v2340_v23 = vpop.f32.mrb[89].mxu0 }
 0xdce   : > { %v2342_v35 = vpop.f32.mrb[90].mxu0  ;;  %v2373_v30 = vadd.f32 %v4721_v48, %v2340_v23 }
 0xdcf   : > { %v2359_v17 = vpack.c.bf16 %v2342_v35, %v2338_v20  ;;  %v2344_v36 = vpop.f32.mrb[91].mxu0 }
 0xdd0   : > { %v2374_v60 = vadd.f32 %v4721_v48, %v2344_v36 }
 0xdd1   : > { %5232 = vmatprep.subr.bf16.mxu1 %v2359_v17 }
 0xdd2   : > { %5233 = vmatpush3.bf16.msra.mxu1 %v2359_v17 }
 0xdd4   : > { %v2348_v38 = vpop.f32.mrb[92].mxu0 }
 0xdd5   : > { %v2350_v19 = vpop.f32.mrb[93].mxu0 }
 0xdd6   : > { %v2352_v29 = vpop.f32.mrb[94].mxu0  ;;  %v2375_v27 = vadd.f32 %v4721_v48, %v2350_v19 }
 0xdd7   : > { %v2360_v13 = vpack.c.bf16 %v2352_v29, %v2348_v38  ;;  %v2354_v47 = vpop.f32.mrb[95].mxu0 }
 0xdd8   : > { %v2376_v18 = vadd.f32 %v4721_v48, %v2354_v47 }
 0xdd9   : > { %5234 = vmatprep.subr.bf16.mxu1 %v2360_v13 }
 0xdda   : > { %5235 = vmatpush3.bf16.msra.mxu1 %v2360_v13 }
 0xddd   : > { %5237 = vmatmul.mubr.msk.bf16.vlgmr.msra.gmra.mrb[88].mxu1 %vm447_vm0, %v6366_v25 }
 0xdde   : > { %5240 = vmatprep.mubr.msk.bf16.mxu1 %vm447_vm0, %v6373_v40 }
 0xde5   : > { %5241 = vmatmul.mubr.msk.bf16.gmra.mrb[92].mxu1 %vm447_vm0, %v6380_v16 }
 0xde6   : > { %5252 = vmatprep.mubr.msk.bf16.mxu1 %vm447_vm0, %v6387_v41 }
 0xeb0   : > { %v5238_v11 = vpop.f32.mrb[88].mxu1 }
 0xeb1   : > { %v2420_v52 = vadd.f32 %v5238_v11, %v2371_v46  ;;  %v2411_v54 = vpop.f32.mrb[89].mxu1 }
 0xeb2   : > { %v2412_v26 = vadd.f32 %v2411_v54, %v2369_v10  ;;  %v5239_v12 = vpop.f32.mrb[90].mxu1  ;;  %v5591_v54 = vld [vmem:[%s7109_s2 + $0x484] ss:$8 sps:$4 sm:$0xff]  }
 0xeb3   : > { %v2423_v57 = vadd.f32 %v5239_v12, %v2372_v53  ;;  %v2414_v44 = vpop.f32.mrb[91].mxu1  ;;  %v2444_v8 = vmax.f32 %v2420_v52, 0.0  ;;  %v5592_v12 = vld [vmem:[%s7109_s2 + $0x490] ss:$8 sps:$4 sm:$0xff]  }
 0xeb4   : > { %v2415_v22 = vadd.f32 %v2414_v44, %v2370_v32  ;;  %v2442_v58 = vmax.f32 %v2412_v26, 0.0  ;;  %v5589_v32 = vld [vmem:[%s7109_s2 + $0x480] ss:$8 sps:$4 sm:$0xff]   ;;  %v5594_v26 = vld [vmem:[%s7109_s2 + $0x494] ss:$8 sps:$4 sm:$0xff]  }
 0xeb5   : > { %v2445_v59 = vmax.f32 %v2423_v57, 0.0  ;;  %v5597_v57 = vld [vmem:[%s7109_s2 + $0x4a4] ss:$8 sps:$4 sm:$0xff]   ;;  %v5595_v44 = vld [vmem:[%s7109_s2 + $0x4a0] ss:$8 sps:$4 sm:$0xff]  }
 0xeb6   : > { %v2443_v43 = vmax.f32 %v2415_v22, 0.0  ;;  %v5600_v22 = vld [vmem:[%s7109_s2 + $0x4b4] ss:$8 sps:$4 sm:$0xff]  }
 0xeb7   : > { %v2451_v49 = vpack.c.bf16 %v2445_v59, %v2444_v8  ;;  %v5598_v8 = vld [vmem:[%s7109_s2 + $0x4b0] ss:$8 sps:$4 sm:$0xff]   ;;  %v5603_v59 = vld [vmem:[%s7109_s2 + $0x4c4] ss:$8 sps:$4 sm:$0xff]  }
 0xeb8   : > { %v2450_v55 = vpack.c.bf16 %v2443_v43, %v2442_v58  ;;  %v5242_v24 = vpop.f32.mrb[92].mxu1  ;;  %v5601_v58 = vld [vmem:[%s7109_s2 + $0x4c0] ss:$8 sps:$4 sm:$0xff]   ;;  %v5606_v43 = vld [vmem:[%s7109_s2 + $0x4d4] ss:$8 sps:$4 sm:$0xff]  }
 0xeb9   : > { %v2436_v33 = vadd.f32 %v5242_v24, %v2375_v27  ;;  %v2427_v34 = vpop.f32.mrb[93].mxu1  ;;  %v5604_v27 = vld [vmem:[%s7109_s2 + $0x4d0] ss:$8 sps:$4 sm:$0xff]  }
 0xeba   : > { %v2428_v61 = vadd.f32 %v2427_v34, %v2373_v30  ;;  %v5243_v63 = vpop.f32.mrb[94].mxu1  ;;  %2584 = vmatmul.mubr.bf16.vlgmr.msra.gmra.mrb[96].mxu0 %v2450_v55  ;;  %v5607_v30 = vld [vmem:[%s7109_s2 + $0x4e0] ss:$8 sps:$4 sm:$0xff]   ;;  %v5612_v55 = vld [vmem:[%s7109_s2 + $0x4f4] ss:$8 sps:$4 sm:$0xff]  }
 0xebb   : > { %v2439_v0 = vadd.f32 %v5243_v63, %v2376_v18  ;;  %v2430_v4 = vpop.f32.mrb[95].mxu1  ;;  %2593 = vmatprep.mubr.bf16.mxu0 %v5749_v2  ;;  %v2448_v5 = vmax.f32 %v2436_v33, 0.0  ;;  %v5610_v24 = vld [vmem:[%s7109_s2 + $0x4f0] ss:$8 sps:$4 sm:$0xff]   ;;  %v4759_v18 = vld [vmem:[%s7110_s3 + $0x8] ss:$0 sm:$0xff] }
 0xebc   : > { %v2431_v7 = vadd.f32 %v2430_v4, %v2374_v60  ;;  %v2446_v62 = vmax.f32 %v2428_v61, 0.0 }
 0xebd   : > { %v2449_v9 = vmax.f32 %v2439_v0, 0.0 }
 0xebe   : > { %v2447_v1 = vmax.f32 %v2431_v7, 0.0 }
 0xebf   : > { %v2453_v14 = vpack.c.bf16 %v2449_v9, %v2448_v5 }
 0xec0   : > { %v2452_v15 = vpack.c.bf16 %v2447_v1, %v2446_v62 }
 0xec2   : > { %2594 = vmatmul.mubr.bf16.gmra.mrb[100].mxu0 %v2451_v49  ;;  %v5609_v49 = vld [vmem:[%s7109_s2 + $0x4e4] ss:$8 sps:$4 sm:$0xff]  }
 0xec3   : > { %2603 = vmatprep.mubr.bf16.mxu0 %v5749_v2 }
 0xeca   : > { %2604 = vmatmul.mubr.bf16.gmra.mrb[104].mxu0 %v2452_v15 }
 0xecb   : > { %2613 = vmatprep.mubr.bf16.mxu0 %v5749_v2 }
 0xed2   : > { %2614 = vmatmul.mubr.bf16.gmra.mrb[108].mxu0 %v2453_v14 }
 0xed3   : > { %5268 = vmatprep.mubr.msk.bf16.mxu0 %vm447_vm0, %v6387_v41 }
 0xf8d   : > { %v2585_v20 = vpop.f32.mrb[96].mxu0 }
 0xf8e   : > { %v6581_v23 = vpop.f32.mrb[97].mxu0 }
 0xf8f   : > { %v2589_v35 = vpop.f32.mrb[98].mxu0  ;;  %v2636_v34 = vadd.f32 %v4759_v18, %v6581_v23 }
 0xf90   : > { %v2624_v17 = vpack.c.bf16 %v2589_v35, %v2585_v20  ;;  %v6583_v36 = vpop.f32.mrb[99].mxu0 }
 0xf91   : > { %v2637_v4 = vadd.f32 %v4759_v18, %v6583_v36 }
 0xf92   : > { %5244 = vmatprep.subr.bf16.mxu1 %v2624_v17 }
 0xf93   : > { %5245 = vmatpush3.bf16.msra.mxu1 %v2624_v17 }
 0xf95   : > { %v2595_v38 = vpop.f32.mrb[100].mxu0 }
 0xf96   : > { %v2597_v19 = vpop.f32.mrb[101].mxu0 }
 0xf97   : > { %v2599_v29 = vpop.f32.mrb[102].mxu0  ;;  %v2638_v33 = vadd.f32 %v4759_v18, %v2597_v19 }
 0xf98   : > { %v2625_v13 = vpack.c.bf16 %v2599_v29, %v2595_v38  ;;  %v2601_v47 = vpop.f32.mrb[103].mxu0 }
 0xf99   : > { %v2639_v61 = vadd.f32 %v4759_v18, %v2601_v47 }
 0xf9a   : > { %5246 = vmatprep.subr.bf16.mxu1 %v2625_v13 }
 0xf9b   : > { %5247 = vmatpush3.bf16.msra.mxu1 %v2625_v13 }
 0xf9d   : > { %v2605_v50 = vpop.f32.mrb[104].mxu0 }
 0xf9e   : > { %v6585_v45 = vpop.f32.mrb[105].mxu0 }
 0xf9f   : > { %v2609_v51 = vpop.f32.mrb[106].mxu0  ;;  %v2640_v17 = vadd.f32 %v4759_v18, %v6585_v45 }
 0xfa0   : > { %v2626_v39 = vpack.c.bf16 %v2609_v51, %v2605_v50  ;;  %v6587_v48 = vpop.f32.mrb[107].mxu0 }
 0xfa1   : > { %v2641_v29 = vadd.f32 %v4759_v18, %v6587_v48 }
 0xfa2   : > { %5248 = vmatprep.subr.bf16.mxu1 %v2626_v39 }
 0xfa3   : > { %5249 = vmatpush3.bf16.msra.mxu1 %v2626_v39 }
 0xfa5   : > { %v2615_v46 = vpop.f32.mrb[108].mxu0 }
 0xfa6   : > { %v2617_v10 = vpop.f32.mrb[109].mxu0 }
 0xfa7   : > { %v2619_v11 = vpop.f32.mrb[110].mxu0  ;;  %v2642_v35 = vadd.f32 %v4759_v18, %v2617_v10 }
 0xfa8   : > { %v2627_v53 = vpack.c.bf16 %v2619_v11, %v2615_v46  ;;  %v2621_v52 = vpop.f32.mrb[111].mxu0 }
 0xfa9   : > { %v2643_v13 = vadd.f32 %v4759_v18, %v2621_v52  ;;  %v5624_v18 = vld [vmem:[%s7109_s2 + $0x534] ss:$8 sps:$4 sm:$0xff]  }
 0xfaa   : > { %5250 = vmatprep.subr.bf16.mxu1 %v2627_v53 }
 0xfab   : > { %5251 = vmatpush3.bf16.msra.mxu1 %v2627_v53 }
 0xfac   : > { %2834 = vmatprep.subr.bf16.mxu1 %v5591_v54 }
 0xfae   : > { %5253 = vmatmul.mubr.msk.bf16.vlgmr.msra.gmra.mrb[96].mxu1 %vm447_vm0, %v6366_v25 }
 0xfaf   : > { %5256 = vmatprep.mubr.msk.bf16.mxu1 %vm447_vm0, %v6373_v40  ;;  %2835 = vmatpush1.bf16.msra.mxu1 %v5589_v32 }
 0xfb0   : > { %2836 = vmatprep.subr.bf16.mxu1 %v5594_v26 }
 0xfb3   : > { %2837 = vmatpush1.bf16.msra.mxu1 %v5592_v12 }
 0xfb4   : > { %2838 = vmatprep.subr.bf16.mxu1 %v5597_v57 }
 0xfb6   : > { %5257 = vmatmul.mubr.msk.bf16.gmra.mrb[100].mxu1 %vm447_vm0, %v6380_v16 }
 0xfb7   : > { %2839 = vmatpush1.bf16.msra.mxu1 %v5595_v44  ;;  %2866 = vmatprep.mubr.bf16.mxu1 %v5749_v2 }
 0xfb8   : > { %2840 = vmatprep.subr.bf16.mxu1 %v5600_v22 }
 0xfbb   : > { %2841 = vmatpush1.bf16.msra.mxu1 %v5598_v8 }
 0xfbc   : > { %2842 = vmatprep.subr.bf16.mxu1 %v5603_v59 }
 0xfbf   : > { %2843 = vmatpush1.bf16.msra.mxu1 %v5601_v58 }
 0xfc0   : > { %2844 = vmatprep.subr.bf16.mxu1 %v5606_v43 }
 0xfc3   : > { %2845 = vmatpush1.bf16.msra.mxu1 %v5604_v27 }
 0xfc4   : > { %2846 = vmatprep.subr.bf16.mxu1 %v5609_v49  ;;  %v5618_v49 = vld [vmem:[%s7109_s2 + $0x514] ss:$8 sps:$4 sm:$0xff]  }
 0xfc7   : > { %2847 = vmatpush1.bf16.msra.mxu1 %v5607_v30  ;;  %v5616_v30 = vld [vmem:[%s7109_s2 + $0x510] ss:$8 sps:$4 sm:$0xff]  }
 0xfc8   : > { %2848 = vmatprep.subr.bf16.mxu1 %v5612_v55  ;;  %v5621_v55 = vld [vmem:[%s7109_s2 + $0x524] ss:$8 sps:$4 sm:$0xff]  }
 0xfcb   : > { %2849 = vmatpush1.bf16.msra.mxu1 %v5610_v24  ;;  %v5619_v24 = vld [vmem:[%s7109_s2 + $0x520] ss:$8 sps:$4 sm:$0xff]  }
0x1081   : > { %v5254_v60 = vpop.f32.mrb[96].mxu1 }
0x1082   : > { %v2687_v63 = vadd.f32 %v5254_v60, %v2638_v33  ;;  %v2678_v0 = vpop.f32.mrb[97].mxu1  ;;  %v5622_v33 = vld [vmem:[%s7109_s2 + $0x530] ss:$8 sps:$4 sm:$0xff]   ;;  %v5625_v60 = vld [vmem:[%s7109_s2 + $0x540] ss:$8 sps:$4 sm:$0xff]  }
0x1083   : > { %v2679_v7 = vadd.f32 %v2678_v0, %v2636_v34  ;;  %v5255_v5 = vpop.f32.mrb[98].mxu1  ;;  %v5627_v34 = vld [vmem:[%s7109_s2 + $0x544] ss:$8 sps:$4 sm:$0xff]  }
0x1084   : > { %v2690_v9 = vadd.f32 %v5255_v5, %v2639_v61  ;;  %v2681_v62 = vpop.f32.mrb[99].mxu1  ;;  %v2711_v50 = vmax.f32 %v2687_v63, 0.0  ;;  %v5630_v61 = vld [vmem:[%s7109_s2 + $0x554] ss:$8 sps:$4 sm:$0xff]   ;;  %v5628_v63 = vld [vmem:[%s7109_s2 + $0x550] ss:$8 sps:$4 sm:$0xff]  }
0x1085   : > { %v2709_v1 = vmax.f32 %v2679_v7, 0.0  ;;  %v2682_v14 = vadd.f32 %v2681_v62, %v2637_v4 }
0x1086   : > { %v2712_v38 = vmax.f32 %v2690_v9, 0.0  ;;  %v2719_v48 = vadd.f32 %v2711_v50, %v6494_v42 }
0x1087   : > { %v2717_v15 = vadd.f32 %v2709_v1, %v6483_v6  ;;  %v2710_v20 = vmax.f32 %v2682_v14, 0.0 }
0x1088   : > { %v2720_v45 = vadd.f32 %v2712_v38, %v6492_v37  ;;  %v6664_v32 = vmul.f32 0.5, %v2719_v48 }
0x1089   : > { %v2718_v23 = vadd.f32 %v2710_v20, %v6485_v21  ;;  %v5258_v19 = vpop.f32.mrb[100].mxu1  ;;  %v6653_v51 = vmul.f32 0.5, %v2717_v15 }
0x108a   : > { %v2703_v36 = vadd.f32 %v5258_v19, %v2642_v35  ;;  %v2694_v47 = vpop.f32.mrb[101].mxu1  ;;  %v6662_v52 = vmul.f32 0.5, %v2720_v45 }
0x108b   : > { %v6655_v39 = vmul.f32 0.5, %v2718_v23  ;;  %v2695_v46 = vadd.f32 %v2694_v47, %v2640_v17  ;;  %v5259_v6 = vpop.f32.mrb[102].mxu1 }
0x108c   : > { %v2706_v11 = vadd.f32 %v5259_v6, %v2643_v13  ;;  %v2697_v10 = vpop.f32.mrb[103].mxu1  ;;  %v2734_v37 = vpack.c.bf16 %v6662_v52, %v6664_v32  ;;  %v2715_v22 = vmax.f32 %v2703_v36, 0.0  ;;  %v5631_v6 = vld [vmem:[%s7109_s2 + $0x560] ss:$8 sps:$4 sm:$0xff]  }
0x108d   : > { %v2733_v21 = vpack.c.bf16 %v6655_v39, %v6653_v51  ;;  %v2698_v53 = vadd.f32 %v2697_v10, %v2641_v29  ;;  %v2713_v26 = vmax.f32 %v2695_v46, 0.0  ;;  %v5633_v46 = vld [vmem:[%s7109_s2 + $0x564] ss:$8 sps:$4 sm:$0xff]  }
0x108e   : > { %v2716_v42 = vmax.f32 %v2706_v11, 0.0 }
0x108f   : > { %2867 = vmatmul.mubr.bf16.vlgmr.msra.gmra.mrb[104].mxu1 %v2733_v21  ;;  %v2714_v54 = vmax.f32 %v2698_v53, 0.0  ;;  %v2721_v57 = vadd.f32 %v2713_v26, %v6503_v28 }
0x1090   : > { %2876 = vmatprep.mubr.bf16.mxu1 %v5749_v2  ;;  %v2724_v59 = vadd.f32 %v2716_v42, %v6510_v56  ;;  %v5613_v56 = vld [vmem:[%s7109_s2 + $0x500] ss:$8 sps:$4 sm:$0xff]  }
0x1091   : > { %v2722_v12 = vadd.f32 %v2714_v54, %v6501_v3  ;;  %v6673_v8 = vmul.f32 0.5, %v2721_v57  ;;  %v2723_v3 = vadd.f32 %v2715_v22, %v6512_v31  ;;  %v5615_v31 = vld [vmem:[%s7109_s2 + $0x504] ss:$8 sps:$4 sm:$0xff]  }
0x1092   : > { %v6680_v28 = vmul.f32 0.5, %v2724_v59  ;;  %3101 = vmatprep.subr.bf16.mxu1 %v5615_v31 }
0x1093   : > { %v6671_v44 = vmul.f32 0.5, %v2722_v12  ;;  %v6682_v43 = vmul.f32 0.5, %v2723_v3  ;;  %3102 = vmatpush1.bf16.msra.mxu1 %v5613_v56 }
0x1094   : > { %3103 = vmatprep.subr.bf16.mxu1 %v5618_v49 }
0x1095   : > { %v2735_v58 = vpack.c.bf16 %v6671_v44, %v6673_v8  ;;  %v2736_v27 = vpack.c.bf16 %v6680_v28, %v6682_v43 }
0x1097   : > { %2877 = vmatmul.mubr.bf16.gmra.mrb[108].mxu1 %v2734_v37 }
0x1098   : > { %2886 = vmatprep.mubr.bf16.mxu1 %v5749_v2  ;;  %3104 = vmatpush1.bf16.msra.mxu1 %v5616_v30 }
0x1099   : > { %3105 = vmatprep.subr.bf16.mxu1 %v5621_v55 }
0x109c   : > { %3106 = vmatpush1.bf16.msra.mxu1 %v5619_v24 }
0x109d   : > { %3107 = vmatprep.subr.bf16.mxu1 %v5624_v18 }
0x109f   : > { %2887 = vmatmul.mubr.bf16.gmra.mrb[112].mxu1 %v2735_v58 }
0x10a0   : > { %2896 = vmatprep.mubr.bf16.mxu1 %v5749_v2  ;;  %3108 = vmatpush1.bf16.msra.mxu1 %v5622_v33 }
0x10a1   : > { %3109 = vmatprep.subr.bf16.mxu1 %v5627_v34 }
0x10a4   : > { %3110 = vmatpush1.bf16.msra.mxu1 %v5625_v60 }
0x10a5   : > { %3111 = vmatprep.subr.bf16.mxu1 %v5630_v61 }
0x10a7   : > { %2897 = vmatmul.mubr.bf16.gmra.mrb[116].mxu1 %v2736_v27 }
0x10a8   : > { %3133 = vmatprep.mubr.bf16.mxu1 %v5749_v2  ;;  %3112 = vmatpush1.bf16.msra.mxu1 %v5628_v63 }
0x10a9   : > { %3113 = vmatprep.subr.bf16.mxu1 %v5633_v46 }
0x10ac   : > { %3114 = vmatpush1.bf16.msra.mxu1 %v5631_v6 }
0x1162   : > { %v2868_v0 = vpop.f32.mrb[104].mxu1 }
0x1163   : > { %v2870_v4 = vpop.f32.mrb[105].mxu1 }
0x1164   : > { %v2872_v7 = vpop.f32.mrb[106].mxu1 }
0x1165   : > { %v2907_v5 = vpack.c.bf16 %v2872_v7, %v2868_v0  ;;  %v2874_v9 = vpop.f32.mrb[107].mxu1 }
0x1167   : > { %5260 = vmatprep.subr.bf16.mxu0 %v2907_v5 }
0x1168   : > { %5261 = vmatpush3.bf16.msra.mxu0 %v2907_v5 }
0x116a   : > { %v2878_v62 = vpop.f32.mrb[108].mxu1 }
0x116b   : > { %v2880_v1 = vpop.f32.mrb[109].mxu1 }
0x116c   : > { %v2882_v14 = vpop.f32.mrb[110].mxu1 }
0x116d   : > { %v2908_v15 = vpack.c.bf16 %v2882_v14, %v2878_v62  ;;  %v2884_v20 = vpop.f32.mrb[111].mxu1 }
0x116f   : > { %5262 = vmatprep.subr.bf16.mxu0 %v2908_v15 }
0x1170   : > { %5263 = vmatpush3.bf16.msra.mxu0 %v2908_v15 }
0x1172   : > { %v2888_v35 = vpop.f32.mrb[112].mxu1 }
0x1173   : > { %v2890_v17 = vpop.f32.mrb[113].mxu1 }
0x1174   : > { %v2892_v38 = vpop.f32.mrb[114].mxu1 }
0x1175   : > { %v2909_v23 = vpack.c.bf16 %v2892_v38, %v2888_v35  ;;  %v2894_v19 = vpop.f32.mrb[115].mxu1 }
0x1177   : > { %5264 = vmatprep.subr.bf16.mxu0 %v2909_v23 }
0x1178   : > { %5265 = vmatpush3.bf16.msra.mxu0 %v2909_v23 }
0x117a   : > { %v2898_v29 = vpop.f32.mrb[116].mxu1 }
0x117b   : > { %v2900_v13 = vpop.f32.mrb[117].mxu1 }
0x117c   : > { %v2902_v36 = vpop.f32.mrb[118].mxu1 }
0x117d   : > { %v2910_v47 = vpack.c.bf16 %v2902_v36, %v2898_v29  ;;  %v2904_v50 = vpop.f32.mrb[119].mxu1 }
0x117f   : > { %5266 = vmatprep.subr.bf16.mxu0 %v2910_v47 }
0x1180   : > { %5267 = vmatpush3.bf16.msra.mxu0 %v2910_v47 }
0x1183   : > { %5269 = vmatmul.mubr.msk.bf16.vlgmr.msra.gmra.mrb[112].mxu0 %vm447_vm0, %v6366_v25  ;;  %v5636_v25 = vld [vmem:[%s7109_s2 + $0x574] ss:$8 sps:$4 sm:$0xff]  }
0x1184   : > { %5272 = vmatprep.mubr.msk.bf16.mxu0 %vm447_vm0, %v6373_v40  ;;  %v5634_v40 = vld [vmem:[%s7109_s2 + $0x570] ss:$8 sps:$4 sm:$0xff]   ;;  %3115 = vmatprep.subr.bf16.mxu1 %v5636_v25 }
0x1185   : > { %3116 = vmatpush1.bf16.msra.mxu1 %v5634_v40 }
0x118b   : > { %5273 = vmatmul.mubr.msk.bf16.gmra.mrb[116].mxu0 %vm447_vm0, %v6380_v16  ;;  %v4797_v16 = vld [vmem:[%s7110_s3 + $0x9] ss:$0 sm:$0xff] }
0x118c   : > { %5284 = vmatprep.mubr.msk.bf16.mxu0 %vm447_vm0, %v6387_v41  ;;  %v2921_v41 = vadd.f32 %v4797_v16, %v2880_v1  ;;  %v2919_v11 = vadd.f32 %v4797_v16, %v2870_v4  ;;  %v2922_v45 = vadd.f32 %v4797_v16, %v2884_v20  ;;  %v2920_v48 = vadd.f32 %v4797_v16, %v2874_v9  ;;  %v6752_v1 = vld [vmem:[%s7108_s1] sm:$0xff]  }
0x118d   : > { %v2925_v3 = vadd.f32 %v4797_v16, %v2900_v13  ;;  %v2923_v56 = vadd.f32 %v4797_v16, %v2890_v17  ;;  %v2926_v30 = vadd.f32 %v4797_v16, %v2904_v50  ;;  %v2924_v18 = vadd.f32 %v4797_v16, %v2894_v19 }
0x1256   : > { %v5270_v10 = vpop.f32.mrb[112].mxu0 }
0x1257   : > { %v2970_v21 = vadd.f32 %v5270_v10, %v2921_v41  ;;  %v2961_v53 = vpop.f32.mrb[113].mxu0  ;;  %v5639_v10 = vld [vmem:[%s7109_s2 + $0x584] ss:$8 sps:$4 sm:$0xff]  }
0x1258   : > { %v2962_v54 = vadd.f32 %v2961_v53, %v2919_v11  ;;  %v5271_v26 = vpop.f32.mrb[114].mxu0  ;;  %v6778_v53 = vld [vmem:[%s7108_s1 + $0x8] sm:$0xff]  }
0x1259   : > { %v2973_v12 = vadd.f32 %v5271_v26, %v2922_v45  ;;  %v2964_v37 = vpop.f32.mrb[115].mxu0  ;;  %v2994_v42 = vmax.f32 %v2970_v21, 0.0  ;;  %v5637_v45 = vld [vmem:[%s7109_s2 + $0x580] ss:$8 sps:$4 sm:$0xff]   ;;  %v5642_v21 = vld [vmem:[%s7109_s2 + $0x594] ss:$8 sps:$4 sm:$0xff]  }
0x125a   : > { %v2965_v57 = vadd.f32 %v2964_v37, %v2920_v48  ;;  %v2992_v59 = vmax.f32 %v2962_v54, 0.0  ;;  %v6785_v48 = vld [vmem:[%s7108_s1 + $0x10] sm:$0xff]   ;;  %v5645_v26 = vld [vmem:[%s7109_s2 + $0x5a4] ss:$8 sps:$4 sm:$0xff]  }
0x125b   : > { %v2995_v22 = vmax.f32 %v2973_v12, 0.0  ;;  %v5640_v54 = vld [vmem:[%s7109_s2 + $0x590] ss:$8 sps:$4 sm:$0xff]   ;;  %v5643_v12 = vld [vmem:[%s7109_s2 + $0x5a0] ss:$8 sps:$4 sm:$0xff]  }
0x125c   : > { %v2993_v58 = vmax.f32 %v2965_v57, 0.0  ;;  %v5648_v37 = vld [vmem:[%s7109_s2 + $0x5b4] ss:$8 sps:$4 sm:$0xff]  }
0x125d   : > { %v3001_v27 = vpack.c.bf16 %v2995_v22, %v2994_v42  ;;  %v6804_v57 = vld [vmem:[%s7108_s1 + $0x18] sm:$0xff]   ;;  %v5651_v22 = vld [vmem:[%s7109_s2 + $0x5c4] ss:$8 sps:$4 sm:$0xff]  }
0x125e   : > { %v3000_v31 = vpack.c.bf16 %v2993_v58, %v2992_v59  ;;  %v5274_v49 = vpop.f32.mrb[116].mxu0  ;;  %v5646_v42 = vld [vmem:[%s7109_s2 + $0x5b0] ss:$8 sps:$4 sm:$0xff]   ;;  %v5649_v59 = vld [vmem:[%s7109_s2 + $0x5c0] ss:$8 sps:$4 sm:$0xff]  }
0x125f   : > { %v2986_v55 = vadd.f32 %v5274_v49, %v2925_v3  ;;  %v2977_v24 = vpop.f32.mrb[117].mxu0  ;;  %v5654_v58 = vld [vmem:[%s7109_s2 + $0x5d4] ss:$8 sps:$4 sm:$0xff]   ;;  %v5652_v3 = vld [vmem:[%s7109_s2 + $0x5d0] ss:$8 sps:$4 sm:$0xff]  }
0x1260   : > { %v2978_v33 = vadd.f32 %v2977_v24, %v2923_v56  ;;  %v5275_v34 = vpop.f32.mrb[118].mxu0  ;;  %3134 = vmatmul.mubr.bf16.vlgmr.msra.gmra.mrb[120].mxu1 %v3000_v31  ;;  %v5655_v56 = vld [vmem:[%s7109_s2 + $0x5e0] ss:$8 sps:$4 sm:$0xff]   ;;  %v5660_v31 = vld [vmem:[%s7109_s2 + $0x5f4] ss:$8 sps:$4 sm:$0xff]  }
0x1261   : > { %v2989_v60 = vadd.f32 %v5275_v34, %v2926_v30  ;;  %v2980_v61 = vpop.f32.mrb[119].mxu0  ;;  %3143 = vmatprep.mubr.bf16.mxu1 %v5749_v2  ;;  %v2998_v0 = vmax.f32 %v2986_v55, 0.0  ;;  %v5658_v49 = vld [vmem:[%s7109_s2 + $0x5f0] ss:$8 sps:$4 sm:$0xff]   ;;  %v4835_v30 = vld [vmem:[%s7110_s3 + $0xa] ss:$0 sm:$0xff] }
0x1262   : > { %v2981_v63 = vadd.f32 %v2980_v61, %v2924_v18  ;;  %v2996_v7 = vmax.f32 %v2978_v33, 0.0 }
0x1263   : > { %v2999_v4 = vmax.f32 %v2989_v60, 0.0 }
0x1264   : > { %v2997_v5 = vmax.f32 %v2981_v63, 0.0 }
0x1265   : > { %v3003_v9 = vpack.c.bf16 %v2999_v4, %v2998_v0 }
0x1266   : > { %v3002_v62 = vpack.c.bf16 %v2997_v5, %v2996_v7 }
0x1268   : > { %3144 = vmatmul.mubr.bf16.gmra.mrb[124].mxu1 %v3001_v27  ;;  %v5657_v27 = vld [vmem:[%s7109_s2 + $0x5e4] ss:$8 sps:$4 sm:$0xff]  }
0x1269   : > { %3153 = vmatprep.mubr.bf16.mxu1 %v5749_v2 }
0x1270   : > { %3154 = vmatmul.mubr.bf16.gmra.mrb[128].mxu1 %v3002_v62 }
0x1271   : > { %3163 = vmatprep.mubr.bf16.mxu1 %v5749_v2 }
0x1278   : > { %3164 = vmatmul.mubr.bf16.gmra.mrb[132].mxu1 %v3003_v9 }
0x1279   : > { %5300 = vmatprep.mubr.msk.bf16.mxu1 %vm447_vm0, %v6752_v1 }
0x1333   : > { %v3135_v14 = vpop.f32.mrb[120].mxu1 }
0x1334   : > { %v6756_v15 = vpop.f32.mrb[121].mxu1 }
0x1335   : > { %v3139_v20 = vpop.f32.mrb[122].mxu1  ;;  %v3186_v24 = vadd.f32 %v4835_v30, %v6756_v15 }
0x1336   : > { %v3174_v35 = vpack.c.bf16 %v3139_v20, %v3135_v14  ;;  %v6758_v17 = vpop.f32.mrb[123].mxu1 }
0x1337   : > { %v3187_v61 = vadd.f32 %v4835_v30, %v6758_v17 }
0x1338   : > { %5276 = vmatprep.subr.bf16.mxu0 %v3174_v35 }
0x1339   : > { %5277 = vmatpush3.bf16.msra.mxu0 %v3174_v35 }
0x133b   : > { %v3145_v38 = vpop.f32.mrb[124].mxu1 }
0x133c   : > { %v3147_v23 = vpop.f32.mrb[125].mxu1 }
0x133d   : > { %v3149_v19 = vpop.f32.mrb[126].mxu1  ;;  %v3188_v55 = vadd.f32 %v4835_v30, %v3147_v23 }
0x133e   : > { %v3175_v29 = vpack.c.bf16 %v3149_v19, %v3145_v38  ;;  %v3151_v13 = vpop.f32.mrb[127].mxu1 }
0x133f   : > { %v3189_v33 = vadd.f32 %v4835_v30, %v3151_v13 }
0x1340   : > { %5278 = vmatprep.subr.bf16.mxu0 %v3175_v29 }
0x1341   : > { %5279 = vmatpush3.bf16.msra.mxu0 %v3175_v29 }
0x1343   : > { %v3155_v36 = vpop.f32.mrb[128].mxu1 }
0x1344   : > { %v6760_v47 = vpop.f32.mrb[129].mxu1 }
0x1345   : > { %v3159_v50 = vpop.f32.mrb[130].mxu1  ;;  %v3190_v35 = vadd.f32 %v4835_v30, %v6760_v47 }
0x1346   : > { %v3176_v46 = vpack.c.bf16 %v3159_v50, %v3155_v36  ;;  %v6762_v6 = vpop.f32.mrb[131].mxu1 }
0x1347   : > { %v3191_v19 = vadd.f32 %v4835_v30, %v6762_v6 }
0x1348   : > { %5280 = vmatprep.subr.bf16.mxu0 %v3176_v46 }
0x1349   : > { %5281 = vmatpush3.bf16.msra.mxu0 %v3176_v46 }
0x134b   : > { %v3165_v25 = vpop.f32.mrb[132].mxu1 }
0x134c   : > { %v3167_v40 = vpop.f32.mrb[133].mxu1 }
0x134d   : > { %v3169_v16 = vpop.f32.mrb[134].mxu1  ;;  %v3192_v20 = vadd.f32 %v4835_v30, %v3167_v40 }
0x134e   : > { %v3177_v41 = vpack.c.bf16 %v3169_v16, %v3165_v25  ;;  %v6764_v11 = vpop.f32.mrb[135].mxu1 }
0x134f   : > { %v3193_v17 = vadd.f32 %v4835_v30, %v6764_v11  ;;  %v5672_v30 = vld [vmem:[%s7109_s2 + $0x634] ss:$8 sps:$4 sm:$0xff]  }
0x1350   : > { %5282 = vmatprep.subr.bf16.mxu0 %v3177_v41 }
0x1351   : > { %5283 = vmatpush3.bf16.msra.mxu0 %v3177_v41 }
0x1352   : > { %3384 = vmatprep.subr.bf16.mxu0 %v5639_v10 }
0x1354   : > { %5285 = vmatmul.mubr.msk.bf16.vlgmr.msra.gmra.mrb[120].mxu0 %vm447_vm0, %v6778_v53 }
0x1355   : > { %5288 = vmatprep.mubr.msk.bf16.mxu0 %vm447_vm0, %v6785_v48  ;;  %3385 = vmatpush1.bf16.msra.mxu0 %v5637_v45 }
0x1356   : > { %3386 = vmatprep.subr.bf16.mxu0 %v5642_v21 }
0x1359   : > { %3387 = vmatpush1.bf16.msra.mxu0 %v5640_v54 }
0x135a   : > { %3388 = vmatprep.subr.bf16.mxu0 %v5645_v26 }
0x135c   : > { %5289 = vmatmul.mubr.msk.bf16.gmra.mrb[124].mxu0 %vm447_vm0, %v6804_v57 }
0x135d   : > { %3389 = vmatpush1.bf16.msra.mxu0 %v5643_v12  ;;  %3416 = vmatprep.mubr.bf16.mxu0 %v5749_v2 }
0x135e   : > { %3390 = vmatprep.subr.bf16.mxu0 %v5648_v37 }
0x1361   : > { %3391 = vmatpush1.bf16.msra.mxu0 %v5646_v42 }
0x1362   : > { %3392 = vmatprep.subr.bf16.mxu0 %v5651_v22 }
0x1365   : > { %3393 = vmatpush1.bf16.msra.mxu0 %v5649_v59 }
0x1366   : > { %3394 = vmatprep.subr.bf16.mxu0 %v5654_v58 }
0x1369   : > { %3395 = vmatpush1.bf16.msra.mxu0 %v5652_v3 }
0x136a   : > { %3396 = vmatprep.subr.bf16.mxu0 %v5657_v27  ;;  %v5666_v27 = vld [vmem:[%s7109_s2 + $0x614] ss:$8 sps:$4 sm:$0xff]  }
0x136d   : > { %3397 = vmatpush1.bf16.msra.mxu0 %v5655_v56  ;;  %v5664_v56 = vld [vmem:[%s7109_s2 + $0x610] ss:$8 sps:$4 sm:$0xff]  }
0x136e   : > { %3398 = vmatprep.subr.bf16.mxu0 %v5660_v31  ;;  %v5669_v31 = vld [vmem:[%s7109_s2 + $0x624] ss:$8 sps:$4 sm:$0xff]  }
0x1371   : > { %3399 = vmatpush1.bf16.msra.mxu0 %v5658_v49  ;;  %v5667_v49 = vld [vmem:[%s7109_s2 + $0x620] ss:$8 sps:$4 sm:$0xff]  }
0x1427   : > { %v5286_v18 = vpop.f32.mrb[120].mxu0 }
0x1428   : > { %v3237_v34 = vadd.f32 %v5286_v18, %v3188_v55  ;;  %v3228_v60 = vpop.f32.mrb[121].mxu0  ;;  %v5670_v55 = vld [vmem:[%s7109_s2 + $0x630] ss:$8 sps:$4 sm:$0xff]   ;;  %v5673_v18 = vld [vmem:[%s7109_s2 + $0x640] ss:$8 sps:$4 sm:$0xff]  }
0x1429   : > { %v3229_v63 = vadd.f32 %v3228_v60, %v3186_v24  ;;  %v5287_v0 = vpop.f32.mrb[122].mxu0  ;;  %v5675_v24 = vld [vmem:[%s7109_s2 + $0x644] ss:$8 sps:$4 sm:$0xff]  }
0x142a   : > { %v3240_v4 = vadd.f32 %v5287_v0, %v3189_v33  ;;  %v3231_v7 = vpop.f32.mrb[123].mxu0  ;;  %v3261_v36 = vmax.f32 %v3237_v34, 0.0  ;;  %v5678_v33 = vld [vmem:[%s7109_s2 + $0x654] ss:$8 sps:$4 sm:$0xff]   ;;  %v5676_v34 = vld [vmem:[%s7109_s2 + $0x650] ss:$8 sps:$4 sm:$0xff]  }
0x142b   : > { %v3259_v5 = vmax.f32 %v3229_v63, 0.0  ;;  %v3232_v9 = vadd.f32 %v3231_v7, %v3187_v61 }
0x142c   : > { %v3262_v38 = vmax.f32 %v3240_v4, 0.0  ;;  %v3269_v6 = vadd.f32 %v3261_v36, %v6664_v32 }
0x142d   : > { %v3267_v62 = vadd.f32 %v3259_v5, %v6653_v51  ;;  %v3260_v14 = vmax.f32 %v3232_v9, 0.0 }
0x142e   : > { %v3270_v47 = vadd.f32 %v3262_v38, %v6662_v52  ;;  %v6857_v45 = vmul.f32 0.5, %v3269_v6 }
0x142f   : > { %v3268_v15 = vadd.f32 %v3260_v14, %v6655_v39  ;;  %v5290_v23 = vpop.f32.mrb[124].mxu0  ;;  %v6846_v50 = vmul.f32 0.5, %v3267_v62 }
0x1430   : > { %v3253_v29 = vadd.f32 %v5290_v23, %v3192_v20  ;;  %v3244_v13 = vpop.f32.mrb[125].mxu0  ;;  %v6855_v11 = vmul.f32 0.5, %v3270_v47  ;;  %v4873_v47 = vld [vmem:[%s7110_s3 + $0xb] ss:$0 sm:$0xff] }
0x1431   : > { %v6848_v46 = vmul.f32 0.5, %v3268_v15  ;;  %v3245_v51 = vadd.f32 %v3244_v13, %v3190_v35  ;;  %v5291_v25 = vpop.f32.mrb[126].mxu0 }
0x1432   : > { %v3256_v40 = vadd.f32 %v5291_v25, %v3193_v17  ;;  %v3247_v16 = vpop.f32.mrb[127].mxu0  ;;  %v3284_v52 = vpack.c.bf16 %v6855_v11, %v6857_v45  ;;  %v3265_v37 = vmax.f32 %v3253_v29, 0.0  ;;  %v5679_v25 = vld [vmem:[%s7109_s2 + $0x660] ss:$8 sps:$4 sm:$0xff]  }
0x1433   : > { %v3283_v39 = vpack.c.bf16 %v6848_v46, %v6846_v50  ;;  %v3248_v41 = vadd.f32 %v3247_v16, %v3191_v19  ;;  %v3263_v21 = vmax.f32 %v3245_v51, 0.0  ;;  %v5681_v51 = vld [vmem:[%s7109_s2 + $0x664] ss:$8 sps:$4 sm:$0xff]   ;;  %v5682_v16 = vld [vmem:[%s7109_s2 + $0x670] ss:$8 sps:$4 sm:$0xff]  }
0x1434   : > { %v3266_v32 = vmax.f32 %v3256_v40, 0.0  ;;  %v5684_v40 = vld [vmem:[%s7109_s2 + $0x674] ss:$8 sps:$4 sm:$0xff]  }
0x1435   : > { %3417 = vmatmul.mubr.bf16.vlgmr.msra.gmra.mrb[128].mxu0 %v3283_v39  ;;  %v3264_v10 = vmax.f32 %v3248_v41, 0.0  ;;  %v3271_v26 = vadd.f32 %v3263_v21, %v6673_v8 }
0x1436   : > { %3426 = vmatprep.mubr.bf16.mxu0 %v5749_v2  ;;  %v3274_v22 = vadd.f32 %v3266_v32, %v6680_v28  ;;  %v5661_v28 = vld [vmem:[%s7109_s2 + $0x600] ss:$8 sps:$4 sm:$0xff]  }
0x1437   : > { %v3272_v54 = vadd.f32 %v3264_v10, %v6671_v44  ;;  %v6866_v42 = vmul.f32 0.5, %v3271_v26  ;;  %v3273_v44 = vadd.f32 %v3265_v37, %v6682_v43  ;;  %v5663_v43 = vld [vmem:[%s7109_s2 + $0x604] ss:$8 sps:$4 sm:$0xff]  }
0x1438   : > { %v6873_v8 = vmul.f32 0.5, %v3274_v22  ;;  %3651 = vmatprep.subr.bf16.mxu0 %v5663_v43 }
0x1439   : > { %v6864_v12 = vmul.f32 0.5, %v3272_v54  ;;  %v6875_v58 = vmul.f32 0.5, %v3273_v44  ;;  %3652 = vmatpush1.bf16.msra.mxu0 %v5661_v28 }
0x143a   : > { %3653 = vmatprep.subr.bf16.mxu0 %v5666_v27 }
0x143b   : > { %v3285_v59 = vpack.c.bf16 %v6864_v12, %v6866_v42  ;;  %v3286_v3 = vpack.c.bf16 %v6873_v8, %v6875_v58 }
0x143d   : > { %3427 = vmatmul.mubr.bf16.gmra.mrb[132].mxu0 %v3284_v52 }
0x143e   : > { %3436 = vmatprep.mubr.bf16.mxu0 %v5749_v2  ;;  %3654 = vmatpush1.bf16.msra.mxu0 %v5664_v56 }
0x143f   : > { %3655 = vmatprep.subr.bf16.mxu0 %v5669_v31 }
0x1442   : > { %3656 = vmatpush1.bf16.msra.mxu0 %v5667_v49 }
0x1443   : > { %3657 = vmatprep.subr.bf16.mxu0 %v5672_v30 }
0x1445   : > { %3437 = vmatmul.mubr.bf16.gmra.mrb[136].mxu0 %v3285_v59 }
0x1446   : > { %3446 = vmatprep.mubr.bf16.mxu0 %v5749_v2  ;;  %3658 = vmatpush1.bf16.msra.mxu0 %v5670_v55 }
0x1447   : > { %3659 = vmatprep.subr.bf16.mxu0 %v5675_v24 }
0x144a   : > { %3660 = vmatpush1.bf16.msra.mxu0 %v5673_v18 }
0x144b   : > { %3661 = vmatprep.subr.bf16.mxu0 %v5678_v33 }
0x144d   : > { %3447 = vmatmul.mubr.bf16.gmra.mrb[140].mxu0 %v3286_v3 }
0x144e   : > { %3683 = vmatprep.mubr.bf16.mxu0 %v5749_v2  ;;  %3662 = vmatpush1.bf16.msra.mxu0 %v5676_v34 }
0x144f   : > { %3663 = vmatprep.subr.bf16.mxu0 %v5681_v51 }
0x1452   : > { %3664 = vmatpush1.bf16.msra.mxu0 %v5679_v25 }
0x1453   : > { %3665 = vmatprep.subr.bf16.mxu0 %v5684_v40 }
0x1456   : > { %3666 = vmatpush1.bf16.msra.mxu0 %v5682_v16 }
0x1508   : > { %v3418_v60 = vpop.f32.mrb[128].mxu0 }
0x1509   : > { %v3420_v61 = vpop.f32.mrb[129].mxu0 }
0x150a   : > { %v3422_v63 = vpop.f32.mrb[130].mxu0  ;;  %v3469_v41 = vadd.f32 %v4873_v47, %v3420_v61 }
0x150b   : > { %v3457_v0 = vpack.c.bf16 %v3422_v63, %v3418_v60  ;;  %v3424_v4 = vpop.f32.mrb[131].mxu0 }
0x150c   : > { %v3470_v52 = vadd.f32 %v4873_v47, %v3424_v4 }
0x150d   : > { %5292 = vmatprep.subr.bf16.mxu1 %v3457_v0 }
0x150e   : > { %5293 = vmatpush3.bf16.msra.mxu1 %v3457_v0 }
0x1510   : > { %v3428_v7 = vpop.f32.mrb[132].mxu0 }
0x1511   : > { %v3430_v5 = vpop.f32.mrb[133].mxu0 }
0x1512   : > { %v3432_v9 = vpop.f32.mrb[134].mxu0  ;;  %v3471_v39 = vadd.f32 %v4873_v47, %v3430_v5 }
0x1513   : > { %v3458_v62 = vpack.c.bf16 %v3432_v9, %v3428_v7  ;;  %v3434_v14 = vpop.f32.mrb[135].mxu0 }
0x1514   : > { %v3472_v10 = vadd.f32 %v4873_v47, %v3434_v14 }
0x1515   : > { %5294 = vmatprep.subr.bf16.mxu1 %v3458_v62 }
0x1516   : > { %5295 = vmatpush3.bf16.msra.mxu1 %v3458_v62 }
0x1518   : > { %v3438_v20 = vpop.f32.mrb[136].mxu0 }
0x1519   : > { %v3440_v35 = vpop.f32.mrb[137].mxu0 }
0x151a   : > { %v3442_v38 = vpop.f32.mrb[138].mxu0  ;;  %v3473_v31 = vadd.f32 %v4873_v47, %v3440_v35 }
0x151b   : > { %v3459_v15 = vpack.c.bf16 %v3442_v38, %v3438_v20  ;;  %v3444_v23 = vpop.f32.mrb[139].mxu0 }
0x151c   : > { %v3474_v33 = vadd.f32 %v4873_v47, %v3444_v23 }
0x151d   : > { %5296 = vmatprep.subr.bf16.mxu1 %v3459_v15 }
0x151e   : > { %5297 = vmatpush3.bf16.msra.mxu1 %v3459_v15 }
0x1520   : > { %v3448_v19 = vpop.f32.mrb[140].mxu0 }
0x1521   : > { %v3450_v17 = vpop.f32.mrb[141].mxu0 }
0x1522   : > { %v3452_v29 = vpop.f32.mrb[142].mxu0  ;;  %v3475_v27 = vadd.f32 %v4873_v47, %v3450_v17 }
0x1523   : > { %v3460_v13 = vpack.c.bf16 %v3452_v29, %v3448_v19  ;;  %v3454_v36 = vpop.f32.mrb[143].mxu0 }
0x1524   : > { %v3476_v55 = vadd.f32 %v4873_v47, %v3454_v36 }
0x1525   : > { %5298 = vmatprep.subr.bf16.mxu1 %v3460_v13 }
0x1526   : > { %5299 = vmatpush3.bf16.msra.mxu1 %v3460_v13 }
0x1529   : > { %5301 = vmatmul.mubr.msk.bf16.vlgmr.msra.gmra.mrb[136].mxu1 %vm447_vm0, %v6778_v53 }
0x152a   : > { %5304 = vmatprep.mubr.msk.bf16.mxu1 %vm447_vm0, %v6785_v48 }
0x1531   : > { %5305 = vmatmul.mubr.msk.bf16.gmra.mrb[140].mxu1 %vm447_vm0, %v6804_v57 }
0x1532   : > { %5316 = vmatprep.mubr.msk.bf16.mxu1 %vm447_vm0, %v6752_v1 }
0x15fc   : > { %v5302_v6 = vpop.f32.mrb[136].mxu1 }
0x15fd   : > { %v3520_v21 = vadd.f32 %v5302_v6, %v3471_v39  ;;  %v3511_v54 = vpop.f32.mrb[137].mxu1 }
0x15fe   : > { %v3512_v26 = vadd.f32 %v3511_v54, %v3469_v41  ;;  %v5303_v32 = vpop.f32.mrb[138].mxu1  ;;  %v5687_v54 = vld [vmem:[%s7109_s2 + $0x684] ss:$8 sps:$4 sm:$0xff]  }
0x15ff   : > { %v3523_v37 = vadd.f32 %v5303_v32, %v3472_v10  ;;  %v3514_v22 = vpop.f32.mrb[139].mxu1  ;;  %v3544_v44 = vmax.f32 %v3520_v21, 0.0  ;;  %v5688_v32 = vld [vmem:[%s7109_s2 + $0x690] ss:$8 sps:$4 sm:$0xff]  }
0x1600   : > { %v3515_v59 = vadd.f32 %v3514_v22, %v3470_v52  ;;  %v3542_v28 = vmax.f32 %v3512_v26, 0.0  ;;  %v5685_v52 = vld [vmem:[%s7109_s2 + $0x680] ss:$8 sps:$4 sm:$0xff]   ;;  %v5690_v26 = vld [vmem:[%s7109_s2 + $0x694] ss:$8 sps:$4 sm:$0xff]  }
0x1601   : > { %v3545_v3 = vmax.f32 %v3523_v37, 0.0  ;;  %v5693_v37 = vld [vmem:[%s7109_s2 + $0x6a4] ss:$8 sps:$4 sm:$0xff]   ;;  %v5691_v22 = vld [vmem:[%s7109_s2 + $0x6a0] ss:$8 sps:$4 sm:$0xff]  }
0x1602   : > { %v3543_v43 = vmax.f32 %v3515_v59, 0.0  ;;  %v5696_v59 = vld [vmem:[%s7109_s2 + $0x6b4] ss:$8 sps:$4 sm:$0xff]  }
0x1603   : > { %v3551_v56 = vpack.c.bf16 %v3545_v3, %v3544_v44  ;;  %v5694_v44 = vld [vmem:[%s7109_s2 + $0x6b0] ss:$8 sps:$4 sm:$0xff]   ;;  %v5699_v3 = vld [vmem:[%s7109_s2 + $0x6c4] ss:$8 sps:$4 sm:$0xff]  }
0x1604   : > { %v3550_v49 = vpack.c.bf16 %v3543_v43, %v3542_v28  ;;  %v5306_v30 = vpop.f32.mrb[140].mxu1  ;;  %v5697_v28 = vld [vmem:[%s7109_s2 + $0x6c0] ss:$8 sps:$4 sm:$0xff]   ;;  %v5702_v43 = vld [vmem:[%s7109_s2 + $0x6d4] ss:$8 sps:$4 sm:$0xff]  }
0x1605   : > { %v3536_v24 = vadd.f32 %v5306_v30, %v3475_v27  ;;  %v3527_v18 = vpop.f32.mrb[141].mxu1  ;;  %v5700_v27 = vld [vmem:[%s7109_s2 + $0x6d0] ss:$8 sps:$4 sm:$0xff]  }
0x1606   : > { %v3528_v34 = vadd.f32 %v3527_v18, %v3473_v31  ;;  %v5307_v60 = vpop.f32.mrb[142].mxu1  ;;  %3684 = vmatmul.mubr.bf16.vlgmr.msra.gmra.mrb[144].mxu0 %v3550_v49  ;;  %v5703_v31 = vld [vmem:[%s7109_s2 + $0x6e0] ss:$8 sps:$4 sm:$0xff]   ;;  %v5708_v49 = vld [vmem:[%s7109_s2 + $0x6f4] ss:$8 sps:$4 sm:$0xff]  }
0x1607   : > { %v3539_v61 = vadd.f32 %v5307_v60, %v3476_v55  ;;  %v3530_v63 = vpop.f32.mrb[143].mxu1  ;;  %3693 = vmatprep.mubr.bf16.mxu0 %v5749_v2  ;;  %v3548_v4 = vmax.f32 %v3536_v24, 0.0  ;;  %v5706_v30 = vld [vmem:[%s7109_s2 + $0x6f0] ss:$8 sps:$4 sm:$0xff]   ;;  %v4911_v55 = vld [vmem:[%s7110_s3 + $0xc] ss:$0 sm:$0xff] }
0x1608   : > { %v3531_v0 = vadd.f32 %v3530_v63, %v3474_v33  ;;  %v3546_v5 = vmax.f32 %v3528_v34, 0.0 }
0x1609   : > { %v3549_v7 = vmax.f32 %v3539_v61, 0.0 }
0x160a   : > { %v3547_v9 = vmax.f32 %v3531_v0, 0.0 }
0x160b   : > { %v3553_v62 = vpack.c.bf16 %v3549_v7, %v3548_v4 }
0x160c   : > { %v3552_v14 = vpack.c.bf16 %v3547_v9, %v3546_v5 }
0x160e   : > { %3694 = vmatmul.mubr.bf16.gmra.mrb[148].mxu0 %v3551_v56  ;;  %v5705_v56 = vld [vmem:[%s7109_s2 + $0x6e4] ss:$8 sps:$4 sm:$0xff]  }
0x160f   : > { %3703 = vmatprep.mubr.bf16.mxu0 %v5749_v2 }
0x1616   : > { %3704 = vmatmul.mubr.bf16.gmra.mrb[152].mxu0 %v3552_v14 }
0x1617   : > { %3713 = vmatprep.mubr.bf16.mxu0 %v5749_v2 }
0x161e   : > { %3714 = vmatmul.mubr.bf16.gmra.mrb[156].mxu0 %v3553_v62 }
0x161f   : > { %5332 = vmatprep.mubr.msk.bf16.mxu0 %vm447_vm0, %v6752_v1 }
0x16d9   : > { %v3685_v20 = vpop.f32.mrb[144].mxu0 }
0x16da   : > { %v6944_v35 = vpop.f32.mrb[145].mxu0 }
0x16db   : > { %v3689_v38 = vpop.f32.mrb[146].mxu0  ;;  %v3736_v18 = vadd.f32 %v4911_v55, %v6944_v35 }
0x16dc   : > { %v3724_v15 = vpack.c.bf16 %v3689_v38, %v3685_v20  ;;  %v6946_v23 = vpop.f32.mrb[147].mxu0 }
0x16dd   : > { %v3737_v63 = vadd.f32 %v4911_v55, %v6946_v23 }
0x16de   : > { %5308 = vmatprep.subr.bf16.mxu1 %v3724_v15 }
0x16df   : > { %5309 = vmatpush3.bf16.msra.mxu1 %v3724_v15 }
0x16e1   : > { %v3695_v19 = vpop.f32.mrb[148].mxu0 }
0x16e2   : > { %v3697_v17 = vpop.f32.mrb[149].mxu0 }
0x16e3   : > { %v3699_v29 = vpop.f32.mrb[150].mxu0  ;;  %v3738_v24 = vadd.f32 %v4911_v55, %v3697_v17 }
0x16e4   : > { %v3725_v13 = vpack.c.bf16 %v3699_v29, %v3695_v19  ;;  %v3701_v36 = vpop.f32.mrb[151].mxu0 }
0x16e5   : > { %v3739_v34 = vadd.f32 %v4911_v55, %v3701_v36 }
0x16e6   : > { %5310 = vmatprep.subr.bf16.mxu1 %v3725_v13 }
0x16e7   : > { %5311 = vmatpush3.bf16.msra.mxu1 %v3725_v13 }
0x16e9   : > { %v3705_v51 = vpop.f32.mrb[152].mxu0 }
0x16ea   : > { %v6948_v25 = vpop.f32.mrb[153].mxu0 }
0x16eb   : > { %v3709_v40 = vpop.f32.mrb[154].mxu0  ;;  %v3740_v29 = vadd.f32 %v4911_v55, %v6948_v25 }
0x16ec   : > { %v3726_v16 = vpack.c.bf16 %v3709_v40, %v3705_v51  ;;  %v6950_v47 = vpop.f32.mrb[155].mxu0 }
0x16ee   : > { %5312 = vmatprep.subr.bf16.mxu1 %v3726_v16 }
0x16ef   : > { %5313 = vmatpush3.bf16.msra.mxu1 %v3726_v16 }
0x16f1   : > { %v3715_v39 = vpop.f32.mrb[156].mxu0 }
0x16f2   : > { %v3717_v41 = vpop.f32.mrb[157].mxu0 }
0x16f3   : > { %v3719_v6 = vpop.f32.mrb[158].mxu0  ;;  %v3742_v35 = vadd.f32 %v4911_v55, %v3717_v41 }
0x16f4   : > { %v3727_v10 = vpack.c.bf16 %v3719_v6, %v3715_v39  ;;  %v6952_v21 = vpop.f32.mrb[159].mxu0 }
0x16f5   : > { %v3743_v36 = vadd.f32 %v4911_v55, %v6952_v21 }
0x16f6   : > { %5314 = vmatprep.subr.bf16.mxu1 %v3727_v10 }
0x16f7   : > { %5315 = vmatpush3.bf16.msra.mxu1 %v3727_v10 }
0x16f8   : > { %3934 = vmatprep.subr.bf16.mxu1 %v5687_v54 }
0x16fa   : > { %5317 = vmatmul.mubr.msk.bf16.vlgmr.msra.gmra.mrb[144].mxu1 %vm447_vm0, %v6778_v53 }
0x16fb   : > { %5320 = vmatprep.mubr.msk.bf16.mxu1 %vm447_vm0, %v6785_v48  ;;  %3935 = vmatpush1.bf16.msra.mxu1 %v5685_v52 }
0x16fc   : > { %3936 = vmatprep.subr.bf16.mxu1 %v5690_v26 }
0x16ff   : > { %3937 = vmatpush1.bf16.msra.mxu1 %v5688_v32 }
0x1700   : > { %3938 = vmatprep.subr.bf16.mxu1 %v5693_v37 }
0x1702   : > { %5321 = vmatmul.mubr.msk.bf16.gmra.mrb[148].mxu1 %vm447_vm0, %v6804_v57 }
0x1703   : > { %3939 = vmatpush1.bf16.msra.mxu1 %v5691_v22  ;;  %3966 = vmatprep.mubr.bf16.mxu1 %v5749_v2 }
0x1704   : > { %3940 = vmatprep.subr.bf16.mxu1 %v5696_v59 }
0x1707   : > { %3941 = vmatpush1.bf16.msra.mxu1 %v5694_v44 }
0x1708   : > { %3942 = vmatprep.subr.bf16.mxu1 %v5699_v3 }
0x170b   : > { %3943 = vmatpush1.bf16.msra.mxu1 %v5697_v28 }
0x170c   : > { %3944 = vmatprep.subr.bf16.mxu1 %v5702_v43 }
0x170f   : > { %3945 = vmatpush1.bf16.msra.mxu1 %v5700_v27 }
0x1710   : > { %3946 = vmatprep.subr.bf16.mxu1 %v5705_v56 }
0x1713   : > { %3947 = vmatpush1.bf16.msra.mxu1 %v5703_v31 }
0x1714   : > { %3948 = vmatprep.subr.bf16.mxu1 %v5708_v49  ;;  %v5717_v49 = vld [vmem:[%s7109_s2 + $0x724] ss:$8 sps:$4 sm:$0xff]  }
0x1717   : > { %3949 = vmatpush1.bf16.msra.mxu1 %v5706_v30  ;;  %v5715_v30 = vld [vmem:[%s7109_s2 + $0x720] ss:$8 sps:$4 sm:$0xff]  }
0x17cd   : > { %v5318_v33 = vpop.f32.mrb[144].mxu1 }
0x17ce   : > { %v3787_v60 = vadd.f32 %v5318_v33, %v3738_v24  ;;  %v3778_v61 = vpop.f32.mrb[145].mxu1  ;;  %v5718_v24 = vld [vmem:[%s7109_s2 + $0x730] ss:$8 sps:$4 sm:$0xff]   ;;  %v5721_v33 = vld [vmem:[%s7109_s2 + $0x740] ss:$8 sps:$4 sm:$0xff]  }
0x17cf   : > { %v3779_v0 = vadd.f32 %v3778_v61, %v3736_v18  ;;  %v5319_v4 = vpop.f32.mrb[146].mxu1  ;;  %v5723_v18 = vld [vmem:[%s7109_s2 + $0x744] ss:$8 sps:$4 sm:$0xff]  }
0x17d0   : > { %v3811_v7 = vmax.f32 %v3787_v60, 0.0  ;;  %v3790_v5 = vadd.f32 %v5319_v4, %v3739_v34  ;;  %v3781_v9 = vpop.f32.mrb[147].mxu1  ;;  %v5726_v34 = vld [vmem:[%s7109_s2 + $0x754] ss:$8 sps:$4 sm:$0xff]   ;;  %v5724_v60 = vld [vmem:[%s7109_s2 + $0x750] ss:$8 sps:$4 sm:$0xff]  }
0x17d1   : > { %v3809_v62 = vmax.f32 %v3779_v0, 0.0  ;;  %v3782_v14 = vadd.f32 %v3781_v9, %v3737_v63 }
0x17d2   : > { %v3819_v20 = vadd.f32 %v3811_v7, %v6857_v45  ;;  %v3812_v38 = vmax.f32 %v3790_v5, 0.0  ;;  %v3741_v45 = vadd.f32 %v4911_v55, %v6950_v47  ;;  %v5720_v55 = vld [vmem:[%s7109_s2 + $0x734] ss:$8 sps:$4 sm:$0xff]  }
0x17d3   : > { %v3817_v15 = vadd.f32 %v3809_v62, %v6846_v50  ;;  %v3810_v19 = vmax.f32 %v3782_v14, 0.0 }
0x17d4   : > { %v3820_v17 = vadd.f32 %v3812_v38, %v6855_v11  ;;  %v3827_v51 = vmul.f32 0.5, %v3819_v20 }
0x17d5   : > { %v3818_v23 = vadd.f32 %v3810_v19, %v6848_v46  ;;  %v5322_v13 = vpop.f32.mrb[148].mxu1  ;;  %v3825_v6 = vmul.f32 0.5, %v3817_v15 }
0x17d6   : > { %v3828_v40 = vmul.f32 0.5, %v3820_v17  ;;  %v3803_v16 = vadd.f32 %v5322_v13, %v3742_v35  ;;  %v3794_v39 = vpop.f32.mrb[149].mxu1 }
0x17d7   : > { %v3826_v10 = vmul.f32 0.5, %v3818_v23  ;;  %v3795_v50 = vadd.f32 %v3794_v39, %v3740_v29  ;;  %v5323_v54 = vpop.f32.mrb[150].mxu1  ;;  %v5732_v39 = vld [vmem:[%s7109_s2 + $0x774] ss:$8 sps:$4 sm:$0xff]  }
0x17d8   : > { %v3815_v41 = vmax.f32 %v3803_v16, 0.0  ;;  %v3806_v52 = vadd.f32 %v5323_v54, %v3743_v36  ;;  %v3797_v11 = vpop.f32.mrb[151].mxu1  ;;  %v3834_v26 = vpack.c.bf16 %v3828_v40, %v3827_v51  ;;  %v5729_v40 = vld [vmem:[%s7109_s2 + $0x764] ss:$8 sps:$4 sm:$0xff]   ;;  %v5727_v16 = vld [vmem:[%s7109_s2 + $0x760] ss:$8 sps:$4 sm:$0xff]  }
0x17d9   : > { %v3833_v25 = vpack.c.bf16 %v3826_v10, %v3825_v6  ;;  %v3813_v32 = vmax.f32 %v3795_v50, 0.0  ;;  %v3798_v46 = vadd.f32 %v3797_v11, %v3741_v45  ;;  %v5730_v45 = vld [vmem:[%s7109_s2 + $0x770] ss:$8 sps:$4 sm:$0xff]  }
0x17da   : > { %v3823_v37 = vadd.f32 %v3815_v41, %v6875_v58  ;;  %v3816_v21 = vmax.f32 %v3806_v52, 0.0  ;;  %v5712_v58 = vld [vmem:[%s7109_s2 + $0x710] ss:$8 sps:$4 sm:$0xff]  }
0x17db   : > { %v3821_v22 = vadd.f32 %v3813_v32, %v6866_v42  ;;  %v3814_v59 = vmax.f32 %v3798_v46, 0.0  ;;  %3967 = vmatmul.mubr.bf16.vlgmr.msra.gmra.mrb[152].mxu1 %v3833_v25  ;;  %v5709_v42 = vld [vmem:[%s7109_s2 + $0x700] ss:$8 sps:$4 sm:$0xff]  }
0x17dc   : > { %v3824_v47 = vadd.f32 %v3816_v21, %v6873_v8  ;;  %3976 = vmatprep.mubr.bf16.mxu1 %v5749_v2  ;;  %v3831_v3 = vmul.f32 0.5, %v3823_v37  ;;  %v5714_v8 = vld [vmem:[%s7109_s2 + $0x714] ss:$8 sps:$4 sm:$0xff]  }
0x17dd   : > { %v3822_v44 = vadd.f32 %v3814_v59, %v6864_v12  ;;  %v3829_v43 = vmul.f32 0.5, %v3821_v22  ;;  %v5711_v12 = vld [vmem:[%s7109_s2 + $0x704] ss:$8 sps:$4 sm:$0xff]  }
0x17de   : > { %v3832_v28 = vmul.f32 0.5, %v3824_v47  ;;  %4201 = vmatprep.subr.bf16.mxu1 %v5711_v12 }
0x17df   : > { %v3830_v27 = vmul.f32 0.5, %v3822_v44  ;;  %4202 = vmatpush1.bf16.msra.mxu1 %v5709_v42 }
0x17e0   : > { %v3836_v56 = vpack.c.bf16 %v3832_v28, %v3831_v3  ;;  %4203 = vmatprep.subr.bf16.mxu1 %v5714_v8 }
0x17e1   : > { %v3835_v31 = vpack.c.bf16 %v3830_v27, %v3829_v43 }
0x17e3   : > { %3977 = vmatmul.mubr.bf16.gmra.mrb[156].mxu1 %v3834_v26 }
0x17e4   : > { %3986 = vmatprep.mubr.bf16.mxu1 %v5749_v2  ;;  %4204 = vmatpush1.bf16.msra.mxu1 %v5712_v58 }
0x17e5   : > { %4205 = vmatprep.subr.bf16.mxu1 %v5717_v49 }
0x17e8   : > { %4206 = vmatpush1.bf16.msra.mxu1 %v5715_v30 }
0x17e9   : > { %4207 = vmatprep.subr.bf16.mxu1 %v5720_v55 }
0x17eb   : > { %3987 = vmatmul.mubr.bf16.gmra.mrb[160].mxu1 %v3835_v31 }
0x17ec   : > { %3996 = vmatprep.mubr.bf16.mxu1 %v5749_v2  ;;  %4208 = vmatpush1.bf16.msra.mxu1 %v5718_v24 }
0x17ed   : > { %4209 = vmatprep.subr.bf16.mxu1 %v5723_v18 }
0x17f0   : > { %4210 = vmatpush1.bf16.msra.mxu1 %v5721_v33 }
0x17f1   : > { %4211 = vmatprep.subr.bf16.mxu1 %v5726_v34 }
0x17f3   : > { %3997 = vmatmul.mubr.bf16.gmra.mrb[164].mxu1 %v3836_v56 }
0x17f4   : > { %4233 = vmatprep.mubr.bf16.mxu1 %v5749_v2  ;;  %4212 = vmatpush1.bf16.msra.mxu1 %v5724_v60 }
0x17f5   : > { %4213 = vmatprep.subr.bf16.mxu1 %v5729_v40  ;;  %v4987_v40 = vld [vmem:[%s7110_s3 + $0xe] ss:$0 sm:$0xff] }
0x17f8   : > { %4214 = vmatpush1.bf16.msra.mxu1 %v5727_v16 }
0x17f9   : > { %4215 = vmatprep.subr.bf16.mxu1 %v5732_v39 }
0x17fc   : > { %4216 = vmatpush1.bf16.msra.mxu1 %v5730_v45 }
0x18ae   : > { %v3968_v61 = vpop.f32.mrb[152].mxu1 }
0x18af   : > { %v3970_v63 = vpop.f32.mrb[153].mxu1 }
0x18b0   : > { %v3972_v0 = vpop.f32.mrb[154].mxu1 }
0x18b1   : > { %v4007_v4 = vpack.c.bf16 %v3972_v0, %v3968_v61  ;;  %v3974_v7 = vpop.f32.mrb[155].mxu1 }
0x18b3   : > { %5324 = vmatprep.subr.bf16.mxu0 %v4007_v4 }
0x18b4   : > { %5325 = vmatpush3.bf16.msra.mxu0 %v4007_v4 }
0x18b6   : > { %v3978_v5 = vpop.f32.mrb[156].mxu1 }
0x18b7   : > { %v3980_v9 = vpop.f32.mrb[157].mxu1 }
0x18b8   : > { %v3982_v62 = vpop.f32.mrb[158].mxu1 }
0x18b9   : > { %v4008_v14 = vpack.c.bf16 %v3982_v62, %v3978_v5  ;;  %v3984_v20 = vpop.f32.mrb[159].mxu1 }
0x18bb   : > { %5326 = vmatprep.subr.bf16.mxu0 %v4008_v14 }
0x18bc   : > { %5327 = vmatpush3.bf16.msra.mxu0 %v4008_v14 }
0x18be   : > { %v3988_v38 = vpop.f32.mrb[160].mxu1 }
0x18bf   : > { %v3990_v15 = vpop.f32.mrb[161].mxu1 }
0x18c0   : > { %v3992_v19 = vpop.f32.mrb[162].mxu1 }
0x18c1   : > { %v4009_v35 = vpack.c.bf16 %v3992_v19, %v3988_v38  ;;  %v3994_v17 = vpop.f32.mrb[163].mxu1 }
0x18c3   : > { %5328 = vmatprep.subr.bf16.mxu0 %v4009_v35 }
0x18c4   : > { %5329 = vmatpush3.bf16.msra.mxu0 %v4009_v35 }
0x18c6   : > { %v3998_v29 = vpop.f32.mrb[164].mxu1 }
0x18c7   : > { %v4000_v23 = vpop.f32.mrb[165].mxu1 }
0x18c8   : > { %v4002_v13 = vpop.f32.mrb[166].mxu1 }
0x18c9   : > { %v4010_v36 = vpack.c.bf16 %v4002_v13, %v3998_v29  ;;  %v4004_v51 = vpop.f32.mrb[167].mxu1 }
0x18cb   : > { %5330 = vmatprep.subr.bf16.mxu0 %v4010_v36 }
0x18cc   : > { %5331 = vmatpush3.bf16.msra.mxu0 %v4010_v36 }
0x18cf   : > { %5333 = vmatmul.mubr.msk.bf16.vlgmr.msra.gmra.mrb[160].mxu0 %vm447_vm0, %v6778_v53 }
0x18d0   : > { %5336 = vmatprep.mubr.msk.bf16.mxu0 %vm447_vm0, %v6785_v48 }
0x18d7   : > { %5337 = vmatmul.mubr.msk.bf16.gmra.mrb[164].mxu0 %vm447_vm0, %v6804_v57 }
0x18d8   : > { %5348 = vmatprep.mubr.msk.bf16.mxu0 %vm447_vm0, %v6752_v1  ;;  %v4949_v1 = vld [vmem:[%s7110_s3 + $0xd] ss:$0 sm:$0xff] }
0x18d9   : > { %v4021_v6 = vadd.f32 %v4949_v1, %v3980_v9  ;;  %v4019_v10 = vadd.f32 %v4949_v1, %v3970_v63  ;;  %v4022_v54 = vadd.f32 %v4949_v1, %v3984_v20  ;;  %v4020_v11 = vadd.f32 %v4949_v1, %v3974_v7 }
0x18da   : > { %v4025_v44 = vadd.f32 %v4949_v1, %v4000_v23  ;;  %v4023_v28 = vadd.f32 %v4949_v1, %v3990_v15  ;;  %v4026_v56 = vadd.f32 %v4949_v1, %v4004_v51  ;;  %v4024_v12 = vadd.f32 %v4949_v1, %v3994_v17 }
0x19a2   : > { %v5334_v50 = vpop.f32.mrb[160].mxu0 }
0x19a3   : > { %v4070_v41 = vadd.f32 %v5334_v50, %v4021_v6  ;;  %v4061_v52 = vpop.f32.mrb[161].mxu0 }
0x19a4   : > { %v4062_v26 = vadd.f32 %v4061_v52, %v4019_v10  ;;  %v5335_v25 = vpop.f32.mrb[162].mxu0 }
0x19a5   : > { %v4073_v32 = vadd.f32 %v5335_v25, %v4022_v54  ;;  %v4064_v46 = vpop.f32.mrb[163].mxu0  ;;  %v4094_v21 = vmax.f32 %v4070_v41, 0.0 }
0x19a6   : > { %v4065_v37 = vadd.f32 %v4064_v46, %v4020_v11  ;;  %v4092_v59 = vmax.f32 %v4062_v26, 0.0 }
0x19a7   : > { %v4095_v22 = vmax.f32 %v4073_v32, 0.0 }
0x19a8   : > { %v4093_v47 = vmax.f32 %v4065_v37, 0.0 }
0x19a9   : > { %v4101_v3 = vpack.c.bf16 %v4095_v22, %v4094_v21 }
0x19aa   : > { %v4100_v43 = vpack.c.bf16 %v4093_v47, %v4092_v59  ;;  %v5338_v27 = vpop.f32.mrb[164].mxu0 }
0x19ab   : > { %v4086_v31 = vadd.f32 %v5338_v27, %v4025_v44  ;;  %v4077_v42 = vpop.f32.mrb[165].mxu0 }
0x19ac   : > { %v4078_v8 = vadd.f32 %v4077_v42, %v4023_v28  ;;  %v5339_v58 = vpop.f32.mrb[166].mxu0  ;;  %4234 = vmatmul.mubr.bf16.vlgmr.msra.gmra.mrb[168].mxu1 %v4100_v43 }
0x19ad   : > { %v4089_v49 = vadd.f32 %v5339_v58, %v4026_v56  ;;  %v4080_v30 = vpop.f32.mrb[167].mxu0  ;;  %4243 = vmatprep.mubr.bf16.mxu1 %v5749_v2  ;;  %v4098_v24 = vmax.f32 %v4086_v31, 0.0 }
0x19ae   : > { %v4081_v55 = vadd.f32 %v4080_v30, %v4024_v12  ;;  %v4096_v33 = vmax.f32 %v4078_v8, 0.0 }
0x19af   : > { %v4099_v18 = vmax.f32 %v4089_v49, 0.0 }
0x19b0   : > { %v4097_v34 = vmax.f32 %v4081_v55, 0.0 }
0x19b1   : > { %v4103_v60 = vpack.c.bf16 %v4099_v18, %v4098_v24 }
0x19b2   : > { %v4102_v61 = vpack.c.bf16 %v4097_v34, %v4096_v33 }
0x19b4   : > { %4244 = vmatmul.mubr.bf16.gmra.mrb[172].mxu1 %v4101_v3 }
0x19b5   : > { %4253 = vmatprep.mubr.bf16.mxu1 %v5749_v2 }
0x19bc   : > { %4254 = vmatmul.mubr.bf16.gmra.mrb[176].mxu1 %v4102_v61 }
0x19bd   : > { %4263 = vmatprep.mubr.bf16.mxu1 %v5749_v2 }
0x19c4   : > { %4264 = vmatmul.mubr.bf16.gmra.mrb[180].mxu1 %v4103_v60 }
0x1a7f   : > { %v4235_v63 = vpop.f32.mrb[168].mxu1 }
0x1a80   : > { %v4237_v0 = vpop.f32.mrb[169].mxu1 }
0x1a81   : > { %v4239_v4 = vpop.f32.mrb[170].mxu1  ;;  %v4286_v39 = vadd.f32 %v4987_v40, %v4237_v0 }
0x1a82   : > { %v4274_v7 = vpack.c.bf16 %v4239_v4, %v4235_v63  ;;  %v4241_v5 = vpop.f32.mrb[171].mxu1 }
0x1a83   : > { %v4287_v10 = vadd.f32 %v4987_v40, %v4241_v5 }
0x1a84   : > { %5340 = vmatprep.subr.bf16.mxu0 %v4274_v7 }
0x1a85   : > { %5341 = vmatpush3.bf16.msra.mxu0 %v4274_v7 }
0x1a87   : > { %v4245_v9 = vpop.f32.mrb[172].mxu1 }
0x1a88   : > { %v4247_v62 = vpop.f32.mrb[173].mxu1 }
0x1a89   : > { %v4249_v14 = vpop.f32.mrb[174].mxu1  ;;  %v4288_v16 = vadd.f32 %v4987_v40, %v4247_v62 }
0x1a8a   : > { %v4275_v20 = vpack.c.bf16 %v4249_v14, %v4245_v9  ;;  %v4251_v38 = vpop.f32.mrb[175].mxu1 }
0x1a8b   : > { %v4289_v1 = vadd.f32 %v4987_v40, %v4251_v38 }
0x1a8c   : > { %5342 = vmatprep.subr.bf16.mxu0 %v4275_v20 }
0x1a8d   : > { %5343 = vmatpush3.bf16.msra.mxu0 %v4275_v20 }
0x1a8f   : > { %v4255_v15 = vpop.f32.mrb[176].mxu1 }
0x1a90   : > { %v4257_v19 = vpop.f32.mrb[177].mxu1 }
0x1a91   : > { %v4259_v35 = vpop.f32.mrb[178].mxu1  ;;  %v4290_v11 = vadd.f32 %v4987_v40, %v4257_v19 }
0x1a92   : > { %v4276_v2 = vpack.c.bf16 %v4259_v35, %v4255_v15  ;;  %v4261_v17 = vpop.f32.mrb[179].mxu1 }
0x1a93   : > { %v4291_v37 = vadd.f32 %v4987_v40, %v4261_v17 }
0x1a94   : > { %5344 = vmatprep.subr.bf16.mxu0 %v4276_v2 }
0x1a95   : > { %5345 = vmatpush3.bf16.msra.mxu0 %v4276_v2 }
0x1a97   : > { %v4265_v29 = vpop.f32.mrb[180].mxu1 }
0x1a98   : > { %v4267_v23 = vpop.f32.mrb[181].mxu1 }
0x1a99   : > { %v4269_v13 = vpop.f32.mrb[182].mxu1  ;;  %v4292_v52 = vadd.f32 %v4987_v40, %v4267_v23 }
0x1a9a   : > { %v4277_v36 = vpack.c.bf16 %v4269_v13, %v4265_v29  ;;  %v4271_v51 = vpop.f32.mrb[183].mxu1 }
0x1a9b   : > { %v4293_v25 = vadd.f32 %v4987_v40, %v4271_v51 }
0x1a9c   : > { %5346 = vmatprep.subr.bf16.mxu0 %v4277_v36 }
0x1a9d   : > { %5347 = vmatpush3.bf16.msra.mxu0 %v4277_v36 }
0x1aa0   : > { %5349 = vmatmul.mubr.msk.bf16.vlgmr.msra.gmra.mrb[168].mxu0 %vm447_vm0, %v6778_v53 }
0x1aa1   : > { %5352 = vmatprep.mubr.msk.bf16.mxu0 %vm447_vm0, %v6785_v48 }
0x1aa8   : > { %5353 = vmatmul.mubr.msk.bf16.gmra.mrb[172].mxu0 %vm447_vm0, %v6804_v57 }
0x1b73   : > { %v5350_v45 = vpop.f32.mrb[168].mxu0 }
0x1b74   : > { %v4337_v53 = vadd.f32 %v5350_v45, %v4288_v16  ;;  %v4328_v6 = vpop.f32.mrb[169].mxu0 }
0x1b75   : > { %v4329_v48 = vadd.f32 %v4328_v6, %v4286_v39  ;;  %v5351_v50 = vpop.f32.mrb[170].mxu0 }
0x1b76   : > { %4361 = vst [vmem:[%s197_s30 + $0x10] sm:$0xff] %v4337_v53  ;;  %v4340_v57 = vadd.f32 %v5351_v50, %v4289_v1  ;;  %v4331_v54 = vpop.f32.mrb[171].mxu0 }
0x1b77   : > { %4359 = vst [vmem:[%s197_s30] sm:$0xff] %v4329_v48  ;;  %v4332_v41 = vadd.f32 %v4331_v54, %v4287_v10 }
0x1b78   : > { %4362 = vst [vmem:[%s197_s30 + $0x18] sm:$0xff] %v4340_v57 }
0x1b79   : > { %4360 = vst [vmem:[%s197_s30 + $0x8] sm:$0xff] %v4332_v41 }
0x1b7b   : > { %v5354_v26 = vpop.f32.mrb[172].mxu0 }
0x1b7c   : > { %v4353_v32 = vadd.f32 %v5354_v26, %v4292_v52  ;;  %v4344_v46 = vpop.f32.mrb[173].mxu0 }
0x1b7d   : > { %v4345_v21 = vadd.f32 %v4344_v46, %v4290_v11  ;;  %v5355_v22 = vpop.f32.mrb[174].mxu0 }
0x1b7e   : > { %4365 = vst [vmem:[%s197_s30 + $0x30] sm:$0xff] %v4353_v32  ;;  %v4356_v59 = vadd.f32 %v5355_v22, %v4293_v25  ;;  %v4347_v47 = vpop.f32.mrb[175].mxu0 }
0x1b7f   : > { %4363 = vst [vmem:[%s197_s30 + $0x20] sm:$0xff] %v4345_v21  ;;  %v4348_v44 = vadd.f32 %v4347_v47, %v4291_v37 }
0x1b80   : > { %4366 = vst [vmem:[%s197_s30 + $0x38] sm:$0xff] %v4356_v59 }
0x1b81   : > { %4364 = vst [vmem:[%s197_s30 + $0x28] sm:$0xff] %v4348_v44 }
0x1b82 PF: > { %s14_s15 = sadd.s32 1, %s5747_s15  }
0x1b83   : > { %p11_p4 = scmp.ge.s32.totalorder %s14_s15, 4  }
0x1b85   :  { %13 = sbr.rel (!%p11_p4) target bundleno = 1 (0x1), region = 94 }

</bundles_post_ra>
